<compile_context>
chip_gen: v7x
topology: tpu7x:2x2x1
jax: 0.10.0
libtpu: 0.0.40
codegen_flags: <defaults>
</compile_context>

<pallas_src>
import functools

import jax
import jax.numpy as jnp
import numpy as np
from jax import lax
from jax.experimental import pallas as pl
from jax.experimental.pallas import tpu as pltpu


# ----------------------------------------------------------------------------
# Kernel
# ----------------------------------------------------------------------------
def bihgru_kernel(x_ref,
                  w_fused_ref, b_fused_ref, w_lam_ref, b_lam_ref,
                  cos_f_ref, sin_f_ref, cos_r_ref, sin_r_ref,
                  ln_w_r_ref, ln_w_i_ref, ln_b_r_ref, ln_b_i_ref,
                  w_out_ref, b_out_ref,
                  out_ref,
                  lam_s, u_r_s, u_i_s, h_r_s, h_i_s, g_r_s, g_i_s,
                  *, n_chunk):
    n, bt, d = x_ref.shape
    mm_dtype = w_fused_ref.dtype
    lam_dtype = w_lam_ref.dtype
    num_chunks = n // n_chunk
    rows = n_chunk * bt

    def chunk_slice(c):
        t0 = c * n_chunk
        if not isinstance(t0, int):              # only hint traced starts
            t0 = pl.multiple_of(t0, n_chunk)
        return pl.ds(t0, n_chunk)

    def chunked(body):
        if num_chunks == 1:
            body(0, 0)                           # inline: no loop overhead
        else:
            lax.fori_loop(0, num_chunks, body, 0)

    # ---- Stage 1: fused projection + activations -> scratch (chunked) -------
    # w_fused columns: [input_real | input_imag | gate_real | gate_imag].
    def proj_chunk(c, carry):
        sl = chunk_slice(c)
        xc = x_ref[sl].reshape(rows, d)
        proj = jnp.dot(xc.astype(mm_dtype), w_fused_ref[...],
                       preferred_element_type=jnp.float32) + b_fused_ref[...]
        # lambda kept as its own projection (f32 by default): recurrence
        # coefficient errors compound geometrically over n.
        lam = jax.nn.sigmoid(
            jnp.dot(xc.astype(lam_dtype), w_lam_ref[...],
                    preferred_element_type=jnp.float32) + b_lam_ref[...])
        is_r = jax.nn.silu(proj[:, 0 * d:1 * d])
        is_i = jax.nn.silu(proj[:, 1 * d:2 * d])
        lam_s[sl] = lam.reshape(n_chunk, bt, d)
        u_r_s[sl] = ((1.0 - lam) * is_r).reshape(n_chunk, bt, d)
        u_i_s[sl] = ((1.0 - lam) * is_i).reshape(n_chunk, bt, d)
        # gates to explicit scratch (not SSA across the scans).
        g_r_s[sl] = jax.nn.silu(proj[:, 2 * d:3 * d]).reshape(n_chunk, bt, d)
        g_i_s[sl] = jax.nn.silu(proj[:, 3 * d:4 * d]).reshape(n_chunk, bt, d)
        return carry

    chunked(proj_chunk)

    # Hoist (1, d) -> (bt, d) broadcasts of the rotation constants out of the
    # scan loops (JAX does not CSE broadcast_in_dim inside loops).
    cos_f = jnp.broadcast_to(cos_f_ref[...], (bt, d))
    sin_f = jnp.broadcast_to(sin_f_ref[...], (bt, d))
    cos_r = jnp.broadcast_to(cos_r_ref[...], (bt, d))
    sin_r = jnp.broadcast_to(sin_r_ref[...], (bt, d))
    zeros = jnp.zeros((bt, d), jnp.float32)

    # Unroll vs. vreg pressure: carry (2) + ~6 per-step temporaries each take
    # ~bt*d/1024 vregs of the 64-entry file, so bigger tiles unroll less.
    elems = bt * d
    unroll = 2 if elems >= 16384 else (4 if elems >= 8192 else 8)
    unroll = max(1, min(n, unroll))

    # ---- Stage 2a: forward complex scan  h_t = gamma_t * h_{t-1} + u_t -------
    def fwd_body(t, carry):
        hr, hi = carry
        lam_t = lam_s[t]
        ur = u_r_s[t]
        ui = u_i_s[t]
        gr = lam_t * cos_f
        gi = lam_t * sin_f
        nhr = gr * hr - gi * hi + ur
        nhi = gi * hr + gr * hi + ui
        h_r_s[t] = nhr
        h_i_s[t] = nhi
        return (nhr, nhi)

    lax.fori_loop(0, n, fwd_body, (zeros, zeros), unroll=unroll)

    # ---- Stage 2b: reverse scan (no read-modify-write on h) ------------------
    # u_{r,i}[t] are dead once read here, so the reverse hidden state is written
    # over them; the fwd+rev combine happens in the (parallel) epilogue.
    def rev_body(s, carry):
        hr, hi = carry
        t = n - 1 - s
        lam_t = lam_s[t]
        ur = u_r_s[t]
        ui = u_i_s[t]
        gr = lam_t * cos_r
        gi = lam_t * sin_r
        nhr = gr * hr - gi * hi + ur
        nhi = gi * hr + gr * hi + ui
        u_r_s[t] = nhr
        u_i_s[t] = nhi
        return (nhr, nhi)

    lax.fori_loop(0, n, rev_body, (zeros, zeros), unroll=unroll)

    # ---- Stage 3: combine, LayerNorm(2d), gate, out-proj (chunked) -----------
    # TODO(synk): v6e-only variant that interleaves fwd/rev scans in one loop
    # (needs +2 scratch planes) is not implemented; beneficial only when
    # bt*d is small and VMEM headroom is large.
    inv_two_d = 1.0 / (2.0 * d)
    fuse_out = (d % 128 == 0)   # single K=2d dot only when the concat is aligned

    def epi_chunk(c, carry):
        sl = chunk_slice(c)
        hr = (h_r_s[sl] + u_r_s[sl]).reshape(rows, d)
        hi = (h_i_s[sl] + u_i_s[sl]).reshape(rows, d)
        mean = (jnp.sum(hr, axis=-1, keepdims=True)
                + jnp.sum(hi, axis=-1, keepdims=True)) * inv_two_d
        dr = hr - mean
        di = hi - mean
        var = (jnp.sum(dr * dr, axis=-1, keepdims=True)
               + jnp.sum(di * di, axis=-1, keepdims=True)) * inv_two_d
        inv = lax.rsqrt(var + 1e-5)
        f_r = (dr * inv * ln_w_r_ref[...] + ln_b_r_ref[...]) \
            * g_r_s[sl].reshape(rows, d)
        f_i = (di * inv * ln_w_i_ref[...] + ln_b_i_ref[...]) \
            * g_i_s[sl].reshape(rows, d)
        if fuse_out:
            gated = jnp.concatenate([f_r, f_i], axis=-1).astype(mm_dtype)
            out = jnp.dot(gated, w_out_ref[...],
                          preferred_element_type=jnp.float32) + b_out_ref[...]
        else:
            wo = w_out_ref[...]
            out = (jnp.dot(f_r.astype(mm_dtype), wo[:d],
                           preferred_element_type=jnp.float32)
                   + jnp.dot(f_i.astype(mm_dtype), wo[d:],
                             preferred_element_type=jnp.float32)
                   + b_out_ref[...])
        out_ref[sl] = out.reshape(n_chunk, bt, d).astype(out_ref.dtype)
        return carry

    chunked(epi_chunk)


# ----------------------------------------------------------------------------
# Parameter plumbing (done once, outside the per-call path)
# ----------------------------------------------------------------------------
def prepare_params(params, matmul_dtype=jnp.bfloat16, lam_dtype=jnp.float32):
    (w_in, b_in, w_lam, b_lam, theta_f, theta_r,
     w_gate, b_gate, w_out, b_out, ln_w, ln_b) = params
    d = w_in.shape[0]
    row = lambda v: jnp.asarray(v, jnp.float32).reshape(1, -1)

    # Fused (d, 4d) weight: [in_real | in_imag | gate_real | gate_imag].
    # input_proj's interleaved '(e k)' columns are split into real/imag halves.
    w_fused = jnp.concatenate(
        [w_in[:, 0::2], w_in[:, 1::2], w_gate[:, :d], w_gate[:, d:]],
        axis=1).astype(matmul_dtype)
    b_fused = jnp.concatenate(
        [b_in[0::2], b_in[1::2], b_gate[:d], b_gate[d:]]
    ).reshape(1, 4 * d).astype(jnp.float32)

    return dict(
        w_fused=w_fused, b_fused=b_fused,
        w_lam=jnp.asarray(w_lam, lam_dtype), b_lam=row(b_lam),
        cos_f=row(jnp.cos(theta_f.reshape(-1))),
        sin_f=row(jnp.sin(theta_f.reshape(-1))),
        cos_r=row(jnp.cos(theta_r.reshape(-1))),
        sin_r=row(jnp.sin(theta_r.reshape(-1))),
        ln_w_r=row(ln_w[:d]), ln_w_i=row(ln_w[d:]),
        ln_b_r=row(ln_b[:d]), ln_b_i=row(ln_b[d:]),
        w_out=jnp.asarray(w_out, matmul_dtype),   # full (2d, d) for fused epilogue
        b_out=row(b_out),
    )


# ----------------------------------------------------------------------------
# Tiling heuristics (generation-aware)
# ----------------------------------------------------------------------------
def _tpu_vmem_budgets():
    """Returns (physical_vmem, vmem_limit_bytes, tile_scratch_budget)."""
    try:
        phys = int(pltpu.get_tpu_info().vmem_capacity_bytes)
    except Exception:
        phys = 64 << 20                        # conservative (v7x-sized) default
    if phys <= (64 << 20):                     # v7x-class: leave compiler headroom
        return phys, 40 << 20, 14 << 20
    return phys, 96 << 20, 32 << 20            # v5e / v6e (128 MiB physical)


def _weight_bytes(weights, nbuf=2):
    # Conservatively assume double-buffered weight residency.
    return nbuf * sum(int(np.prod(w.shape)) * w.dtype.itemsize for w in weights)


def _pick_b_tile(n, b, d, *, scratch_budget, weight_bytes, vmem_limit, out_bytes=4):
    # Resident f32 bytes per unit of b_tile: 7 scratch planes + double-buffered
    # x block + double-buffered output block (all (n, b_tile, d)).
    per_bt = n * d * (7 * 4 + 2 * 4 + 2 * out_bytes)
    avail = scratch_budget - weight_bytes
    if b % 8 == 0:
        cap_vmem = max(8, (avail // max(per_bt, 1)) // 8 * 8) if avail > 0 else 8
        # vreg-pressure cap: keep b_tile*d <= ~16K f32 so the scan carry plus
        # per-step temporaries stay inside the 64-entry vreg file.
        cap_vreg = max(8, (16384 // max(d, 1)) // 8 * 8)
        cap = min(b, cap_vmem, cap_vreg)
        cands = [t for t in range(8, cap + 1, 8) if b % t == 0] or [8]
        # Prefer >=2 grid steps so both v7x TensorCores get work; the extra grid
        # step costs ~0.35us on single-TC parts (negligible).
        multi = [t for t in cands if t < b]
        tile = max(multi) if multi else max(cands)
    else:
        tile = b                               # odd batch: single block (correct)
    # Feasibility: whole-sequence residency + weights + chunk transients.
    need = tile * per_bt + weight_bytes + (6 << 20)
    if need > vmem_limit:
        # NOTE: a long-sequence variant (second "arbitrary" grid axis over n with
        # the (h_r, h_i) carry held in persistent scratch) would lift this limit.
        raise ValueError(
            "BiHgru1d Pallas kernel: whole-sequence VMEM footprint "
            f"(~{need >> 20} MiB at b_tile={tile}) exceeds the "
            f"{vmem_limit >> 20} MiB budget for this TPU generation; reduce "
            "n/d or split the sequence outside the kernel.")
    return tile


def _pick_n_chunk(n, bt, d, target_elems=64 * 1024):
    """Largest divisor of n whose chunk (rows*d) stays <= ~64K f32 elements."""
    want = max(1, min(n, target_elems // max(bt * d, 1)))
    best = 1
    for c in range(1, want + 1):
        if n % c == 0:
            best = c
    return best


def _const_spec(a):
    idx = lambda i: (0,) * a.ndim
    # Constant-index blocks gain nothing from double buffering; single-buffer
    # them to reclaim VMEM (large for the (d,4d) and (2d,d) weights).
    if hasattr(pl, "Buffered"):
        try:
            return pl.BlockSpec(a.shape, idx, pipeline_mode=pl.Buffered(1))
        except TypeError:
            pass
    return pl.BlockSpec(a.shape, idx)


# ----------------------------------------------------------------------------
# Wrapper
# ----------------------------------------------------------------------------
def bihgru1d_pallas(x, prepped, b_tile=None, out_dtype=jnp.float32):
    n, b, d = x.shape
    p = prepped
    weights = (p["w_fused"], p["b_fused"], p["w_lam"], p["b_lam"],
               p["cos_f"], p["sin_f"], p["cos_r"], p["sin_r"],
               p["ln_w_r"], p["ln_w_i"], p["ln_b_r"], p["ln_b_i"],
               p["w_out"], p["b_out"])

    phys, vmem_limit, scratch_budget = _tpu_vmem_budgets()
    out_bytes = np.dtype(out_dtype).itemsize
    wbytes = _weight_bytes(weights)
    if b_tile is None:
        b_tile = _pick_b_tile(n, b, d, scratch_budget=scratch_budget,
                              weight_bytes=wbytes, vmem_limit=vmem_limit,
                              out_bytes=out_bytes)
    assert b % b_tile == 0
    grid = (b // b_tile,)
    n_chunk = _pick_n_chunk(n, b_tile, d)

    in_specs = ([pl.BlockSpec((n, b_tile, d), lambda i: (0, i, 0))]
                + [_const_spec(a) for a in weights])
    out_spec = pl.BlockSpec((n, b_tile, d), lambda i: (0, i, 0))

    flops = (2 * n * b * d * (4 * d)        # fused projection
             + 2 * n * b * d * d            # lambda projection
             + 2 * n * b * (2 * d) * d      # output projection
             + 60 * n * b * d)              # scans / LayerNorm / elementwise
    bytes_accessed = n * b * d * (x.dtype.itemsize + out_bytes) + wbytes // 2
    cost = pl.CostEstimate(flops=int(flops),
                           transcendentals=int(6 * n * b * d),
                           bytes_accessed=int(bytes_accessed))

    kernel = functools.partial(bihgru_kernel, n_chunk=n_chunk)
    return pl.pallas_call(
        kernel,
        out_shape=jax.ShapeDtypeStruct((n, b, d), out_dtype),
        grid=grid,
        in_specs=in_specs,
        out_specs=out_spec,
        scratch_shapes=[pltpu.VMEM((n, b_tile, d), jnp.float32)] * 7,
        compiler_params=pltpu.CompilerParams(
            dimension_semantics=("parallel",),
            vmem_limit_bytes=int(vmem_limit)),
        cost_estimate=cost,
    )(x, *weights)


# ----------------------------------------------------------------------------
# Pure-JAX reference (transcription of the PyTorch forward, lower_bound=0)
# ----------------------------------------------------------------------------
def bihgru1d_reference(x, params):
    (w_in, b_in, w_lam, b_lam, theta_f, theta_r,
     w_gate, b_gate, w_out, b_out, ln_w, ln_b) = params
    n, b, d = x.shape
    silu = lambda v: v * jax.nn.sigmoid(v)

    input_state = silu(x @ w_in + b_in)                    # (n, b, 2d)
    gate = silu(x @ w_gate + b_gate)                       # (n, b, 2d)
    lam = jax.nn.sigmoid(x @ w_lam + b_lam)                # (n, b, d)
    input_state = input_state.reshape(n, b, d, 2)          # '(e k) -> e k'

    th_f = theta_f.reshape(1, 1, d)
    th_r = theta_r.reshape(1, 1, d)
    gr_f, gi_f = lam * jnp.cos(th_f), lam * jnp.sin(th_f)
    gr_r, gi_r = lam * jnp.cos(th_r), lam * jnp.sin(th_r)
    ur = (1.0 - lam) * input_state[..., 0]
    ui = (1.0 - lam) * input_state[..., 1]

    def step(carry, xs):
        hr, hi = carry
        gr, gi, r, i = xs
        nhr = gr * hr - gi * hi + r
        nhi = gi * hr + gr * hi + i
        return (nhr, nhi), (nhr, nhi)

    z = jnp.zeros((b, d), x.dtype)
    _, (hrf, hif) = lax.scan(step, (z, z), (gr_f, gi_f, ur, ui))
    _, (hrr, hir) = lax.scan(step, (z, z),
                             (gr_r[::-1], gi_r[::-1], ur[::-1], ui[::-1]))
    hr = hrf + hrr[::-1]
    hi = hif + hir[::-1]

    feat = jnp.concatenate([hr, hi], axis=-1)              # (n, b, 2d)
    mean = feat.mean(-1, keepdims=True)
    var = jnp.mean((feat - mean) ** 2, -1, keepdims=True)
    feat = (feat - mean) / jnp.sqrt(var + 1e-5) * ln_w + ln_b
    return (feat * gate) @ w_out + b_out


def init_params(key, d):
    ks = jax.random.split(key, 4)

    def lin(k, fan_in, fan_out):
        kw, kb = jax.random.split(k)
        bound = 1.0 / np.sqrt(fan_in)
        w = jax.random.uniform(kw, (fan_in, fan_out), jnp.float32, -bound, bound)
        bb = jax.random.uniform(kb, (fan_out,), jnp.float32, -bound, bound)
        return w, bb

    w_in, b_in = lin(ks[0], d, 2 * d)
    w_lam, b_lam = lin(ks[1], d, d)
    w_gate, b_gate = lin(ks[2], d, 2 * d)
    w_out, b_out = lin(ks[3], 2 * d, d)
    theta = 10000.0 ** (-2.0 / d * jnp.arange(d, dtype=jnp.float32))
    ln_w = jnp.ones((2 * d,), jnp.float32)   # nn.LayerNorm default init
    ln_b = jnp.zeros((2 * d,), jnp.float32)
    return (w_in, b_in, w_lam, b_lam, theta, theta,
            w_gate, b_gate, w_out, b_out, ln_w, ln_b)


if __name__ == "__main__":
    key = jax.random.PRNGKey(0)

    def run_case(n, b, d, matmul_dtype, out_dtype, tol, b_tile=None):
        kx, kp = jax.random.split(jax.random.fold_in(key, d))
        x = jax.random.normal(kx, (n, b, d), dtype=jnp.float32)
        params = init_params(kp, d)
        ref = bihgru1d_reference(x, params)
        prepped = prepare_params(params, matmul_dtype=matmul_dtype)
        out = jax.block_until_ready(
            bihgru1d_pallas(x, prepped, b_tile=b_tile, out_dtype=out_dtype))
        np.testing.assert_allclose(
            np.asarray(jnp.asarray(out, jnp.float32)), np.asarray(ref),
            rtol=tol, atol=tol)

    # Non-aligned d fallback (two-dot epilogue), explicit b_tile -> 2 grid steps.
    run_case(8, 16, 32, jnp.float32, jnp.float32, 2e-3, b_tile=8)
    # Lane-aligned d (fused K=2d epilogue dot), f32 MXU, auto tile.
    run_case(8, 16, 128, jnp.float32, jnp.float32, 1e-2)
    # Fast path: bf16 MXU matmuls (lambda stays f32) + bf16 output, auto tile.
    run_case(8, 16, 128, jnp.bfloat16, jnp.bfloat16, 5e-2)

    print("KERNEL_OK")
</pallas_src>

<mosaic_0001>
module attributes {stable_mosaic.version = 11 : i64} {
  func.func @bihgru_kernel(%arg0: i32, %arg1: memref<8x8x32xf32, #tpu.memory_space<vmem>>, %arg2: memref<32x128xf32, #tpu.memory_space<vmem>>, %arg3: memref<1x128xf32, #tpu.memory_space<vmem>>, %arg4: memref<32x32xf32, #tpu.memory_space<vmem>>, %arg5: memref<1x32xf32, #tpu.memory_space<vmem>>, %arg6: memref<1x32xf32, #tpu.memory_space<vmem>>, %arg7: memref<1x32xf32, #tpu.memory_space<vmem>>, %arg8: memref<1x32xf32, #tpu.memory_space<vmem>>, %arg9: memref<1x32xf32, #tpu.memory_space<vmem>>, %arg10: memref<1x32xf32, #tpu.memory_space<vmem>>, %arg11: memref<1x32xf32, #tpu.memory_space<vmem>>, %arg12: memref<1x32xf32, #tpu.memory_space<vmem>>, %arg13: memref<1x32xf32, #tpu.memory_space<vmem>>, %arg14: memref<64x32xf32, #tpu.memory_space<vmem>>, %arg15: memref<1x32xf32, #tpu.memory_space<vmem>>, %arg16: memref<8x8x32xf32, #tpu.memory_space<vmem>>, %arg17: memref<8x8x32xf32, #tpu.memory_space<vmem>>, %arg18: memref<8x8x32xf32, #tpu.memory_space<vmem>>, %arg19: memref<8x8x32xf32, #tpu.memory_space<vmem>>, %arg20: memref<8x8x32xf32, #tpu.memory_space<vmem>>, %arg21: memref<8x8x32xf32, #tpu.memory_space<vmem>>, %arg22: memref<8x8x32xf32, #tpu.memory_space<vmem>>, %arg23: memref<8x8x32xf32, #tpu.memory_space<vmem>>) attributes {dimension_semantics = [#tpu.dimension_semantics<parallel>], iteration_bounds = array<i64: 2>, scalar_prefetch = 0 : i64, scratch_operands = 7 : i64, tpu.core_type = #tpu.core_type<tc>, window_params = [{transform_indices = @transform_0, window_bounds = array<i64: 8, 8, 32>}, {pipeline_mode = #tpu.pipeline_mode<synchronous>, transform_indices = @transform_1, window_bounds = array<i64: 32, 128>}, {pipeline_mode = #tpu.pipeline_mode<synchronous>, transform_indices = @transform_2, window_bounds = array<i64: 1, 128>}, {pipeline_mode = #tpu.pipeline_mode<synchronous>, transform_indices = @transform_3, window_bounds = array<i64: 32, 32>}, {pipeline_mode = #tpu.pipeline_mode<synchronous>, transform_indices = @transform_4, window_bounds = array<i64: 1, 32>}, {pipeline_mode = #tpu.pipeline_mode<synchronous>, transform_indices = @transform_5, window_bounds = array<i64: 1, 32>}, {pipeline_mode = #tpu.pipeline_mode<synchronous>, transform_indices = @transform_6, window_bounds = array<i64: 1, 32>}, {pipeline_mode = #tpu.pipeline_mode<synchronous>, transform_indices = @transform_7, window_bounds = array<i64: 1, 32>}, {pipeline_mode = #tpu.pipeline_mode<synchronous>, transform_indices = @transform_8, window_bounds = array<i64: 1, 32>}, {pipeline_mode = #tpu.pipeline_mode<synchronous>, transform_indices = @transform_9, window_bounds = array<i64: 1, 32>}, {pipeline_mode = #tpu.pipeline_mode<synchronous>, transform_indices = @transform_10, window_bounds = array<i64: 1, 32>}, {pipeline_mode = #tpu.pipeline_mode<synchronous>, transform_indices = @transform_11, window_bounds = array<i64: 1, 32>}, {pipeline_mode = #tpu.pipeline_mode<synchronous>, transform_indices = @transform_12, window_bounds = array<i64: 1, 32>}, {pipeline_mode = #tpu.pipeline_mode<synchronous>, transform_indices = @transform_13, window_bounds = array<i64: 64, 32>}, {pipeline_mode = #tpu.pipeline_mode<synchronous>, transform_indices = @transform_14, window_bounds = array<i64: 1, 32>}, {transform_indices = @transform_15, window_bounds = array<i64: 8, 8, 32>}]} {
    %c0 = arith.constant 0 : index
    %c0_0 = arith.constant 0 : index
    %c0_1 = arith.constant 0 : index
    %0 = vector.load %arg1[%c0, %c0_0, %c0_1] : memref<8x8x32xf32, #tpu.memory_space<vmem>>, vector<8x8x32xf32>
    %1 = vector.shape_cast %0 : vector<8x8x32xf32> to vector<64x32xf32>
    %c0_2 = arith.constant 0 : index
    %c0_3 = arith.constant 0 : index
    %2 = vector.load %arg2[%c0_2, %c0_3] : memref<32x128xf32, #tpu.memory_space<vmem>>, vector<32x128xf32>
    %cst = arith.constant dense<0.000000e+00> : vector<64x128xf32>
    %3 = tpu.matmul %1, %2, %cst {dimension_numbers = #tpu.dot_dimension_numbers<[1], [0], [0], [1], [0, 0, 1, 1], [], []>} : vector<64x32xf32>, vector<32x128xf32>, vector<64x128xf32> -> vector<64x128xf32>
    %c0_4 = arith.constant 0 : index
    %c0_5 = arith.constant 0 : index
    %4 = vector.load %arg3[%c0_4, %c0_5] : memref<1x128xf32, #tpu.memory_space<vmem>>, vector<1x128xf32>
    %5 = vector.broadcast %4 : vector<1x128xf32> to vector<64x128xf32>
    %6 = arith.addf %3, %5 : vector<64x128xf32>
    %c0_6 = arith.constant 0 : index
    %c0_7 = arith.constant 0 : index
    %7 = vector.load %arg4[%c0_6, %c0_7] : memref<32x32xf32, #tpu.memory_space<vmem>>, vector<32x32xf32>
    %cst_8 = arith.constant dense<0.000000e+00> : vector<64x32xf32>
    %8 = tpu.matmul %1, %7, %cst_8 {dimension_numbers = #tpu.dot_dimension_numbers<[1], [0], [0], [1], [0, 0, 1, 1], [], []>} : vector<64x32xf32>, vector<32x32xf32>, vector<64x32xf32> -> vector<64x32xf32>
    %c0_9 = arith.constant 0 : index
    %c0_10 = arith.constant 0 : index
    %9 = vector.load %arg5[%c0_9, %c0_10] : memref<1x32xf32, #tpu.memory_space<vmem>>, vector<1x32xf32>
    %10 = vector.broadcast %9 : vector<1x32xf32> to vector<64x32xf32>
    %11 = arith.addf %8, %10 : vector<64x32xf32>
    %12 = arith.negf %11 : vector<64x32xf32>
    %13 = math.exp %12 : vector<64x32xf32>
    %cst_11 = arith.constant 1.000000e+00 : f32
    %14 = vector.broadcast %cst_11 : f32 to vector<64x32xf32>
    %15 = arith.addf %14, %13 : vector<64x32xf32>
    %16 = arith.divf %14, %15 : vector<64x32xf32>
    %17 = vector.extract_strided_slice %6 {offsets = [0, 0], sizes = [64, 32], strides = [1, 1]} : vector<64x128xf32> to vector<64x32xf32>
    %18 = arith.negf %17 : vector<64x32xf32>
    %19 = math.exp %18 : vector<64x32xf32>
    %cst_12 = arith.constant 1.000000e+00 : f32
    %20 = vector.broadcast %cst_12 : f32 to vector<64x32xf32>
    %21 = arith.addf %20, %19 : vector<64x32xf32>
    %22 = arith.divf %20, %21 : vector<64x32xf32>
    %23 = arith.mulf %17, %22 : vector<64x32xf32>
    %24 = vector.extract_strided_slice %6 {offsets = [0, 32], sizes = [64, 32], strides = [1, 1]} : vector<64x128xf32> to vector<64x32xf32>
    %25 = arith.negf %24 : vector<64x32xf32>
    %26 = math.exp %25 : vector<64x32xf32>
    %cst_13 = arith.constant 1.000000e+00 : f32
    %27 = vector.broadcast %cst_13 : f32 to vector<64x32xf32>
    %28 = arith.addf %27, %26 : vector<64x32xf32>
    %29 = arith.divf %27, %28 : vector<64x32xf32>
    %30 = arith.mulf %24, %29 : vector<64x32xf32>
    %31 = vector.shape_cast %16 : vector<64x32xf32> to vector<8x8x32xf32>
    %c0_14 = arith.constant 0 : index
    %c0_15 = arith.constant 0 : index
    %c0_16 = arith.constant 0 : index
    %32 = vector.load %arg17[%c0_14, %c0_15, %c0_16] : memref<8x8x32xf32, #tpu.memory_space<vmem>>, vector<8x8x32xf32>
    tpu.vector_store %arg17[%c0_14, %c0_15, %c0_16], %31 {strides = array<i32>} : memref<8x8x32xf32, #tpu.memory_space<vmem>>, vector<8x8x32xf32>,
    %cst_17 = arith.constant 1.000000e+00 : f32
    %33 = vector.broadcast %cst_17 : f32 to vector<64x32xf32>
    %34 = arith.subf %33, %16 : vector<64x32xf32>
    %35 = arith.mulf %34, %23 : vector<64x32xf32>
    %36 = vector.shape_cast %35 : vector<64x32xf32> to vector<8x8x32xf32>
    %c0_18 = arith.constant 0 : index
    %c0_19 = arith.constant 0 : index
    %c0_20 = arith.constant 0 : index
    %37 = vector.load %arg18[%c0_18, %c0_19, %c0_20] : memref<8x8x32xf32, #tpu.memory_space<vmem>>, vector<8x8x32xf32>
    tpu.vector_store %arg18[%c0_18, %c0_19, %c0_20], %36 {strides = array<i32>} : memref<8x8x32xf32, #tpu.memory_space<vmem>>, vector<8x8x32xf32>,
    %cst_21 = arith.constant 1.000000e+00 : f32
    %38 = vector.broadcast %cst_21 : f32 to vector<64x32xf32>
    %39 = arith.subf %38, %16 : vector<64x32xf32>
    %40 = arith.mulf %39, %30 : vector<64x32xf32>
    %41 = vector.shape_cast %40 : vector<64x32xf32> to vector<8x8x32xf32>
    %c0_22 = arith.constant 0 : index
    %c0_23 = arith.constant 0 : index
    %c0_24 = arith.constant 0 : index
    %42 = vector.load %arg19[%c0_22, %c0_23, %c0_24] : memref<8x8x32xf32, #tpu.memory_space<vmem>>, vector<8x8x32xf32>
    tpu.vector_store %arg19[%c0_22, %c0_23, %c0_24], %41 {strides = array<i32>} : memref<8x8x32xf32, #tpu.memory_space<vmem>>, vector<8x8x32xf32>,
    %43 = vector.extract_strided_slice %6 {offsets = [0, 64], sizes = [64, 32], strides = [1, 1]} : vector<64x128xf32> to vector<64x32xf32>
    %44 = arith.negf %43 : vector<64x32xf32>
    %45 = math.exp %44 : vector<64x32xf32>
    %cst_25 = arith.constant 1.000000e+00 : f32
    %46 = vector.broadcast %cst_25 : f32 to vector<64x32xf32>
    %47 = arith.addf %46, %45 : vector<64x32xf32>
    %48 = arith.divf %46, %47 : vector<64x32xf32>
    %49 = arith.mulf %43, %48 : vector<64x32xf32>
    %50 = vector.shape_cast %49 : vector<64x32xf32> to vector<8x8x32xf32>
    %c0_26 = arith.constant 0 : index
    %c0_27 = arith.constant 0 : index
    %c0_28 = arith.constant 0 : index
    %51 = vector.load %arg22[%c0_26, %c0_27, %c0_28] : memref<8x8x32xf32, #tpu.memory_space<vmem>>, vector<8x8x32xf32>
    tpu.vector_store %arg22[%c0_26, %c0_27, %c0_28], %50 {strides = array<i32>} : memref<8x8x32xf32, #tpu.memory_space<vmem>>, vector<8x8x32xf32>,
    %52 = vector.extract_strided_slice %6 {offsets = [0, 96], sizes = [64, 32], strides = [1, 1]} : vector<64x128xf32> to vector<64x32xf32>
    %53 = arith.negf %52 : vector<64x32xf32>
    %54 = math.exp %53 : vector<64x32xf32>
    %cst_29 = arith.constant 1.000000e+00 : f32
    %55 = vector.broadcast %cst_29 : f32 to vector<64x32xf32>
    %56 = arith.addf %55, %54 : vector<64x32xf32>
    %57 = arith.divf %55, %56 : vector<64x32xf32>
    %58 = arith.mulf %52, %57 : vector<64x32xf32>
    %59 = vector.shape_cast %58 : vector<64x32xf32> to vector<8x8x32xf32>
    %c0_30 = arith.constant 0 : index
    %c0_31 = arith.constant 0 : index
    %c0_32 = arith.constant 0 : index
    %60 = vector.load %arg23[%c0_30, %c0_31, %c0_32] : memref<8x8x32xf32, #tpu.memory_space<vmem>>, vector<8x8x32xf32>
    tpu.vector_store %arg23[%c0_30, %c0_31, %c0_32], %59 {strides = array<i32>} : memref<8x8x32xf32, #tpu.memory_space<vmem>>, vector<8x8x32xf32>,
    %c0_33 = arith.constant 0 : index
    %c0_34 = arith.constant 0 : index
    %61 = vector.load %arg6[%c0_33, %c0_34] : memref<1x32xf32, #tpu.memory_space<vmem>>, vector<1x32xf32>
    %62 = vector.shape_cast %61 : vector<1x32xf32> to vector<1x32xf32>
    %63 = vector.broadcast %62 : vector<1x32xf32> to vector<8x32xf32>
    %c0_35 = arith.constant 0 : index
    %c0_36 = arith.constant 0 : index
    %64 = vector.load %arg7[%c0_35, %c0_36] : memref<1x32xf32, #tpu.memory_space<vmem>>, vector<1x32xf32>
    %65 = vector.shape_cast %64 : vector<1x32xf32> to vector<1x32xf32>
    %66 = vector.broadcast %65 : vector<1x32xf32> to vector<8x32xf32>
    %c0_37 = arith.constant 0 : index
    %c0_38 = arith.constant 0 : index
    %67 = vector.load %arg8[%c0_37, %c0_38] : memref<1x32xf32, #tpu.memory_space<vmem>>, vector<1x32xf32>
    %68 = vector.shape_cast %67 : vector<1x32xf32> to vector<1x32xf32>
    %69 = vector.broadcast %68 : vector<1x32xf32> to vector<8x32xf32>
    %c0_39 = arith.constant 0 : index
    %c0_40 = arith.constant 0 : index
    %70 = vector.load %arg9[%c0_39, %c0_40] : memref<1x32xf32, #tpu.memory_space<vmem>>, vector<1x32xf32>
    %71 = vector.shape_cast %70 : vector<1x32xf32> to vector<1x32xf32>
    %72 = vector.broadcast %71 : vector<1x32xf32> to vector<8x32xf32>
    %cst_41 = arith.constant 0.000000e+00 : f32
    %73 = vector.broadcast %cst_41 : f32 to vector<8x32xf32>
    %c0_i32 = arith.constant 0 : i32
    %74 = arith.index_cast %c0_i32 : i32 to index
    %c0_42 = arith.constant 0 : index
    %c0_43 = arith.constant 0 : index
    %75 = vector.load %arg17[%74, %c0_42, %c0_43] : memref<8x8x32xf32, #tpu.memory_space<vmem>>, vector<1x8x32xf32>
    %76 = vector.shape_cast %75 : vector<1x8x32xf32> to vector<8x32xf32>
    %77 = arith.index_cast %c0_i32 : i32 to index
    %c0_44 = arith.constant 0 : index
    %c0_45 = arith.constant 0 : index
    %78 = vector.load %arg18[%77, %c0_44, %c0_45] : memref<8x8x32xf32, #tpu.memory_space<vmem>>, vector<1x8x32xf32>
    %79 = vector.shape_cast %78 : vector<1x8x32xf32> to vector<8x32xf32>
    %80 = arith.index_cast %c0_i32 : i32 to index
    %c0_46 = arith.constant 0 : index
    %c0_47 = arith.constant 0 : index
    %81 = vector.load %arg19[%80, %c0_46, %c0_47] : memref<8x8x32xf32, #tpu.memory_space<vmem>>, vector<1x8x32xf32>
    %82 = vector.shape_cast %81 : vector<1x8x32xf32> to vector<8x32xf32>
    %83 = arith.mulf %76, %63 : vector<8x32xf32>
    %84 = arith.mulf %76, %66 : vector<8x32xf32>
    %85 = arith.mulf %83, %73 : vector<8x32xf32>
    %86 = arith.mulf %84, %73 : vector<8x32xf32>
    %87 = arith.subf %85, %86 : vector<8x32xf32>
    %88 = arith.addf %87, %79 : vector<8x32xf32>
    %89 = arith.mulf %84, %73 : vector<8x32xf32>
    %90 = arith.mulf %83, %73 : vector<8x32xf32>
    %91 = arith.addf %89, %90 : vector<8x32xf32>
    %92 = arith.addf %91, %82 : vector<8x32xf32>
    %93 = arith.index_cast %c0_i32 : i32 to index
    %c0_48 = arith.constant 0 : index
    %c0_49 = arith.constant 0 : index
    %94 = vector.load %arg20[%93, %c0_48, %c0_49] : memref<8x8x32xf32, #tpu.memory_space<vmem>>, vector<1x8x32xf32>
    %95 = vector.shape_cast %94 : vector<1x8x32xf32> to vector<8x32xf32>
    %96 = vector.shape_cast %88 : vector<8x32xf32> to vector<1x8x32xf32>
    tpu.vector_store %arg20[%93, %c0_48, %c0_49], %96 {strides = array<i32>} : memref<8x8x32xf32, #tpu.memory_space<vmem>>, vector<1x8x32xf32>,
    %97 = arith.index_cast %c0_i32 : i32 to index
    %c0_50 = arith.constant 0 : index
    %c0_51 = arith.constant 0 : index
    %98 = vector.load %arg21[%97, %c0_50, %c0_51] : memref<8x8x32xf32, #tpu.memory_space<vmem>>, vector<1x8x32xf32>
    %99 = vector.shape_cast %98 : vector<1x8x32xf32> to vector<8x32xf32>
    %100 = vector.shape_cast %92 : vector<8x32xf32> to vector<1x8x32xf32>
    tpu.vector_store %arg21[%97, %c0_50, %c0_51], %100 {strides = array<i32>} : memref<8x8x32xf32, #tpu.memory_space<vmem>>, vector<1x8x32xf32>,
    %c1_i32 = arith.constant 1 : i32
    %101 = arith.index_cast %c1_i32 : i32 to index
    %c0_52 = arith.constant 0 : index
    %c0_53 = arith.constant 0 : index
    %102 = vector.load %arg17[%101, %c0_52, %c0_53] : memref<8x8x32xf32, #tpu.memory_space<vmem>>, vector<1x8x32xf32>
    %103 = vector.shape_cast %102 : vector<1x8x32xf32> to vector<8x32xf32>
    %104 = arith.index_cast %c1_i32 : i32 to index
    %c0_54 = arith.constant 0 : index
    %c0_55 = arith.constant 0 : index
    %105 = vector.load %arg18[%104, %c0_54, %c0_55] : memref<8x8x32xf32, #tpu.memory_space<vmem>>, vector<1x8x32xf32>
    %106 = vector.shape_cast %105 : vector<1x8x32xf32> to vector<8x32xf32>
    %107 = arith.index_cast %c1_i32 : i32 to index
    %c0_56 = arith.constant 0 : index
    %c0_57 = arith.constant 0 : index
    %108 = vector.load %arg19[%107, %c0_56, %c0_57] : memref<8x8x32xf32, #tpu.memory_space<vmem>>, vector<1x8x32xf32>
    %109 = vector.shape_cast %108 : vector<1x8x32xf32> to vector<8x32xf32>
    %110 = arith.mulf %103, %63 : vector<8x32xf32>
    %111 = arith.mulf %103, %66 : vector<8x32xf32>
    %112 = arith.mulf %110, %88 : vector<8x32xf32>
    %113 = arith.mulf %111, %92 : vector<8x32xf32>
    %114 = arith.subf %112, %113 : vector<8x32xf32>
    %115 = arith.addf %114, %106 : vector<8x32xf32>
    %116 = arith.mulf %111, %88 : vector<8x32xf32>
    %117 = arith.mulf %110, %92 : vector<8x32xf32>
    %118 = arith.addf %116, %117 : vector<8x32xf32>
    %119 = arith.addf %118, %109 : vector<8x32xf32>
    %120 = arith.index_cast %c1_i32 : i32 to index
    %c0_58 = arith.constant 0 : index
    %c0_59 = arith.constant 0 : index
    %121 = vector.load %arg20[%120, %c0_58, %c0_59] : memref<8x8x32xf32, #tpu.memory_space<vmem>>, vector<1x8x32xf32>
    %122 = vector.shape_cast %121 : vector<1x8x32xf32> to vector<8x32xf32>
    %123 = vector.shape_cast %115 : vector<8x32xf32> to vector<1x8x32xf32>
    tpu.vector_store %arg20[%120, %c0_58, %c0_59], %123 {strides = array<i32>} : memref<8x8x32xf32, #tpu.memory_space<vmem>>, vector<1x8x32xf32>,
    %124 = arith.index_cast %c1_i32 : i32 to index
    %c0_60 = arith.constant 0 : index
    %c0_61 = arith.constant 0 : index
    %125 = vector.load %arg21[%124, %c0_60, %c0_61] : memref<8x8x32xf32, #tpu.memory_space<vmem>>, vector<1x8x32xf32>
    %126 = vector.shape_cast %125 : vector<1x8x32xf32> to vector<8x32xf32>
    %127 = vector.shape_cast %119 : vector<8x32xf32> to vector<1x8x32xf32>
    tpu.vector_store %arg21[%124, %c0_60, %c0_61], %127 {strides = array<i32>} : memref<8x8x32xf32, #tpu.memory_space<vmem>>, vector<1x8x32xf32>,
    %c2_i32 = arith.constant 2 : i32
    %128 = arith.index_cast %c2_i32 : i32 to index
    %c0_62 = arith.constant 0 : index
    %c0_63 = arith.constant 0 : index
    %129 = vector.load %arg17[%128, %c0_62, %c0_63] : memref<8x8x32xf32, #tpu.memory_space<vmem>>, vector<1x8x32xf32>
    %130 = vector.shape_cast %129 : vector<1x8x32xf32> to vector<8x32xf32>
    %131 = arith.index_cast %c2_i32 : i32 to index
    %c0_64 = arith.constant 0 : index
    %c0_65 = arith.constant 0 : index
    %132 = vector.load %arg18[%131, %c0_64, %c0_65] : memref<8x8x32xf32, #tpu.memory_space<vmem>>, vector<1x8x32xf32>
    %133 = vector.shape_cast %132 : vector<1x8x32xf32> to vector<8x32xf32>
    %134 = arith.index_cast %c2_i32 : i32 to index
    %c0_66 = arith.constant 0 : index
    %c0_67 = arith.constant 0 : index
    %135 = vector.load %arg19[%134, %c0_66, %c0_67] : memref<8x8x32xf32, #tpu.memory_space<vmem>>, vector<1x8x32xf32>
    %136 = vector.shape_cast %135 : vector<1x8x32xf32> to vector<8x32xf32>
    %137 = arith.mulf %130, %63 : vector<8x32xf32>
    %138 = arith.mulf %130, %66 : vector<8x32xf32>
    %139 = arith.mulf %137, %115 : vector<8x32xf32>
    %140 = arith.mulf %138, %119 : vector<8x32xf32>
    %141 = arith.subf %139, %140 : vector<8x32xf32>
    %142 = arith.addf %141, %133 : vector<8x32xf32>
    %143 = arith.mulf %138, %115 : vector<8x32xf32>
    %144 = arith.mulf %137, %119 : vector<8x32xf32>
    %145 = arith.addf %143, %144 : vector<8x32xf32>
    %146 = arith.addf %145, %136 : vector<8x32xf32>
    %147 = arith.index_cast %c2_i32 : i32 to index
    %c0_68 = arith.constant 0 : index
    %c0_69 = arith.constant 0 : index
    %148 = vector.load %arg20[%147, %c0_68, %c0_69] : memref<8x8x32xf32, #tpu.memory_space<vmem>>, vector<1x8x32xf32>
    %149 = vector.shape_cast %148 : vector<1x8x32xf32> to vector<8x32xf32>
    %150 = vector.shape_cast %142 : vector<8x32xf32> to vector<1x8x32xf32>
    tpu.vector_store %arg20[%147, %c0_68, %c0_69], %150 {strides = array<i32>} : memref<8x8x32xf32, #tpu.memory_space<vmem>>, vector<1x8x32xf32>,
    %151 = arith.index_cast %c2_i32 : i32 to index
    %c0_70 = arith.constant 0 : index
    %c0_71 = arith.constant 0 : index
    %152 = vector.load %arg21[%151, %c0_70, %c0_71] : memref<8x8x32xf32, #tpu.memory_space<vmem>>, vector<1x8x32xf32>
    %153 = vector.shape_cast %152 : vector<1x8x32xf32> to vector<8x32xf32>
    %154 = vector.shape_cast %146 : vector<8x32xf32> to vector<1x8x32xf32>
    tpu.vector_store %arg21[%151, %c0_70, %c0_71], %154 {strides = array<i32>} : memref<8x8x32xf32, #tpu.memory_space<vmem>>, vector<1x8x32xf32>,
    %c3_i32 = arith.constant 3 : i32
    %155 = arith.index_cast %c3_i32 : i32 to index
    %c0_72 = arith.constant 0 : index
    %c0_73 = arith.constant 0 : index
    %156 = vector.load %arg17[%155, %c0_72, %c0_73] : memref<8x8x32xf32, #tpu.memory_space<vmem>>, vector<1x8x32xf32>
    %157 = vector.shape_cast %156 : vector<1x8x32xf32> to vector<8x32xf32>
    %158 = arith.index_cast %c3_i32 : i32 to index
    %c0_74 = arith.constant 0 : index
    %c0_75 = arith.constant 0 : index
    %159 = vector.load %arg18[%158, %c0_74, %c0_75] : memref<8x8x32xf32, #tpu.memory_space<vmem>>, vector<1x8x32xf32>
    %160 = vector.shape_cast %159 : vector<1x8x32xf32> to vector<8x32xf32>
    %161 = arith.index_cast %c3_i32 : i32 to index
    %c0_76 = arith.constant 0 : index
    %c0_77 = arith.constant 0 : index
    %162 = vector.load %arg19[%161, %c0_76, %c0_77] : memref<8x8x32xf32, #tpu.memory_space<vmem>>, vector<1x8x32xf32>
    %163 = vector.shape_cast %162 : vector<1x8x32xf32> to vector<8x32xf32>
    %164 = arith.mulf %157, %63 : vector<8x32xf32>
    %165 = arith.mulf %157, %66 : vector<8x32xf32>
    %166 = arith.mulf %164, %142 : vector<8x32xf32>
    %167 = arith.mulf %165, %146 : vector<8x32xf32>
    %168 = arith.subf %166, %167 : vector<8x32xf32>
    %169 = arith.addf %168, %160 : vector<8x32xf32>
    %170 = arith.mulf %165, %142 : vector<8x32xf32>
    %171 = arith.mulf %164, %146 : vector<8x32xf32>
    %172 = arith.addf %170, %171 : vector<8x32xf32>
    %173 = arith.addf %172, %163 : vector<8x32xf32>
    %174 = arith.index_cast %c3_i32 : i32 to index
    %c0_78 = arith.constant 0 : index
    %c0_79 = arith.constant 0 : index
    %175 = vector.load %arg20[%174, %c0_78, %c0_79] : memref<8x8x32xf32, #tpu.memory_space<vmem>>, vector<1x8x32xf32>
    %176 = vector.shape_cast %175 : vector<1x8x32xf32> to vector<8x32xf32>
    %177 = vector.shape_cast %169 : vector<8x32xf32> to vector<1x8x32xf32>
    tpu.vector_store %arg20[%174, %c0_78, %c0_79], %177 {strides = array<i32>} : memref<8x8x32xf32, #tpu.memory_space<vmem>>, vector<1x8x32xf32>,
    %178 = arith.index_cast %c3_i32 : i32 to index
    %c0_80 = arith.constant 0 : index
    %c0_81 = arith.constant 0 : index
    %179 = vector.load %arg21[%178, %c0_80, %c0_81] : memref<8x8x32xf32, #tpu.memory_space<vmem>>, vector<1x8x32xf32>
    %180 = vector.shape_cast %179 : vector<1x8x32xf32> to vector<8x32xf32>
    %181 = vector.shape_cast %173 : vector<8x32xf32> to vector<1x8x32xf32>
    tpu.vector_store %arg21[%178, %c0_80, %c0_81], %181 {strides = array<i32>} : memref<8x8x32xf32, #tpu.memory_space<vmem>>, vector<1x8x32xf32>,
    %c4_i32 = arith.constant 4 : i32
    %182 = arith.index_cast %c4_i32 : i32 to index
    %c0_82 = arith.constant 0 : index
    %c0_83 = arith.constant 0 : index
    %183 = vector.load %arg17[%182, %c0_82, %c0_83] : memref<8x8x32xf32, #tpu.memory_space<vmem>>, vector<1x8x32xf32>
    %184 = vector.shape_cast %183 : vector<1x8x32xf32> to vector<8x32xf32>
    %185 = arith.index_cast %c4_i32 : i32 to index
    %c0_84 = arith.constant 0 : index
    %c0_85 = arith.constant 0 : index
    %186 = vector.load %arg18[%185, %c0_84, %c0_85] : memref<8x8x32xf32, #tpu.memory_space<vmem>>, vector<1x8x32xf32>
    %187 = vector.shape_cast %186 : vector<1x8x32xf32> to vector<8x32xf32>
    %188 = arith.index_cast %c4_i32 : i32 to index
    %c0_86 = arith.constant 0 : index
    %c0_87 = arith.constant 0 : index
    %189 = vector.load %arg19[%188, %c0_86, %c0_87] : memref<8x8x32xf32, #tpu.memory_space<vmem>>, vector<1x8x32xf32>
    %190 = vector.shape_cast %189 : vector<1x8x32xf32> to vector<8x32xf32>
    %191 = arith.mulf %184, %63 : vector<8x32xf32>
    %192 = arith.mulf %184, %66 : vector<8x32xf32>
    %193 = arith.mulf %191, %169 : vector<8x32xf32>
    %194 = arith.mulf %192, %173 : vector<8x32xf32>
    %195 = arith.subf %193, %194 : vector<8x32xf32>
    %196 = arith.addf %195, %187 : vector<8x32xf32>
    %197 = arith.mulf %192, %169 : vector<8x32xf32>
    %198 = arith.mulf %191, %173 : vector<8x32xf32>
    %199 = arith.addf %197, %198 : vector<8x32xf32>
    %200 = arith.addf %199, %190 : vector<8x32xf32>
    %201 = arith.index_cast %c4_i32 : i32 to index
    %c0_88 = arith.constant 0 : index
    %c0_89 = arith.constant 0 : index
    %202 = vector.load %arg20[%201, %c0_88, %c0_89] : memref<8x8x32xf32, #tpu.memory_space<vmem>>, vector<1x8x32xf32>
    %203 = vector.shape_cast %202 : vector<1x8x32xf32> to vector<8x32xf32>
    %204 = vector.shape_cast %196 : vector<8x32xf32> to vector<1x8x32xf32>
    tpu.vector_store %arg20[%201, %c0_88, %c0_89], %204 {strides = array<i32>} : memref<8x8x32xf32, #tpu.memory_space<vmem>>, vector<1x8x32xf32>,
    %205 = arith.index_cast %c4_i32 : i32 to index
    %c0_90 = arith.constant 0 : index
    %c0_91 = arith.constant 0 : index
    %206 = vector.load %arg21[%205, %c0_90, %c0_91] : memref<8x8x32xf32, #tpu.memory_space<vmem>>, vector<1x8x32xf32>
    %207 = vector.shape_cast %206 : vector<1x8x32xf32> to vector<8x32xf32>
    %208 = vector.shape_cast %200 : vector<8x32xf32> to vector<1x8x32xf32>
    tpu.vector_store %arg21[%205, %c0_90, %c0_91], %208 {strides = array<i32>} : memref<8x8x32xf32, #tpu.memory_space<vmem>>, vector<1x8x32xf32>,
    %c5_i32 = arith.constant 5 : i32
    %209 = arith.index_cast %c5_i32 : i32 to index
    %c0_92 = arith.constant 0 : index
    %c0_93 = arith.constant 0 : index
    %210 = vector.load %arg17[%209, %c0_92, %c0_93] : memref<8x8x32xf32, #tpu.memory_space<vmem>>, vector<1x8x32xf32>
    %211 = vector.shape_cast %210 : vector<1x8x32xf32> to vector<8x32xf32>
    %212 = arith.index_cast %c5_i32 : i32 to index
    %c0_94 = arith.constant 0 : index
    %c0_95 = arith.constant 0 : index
    %213 = vector.load %arg18[%212, %c0_94, %c0_95] : memref<8x8x32xf32, #tpu.memory_space<vmem>>, vector<1x8x32xf32>
    %214 = vector.shape_cast %213 : vector<1x8x32xf32> to vector<8x32xf32>
    %215 = arith.index_cast %c5_i32 : i32 to index
    %c0_96 = arith.constant 0 : index
    %c0_97 = arith.constant 0 : index
    %216 = vector.load %arg19[%215, %c0_96, %c0_97] : memref<8x8x32xf32, #tpu.memory_space<vmem>>, vector<1x8x32xf32>
    %217 = vector.shape_cast %216 : vector<1x8x32xf32> to vector<8x32xf32>
    %218 = arith.mulf %211, %63 : vector<8x32xf32>
    %219 = arith.mulf %211, %66 : vector<8x32xf32>
    %220 = arith.mulf %218, %196 : vector<8x32xf32>
    %221 = arith.mulf %219, %200 : vector<8x32xf32>
    %222 = arith.subf %220, %221 : vector<8x32xf32>
    %223 = arith.addf %222, %214 : vector<8x32xf32>
    %224 = arith.mulf %219, %196 : vector<8x32xf32>
    %225 = arith.mulf %218, %200 : vector<8x32xf32>
    %226 = arith.addf %224, %225 : vector<8x32xf32>
    %227 = arith.addf %226, %217 : vector<8x32xf32>
    %228 = arith.index_cast %c5_i32 : i32 to index
    %c0_98 = arith.constant 0 : index
    %c0_99 = arith.constant 0 : index
    %229 = vector.load %arg20[%228, %c0_98, %c0_99] : memref<8x8x32xf32, #tpu.memory_space<vmem>>, vector<1x8x32xf32>
    %230 = vector.shape_cast %229 : vector<1x8x32xf32> to vector<8x32xf32>
    %231 = vector.shape_cast %223 : vector<8x32xf32> to vector<1x8x32xf32>
    tpu.vector_store %arg20[%228, %c0_98, %c0_99], %231 {strides = array<i32>} : memref<8x8x32xf32, #tpu.memory_space<vmem>>, vector<1x8x32xf32>,
    %232 = arith.index_cast %c5_i32 : i32 to index
    %c0_100 = arith.constant 0 : index
    %c0_101 = arith.constant 0 : index
    %233 = vector.load %arg21[%232, %c0_100, %c0_101] : memref<8x8x32xf32, #tpu.memory_space<vmem>>, vector<1x8x32xf32>
    %234 = vector.shape_cast %233 : vector<1x8x32xf32> to vector<8x32xf32>
    %235 = vector.shape_cast %227 : vector<8x32xf32> to vector<1x8x32xf32>
    tpu.vector_store %arg21[%232, %c0_100, %c0_101], %235 {strides = array<i32>} : memref<8x8x32xf32, #tpu.memory_space<vmem>>, vector<1x8x32xf32>,
    %c6_i32 = arith.constant 6 : i32
    %236 = arith.index_cast %c6_i32 : i32 to index
    %c0_102 = arith.constant 0 : index
    %c0_103 = arith.constant 0 : index
    %237 = vector.load %arg17[%236, %c0_102, %c0_103] : memref<8x8x32xf32, #tpu.memory_space<vmem>>, vector<1x8x32xf32>
    %238 = vector.shape_cast %237 : vector<1x8x32xf32> to vector<8x32xf32>
    %239 = arith.index_cast %c6_i32 : i32 to index
    %c0_104 = arith.constant 0 : index
    %c0_105 = arith.constant 0 : index
    %240 = vector.load %arg18[%239, %c0_104, %c0_105] : memref<8x8x32xf32, #tpu.memory_space<vmem>>, vector<1x8x32xf32>
    %241 = vector.shape_cast %240 : vector<1x8x32xf32> to vector<8x32xf32>
    %242 = arith.index_cast %c6_i32 : i32 to index
    %c0_106 = arith.constant 0 : index
    %c0_107 = arith.constant 0 : index
    %243 = vector.load %arg19[%242, %c0_106, %c0_107] : memref<8x8x32xf32, #tpu.memory_space<vmem>>, vector<1x8x32xf32>
    %244 = vector.shape_cast %243 : vector<1x8x32xf32> to vector<8x32xf32>
    %245 = arith.mulf %238, %63 : vector<8x32xf32>
    %246 = arith.mulf %238, %66 : vector<8x32xf32>
    %247 = arith.mulf %245, %223 : vector<8x32xf32>
    %248 = arith.mulf %246, %227 : vector<8x32xf32>
    %249 = arith.subf %247, %248 : vector<8x32xf32>
    %250 = arith.addf %249, %241 : vector<8x32xf32>
    %251 = arith.mulf %246, %223 : vector<8x32xf32>
    %252 = arith.mulf %245, %227 : vector<8x32xf32>
    %253 = arith.addf %251, %252 : vector<8x32xf32>
    %254 = arith.addf %253, %244 : vector<8x32xf32>
    %255 = arith.index_cast %c6_i32 : i32 to index
    %c0_108 = arith.constant 0 : index
    %c0_109 = arith.constant 0 : index
    %256 = vector.load %arg20[%255, %c0_108, %c0_109] : memref<8x8x32xf32, #tpu.memory_space<vmem>>, vector<1x8x32xf32>
    %257 = vector.shape_cast %256 : vector<1x8x32xf32> to vector<8x32xf32>
    %258 = vector.shape_cast %250 : vector<8x32xf32> to vector<1x8x32xf32>
    tpu.vector_store %arg20[%255, %c0_108, %c0_109], %258 {strides = array<i32>} : memref<8x8x32xf32, #tpu.memory_space<vmem>>, vector<1x8x32xf32>,
    %259 = arith.index_cast %c6_i32 : i32 to index
    %c0_110 = arith.constant 0 : index
    %c0_111 = arith.constant 0 : index
    %260 = vector.load %arg21[%259, %c0_110, %c0_111] : memref<8x8x32xf32, #tpu.memory_space<vmem>>, vector<1x8x32xf32>
    %261 = vector.shape_cast %260 : vector<1x8x32xf32> to vector<8x32xf32>
    %262 = vector.shape_cast %254 : vector<8x32xf32> to vector<1x8x32xf32>
    tpu.vector_store %arg21[%259, %c0_110, %c0_111], %262 {strides = array<i32>} : memref<8x8x32xf32, #tpu.memory_space<vmem>>, vector<1x8x32xf32>,
    %c7_i32 = arith.constant 7 : i32
    %263 = arith.index_cast %c7_i32 : i32 to index
    %c0_112 = arith.constant 0 : index
    %c0_113 = arith.constant 0 : index
    %264 = vector.load %arg17[%263, %c0_112, %c0_113] : memref<8x8x32xf32, #tpu.memory_space<vmem>>, vector<1x8x32xf32>
    %265 = vector.shape_cast %264 : vector<1x8x32xf32> to vector<8x32xf32>
    %266 = arith.index_cast %c7_i32 : i32 to index
    %c0_114 = arith.constant 0 : index
    %c0_115 = arith.constant 0 : index
    %267 = vector.load %arg18[%266, %c0_114, %c0_115] : memref<8x8x32xf32, #tpu.memory_space<vmem>>, vector<1x8x32xf32>
    %268 = vector.shape_cast %267 : vector<1x8x32xf32> to vector<8x32xf32>
    %269 = arith.index_cast %c7_i32 : i32 to index
    %c0_116 = arith.constant 0 : index
    %c0_117 = arith.constant 0 : index
    %270 = vector.load %arg19[%269, %c0_116, %c0_117] : memref<8x8x32xf32, #tpu.memory_space<vmem>>, vector<1x8x32xf32>
    %271 = vector.shape_cast %270 : vector<1x8x32xf32> to vector<8x32xf32>
    %272 = arith.mulf %265, %63 : vector<8x32xf32>
    %273 = arith.mulf %265, %66 : vector<8x32xf32>
    %274 = arith.mulf %272, %250 : vector<8x32xf32>
    %275 = arith.mulf %273, %254 : vector<8x32xf32>
    %276 = arith.subf %274, %275 : vector<8x32xf32>
    %277 = arith.addf %276, %268 : vector<8x32xf32>
    %278 = arith.mulf %273, %250 : vector<8x32xf32>
    %279 = arith.mulf %272, %254 : vector<8x32xf32>
    %280 = arith.addf %278, %279 : vector<8x32xf32>
    %281 = arith.addf %280, %271 : vector<8x32xf32>
    %282 = arith.index_cast %c7_i32 : i32 to index
    %c0_118 = arith.constant 0 : index
    %c0_119 = arith.constant 0 : index
    %283 = vector.load %arg20[%282, %c0_118, %c0_119] : memref<8x8x32xf32, #tpu.memory_space<vmem>>, vector<1x8x32xf32>
    %284 = vector.shape_cast %283 : vector<1x8x32xf32> to vector<8x32xf32>
    %285 = vector.shape_cast %277 : vector<8x32xf32> to vector<1x8x32xf32>
    tpu.vector_store %arg20[%282, %c0_118, %c0_119], %285 {strides = array<i32>} : memref<8x8x32xf32, #tpu.memory_space<vmem>>, vector<1x8x32xf32>,
    %286 = arith.index_cast %c7_i32 : i32 to index
    %c0_120 = arith.constant 0 : index
    %c0_121 = arith.constant 0 : index
    %287 = vector.load %arg21[%286, %c0_120, %c0_121] : memref<8x8x32xf32, #tpu.memory_space<vmem>>, vector<1x8x32xf32>
    %288 = vector.shape_cast %287 : vector<1x8x32xf32> to vector<8x32xf32>
    %289 = vector.shape_cast %281 : vector<8x32xf32> to vector<1x8x32xf32>
    tpu.vector_store %arg21[%286, %c0_120, %c0_121], %289 {strides = array<i32>} : memref<8x8x32xf32, #tpu.memory_space<vmem>>, vector<1x8x32xf32>,
    %c8_i32 = arith.constant 8 : i32
    %c0_i32_122 = arith.constant 0 : i32
    %c7_i32_123 = arith.constant 7 : i32
    %290 = arith.subi %c7_i32_123, %c0_i32_122 : i32
    %291 = arith.index_cast %290 : i32 to index
    %c0_124 = arith.constant 0 : index
    %c0_125 = arith.constant 0 : index
    %292 = vector.load %arg17[%291, %c0_124, %c0_125] : memref<8x8x32xf32, #tpu.memory_space<vmem>>, vector<1x8x32xf32>
    %293 = vector.shape_cast %292 : vector<1x8x32xf32> to vector<8x32xf32>
    %294 = arith.index_cast %290 : i32 to index
    %c0_126 = arith.constant 0 : index
    %c0_127 = arith.constant 0 : index
    %295 = vector.load %arg18[%294, %c0_126, %c0_127] : memref<8x8x32xf32, #tpu.memory_space<vmem>>, vector<1x8x32xf32>
    %296 = vector.shape_cast %295 : vector<1x8x32xf32> to vector<8x32xf32>
    %297 = arith.index_cast %290 : i32 to index
    %c0_128 = arith.constant 0 : index
    %c0_129 = arith.constant 0 : index
    %298 = vector.load %arg19[%297, %c0_128, %c0_129] : memref<8x8x32xf32, #tpu.memory_space<vmem>>, vector<1x8x32xf32>
    %299 = vector.shape_cast %298 : vector<1x8x32xf32> to vector<8x32xf32>
    %300 = arith.mulf %293, %69 : vector<8x32xf32>
    %301 = arith.mulf %293, %72 : vector<8x32xf32>
    %302 = arith.mulf %300, %73 : vector<8x32xf32>
    %303 = arith.mulf %301, %73 : vector<8x32xf32>
    %304 = arith.subf %302, %303 : vector<8x32xf32>
    %305 = arith.addf %304, %296 : vector<8x32xf32>
    %306 = arith.mulf %301, %73 : vector<8x32xf32>
    %307 = arith.mulf %300, %73 : vector<8x32xf32>
    %308 = arith.addf %306, %307 : vector<8x32xf32>
    %309 = arith.addf %308, %299 : vector<8x32xf32>
    %310 = arith.index_cast %290 : i32 to index
    %c0_130 = arith.constant 0 : index
    %c0_131 = arith.constant 0 : index
    %311 = vector.load %arg18[%310, %c0_130, %c0_131] : memref<8x8x32xf32, #tpu.memory_space<vmem>>, vector<1x8x32xf32>
    %312 = vector.shape_cast %311 : vector<1x8x32xf32> to vector<8x32xf32>
    %313 = vector.shape_cast %305 : vector<8x32xf32> to vector<1x8x32xf32>
    tpu.vector_store %arg18[%310, %c0_130, %c0_131], %313 {strides = array<i32>} : memref<8x8x32xf32, #tpu.memory_space<vmem>>, vector<1x8x32xf32>,
    %314 = arith.index_cast %290 : i32 to index
    %c0_132 = arith.constant 0 : index
    %c0_133 = arith.constant 0 : index
    %315 = vector.load %arg19[%314, %c0_132, %c0_133] : memref<8x8x32xf32, #tpu.memory_space<vmem>>, vector<1x8x32xf32>
    %316 = vector.shape_cast %315 : vector<1x8x32xf32> to vector<8x32xf32>
    %317 = vector.shape_cast %309 : vector<8x32xf32> to vector<1x8x32xf32>
    tpu.vector_store %arg19[%314, %c0_132, %c0_133], %317 {strides = array<i32>} : memref<8x8x32xf32, #tpu.memory_space<vmem>>, vector<1x8x32xf32>,
    %c1_i32_134 = arith.constant 1 : i32
    %c7_i32_135 = arith.constant 7 : i32
    %318 = arith.subi %c7_i32_135, %c1_i32_134 : i32
    %319 = arith.index_cast %318 : i32 to index
    %c0_136 = arith.constant 0 : index
    %c0_137 = arith.constant 0 : index
    %320 = vector.load %arg17[%319, %c0_136, %c0_137] : memref<8x8x32xf32, #tpu.memory_space<vmem>>, vector<1x8x32xf32>
    %321 = vector.shape_cast %320 : vector<1x8x32xf32> to vector<8x32xf32>
    %322 = arith.index_cast %318 : i32 to index
    %c0_138 = arith.constant 0 : index
    %c0_139 = arith.constant 0 : index
    %323 = vector.load %arg18[%322, %c0_138, %c0_139] : memref<8x8x32xf32, #tpu.memory_space<vmem>>, vector<1x8x32xf32>
    %324 = vector.shape_cast %323 : vector<1x8x32xf32> to vector<8x32xf32>
    %325 = arith.index_cast %318 : i32 to index
    %c0_140 = arith.constant 0 : index
    %c0_141 = arith.constant 0 : index
    %326 = vector.load %arg19[%325, %c0_140, %c0_141] : memref<8x8x32xf32, #tpu.memory_space<vmem>>, vector<1x8x32xf32>
    %327 = vector.shape_cast %326 : vector<1x8x32xf32> to vector<8x32xf32>
    %328 = arith.mulf %321, %69 : vector<8x32xf32>
    %329 = arith.mulf %321, %72 : vector<8x32xf32>
    %330 = arith.mulf %328, %305 : vector<8x32xf32>
    %331 = arith.mulf %329, %309 : vector<8x32xf32>
    %332 = arith.subf %330, %331 : vector<8x32xf32>
    %333 = arith.addf %332, %324 : vector<8x32xf32>
    %334 = arith.mulf %329, %305 : vector<8x32xf32>
    %335 = arith.mulf %328, %309 : vector<8x32xf32>
    %336 = arith.addf %334, %335 : vector<8x32xf32>
    %337 = arith.addf %336, %327 : vector<8x32xf32>
    %338 = arith.index_cast %318 : i32 to index
    %c0_142 = arith.constant 0 : index
    %c0_143 = arith.constant 0 : index
    %339 = vector.load %arg18[%338, %c0_142, %c0_143] : memref<8x8x32xf32, #tpu.memory_space<vmem>>, vector<1x8x32xf32>
    %340 = vector.shape_cast %339 : vector<1x8x32xf32> to vector<8x32xf32>
    %341 = vector.shape_cast %333 : vector<8x32xf32> to vector<1x8x32xf32>
    tpu.vector_store %arg18[%338, %c0_142, %c0_143], %341 {strides = array<i32>} : memref<8x8x32xf32, #tpu.memory_space<vmem>>, vector<1x8x32xf32>,
    %342 = arith.index_cast %318 : i32 to index
    %c0_144 = arith.constant 0 : index
    %c0_145 = arith.constant 0 : index
    %343 = vector.load %arg19[%342, %c0_144, %c0_145] : memref<8x8x32xf32, #tpu.memory_space<vmem>>, vector<1x8x32xf32>
    %344 = vector.shape_cast %343 : vector<1x8x32xf32> to vector<8x32xf32>
    %345 = vector.shape_cast %337 : vector<8x32xf32> to vector<1x8x32xf32>
    tpu.vector_store %arg19[%342, %c0_144, %c0_145], %345 {strides = array<i32>} : memref<8x8x32xf32, #tpu.memory_space<vmem>>, vector<1x8x32xf32>,
    %c2_i32_146 = arith.constant 2 : i32
    %c7_i32_147 = arith.constant 7 : i32
    %346 = arith.subi %c7_i32_147, %c2_i32_146 : i32
    %347 = arith.index_cast %346 : i32 to index
    %c0_148 = arith.constant 0 : index
    %c0_149 = arith.constant 0 : index
    %348 = vector.load %arg17[%347, %c0_148, %c0_149] : memref<8x8x32xf32, #tpu.memory_space<vmem>>, vector<1x8x32xf32>
    %349 = vector.shape_cast %348 : vector<1x8x32xf32> to vector<8x32xf32>
    %350 = arith.index_cast %346 : i32 to index
    %c0_150 = arith.constant 0 : index
    %c0_151 = arith.constant 0 : index
    %351 = vector.load %arg18[%350, %c0_150, %c0_151] : memref<8x8x32xf32, #tpu.memory_space<vmem>>, vector<1x8x32xf32>
    %352 = vector.shape_cast %351 : vector<1x8x32xf32> to vector<8x32xf32>
    %353 = arith.index_cast %346 : i32 to index
    %c0_152 = arith.constant 0 : index
    %c0_153 = arith.constant 0 : index
    %354 = vector.load %arg19[%353, %c0_152, %c0_153] : memref<8x8x32xf32, #tpu.memory_space<vmem>>, vector<1x8x32xf32>
    %355 = vector.shape_cast %354 : vector<1x8x32xf32> to vector<8x32xf32>
    %356 = arith.mulf %349, %69 : vector<8x32xf32>
    %357 = arith.mulf %349, %72 : vector<8x32xf32>
    %358 = arith.mulf %356, %333 : vector<8x32xf32>
    %359 = arith.mulf %357, %337 : vector<8x32xf32>
    %360 = arith.subf %358, %359 : vector<8x32xf32>
    %361 = arith.addf %360, %352 : vector<8x32xf32>
    %362 = arith.mulf %357, %333 : vector<8x32xf32>
    %363 = arith.mulf %356, %337 : vector<8x32xf32>
    %364 = arith.addf %362, %363 : vector<8x32xf32>
    %365 = arith.addf %364, %355 : vector<8x32xf32>
    %366 = arith.index_cast %346 : i32 to index
    %c0_154 = arith.constant 0 : index
    %c0_155 = arith.constant 0 : index
    %367 = vector.load %arg18[%366, %c0_154, %c0_155] : memref<8x8x32xf32, #tpu.memory_space<vmem>>, vector<1x8x32xf32>
    %368 = vector.shape_cast %367 : vector<1x8x32xf32> to vector<8x32xf32>
    %369 = vector.shape_cast %361 : vector<8x32xf32> to vector<1x8x32xf32>
    tpu.vector_store %arg18[%366, %c0_154, %c0_155], %369 {strides = array<i32>} : memref<8x8x32xf32, #tpu.memory_space<vmem>>, vector<1x8x32xf32>,
    %370 = arith.index_cast %346 : i32 to index
    %c0_156 = arith.constant 0 : index
    %c0_157 = arith.constant 0 : index
    %371 = vector.load %arg19[%370, %c0_156, %c0_157] : memref<8x8x32xf32, #tpu.memory_space<vmem>>, vector<1x8x32xf32>
    %372 = vector.shape_cast %371 : vector<1x8x32xf32> to vector<8x32xf32>
    %373 = vector.shape_cast %365 : vector<8x32xf32> to vector<1x8x32xf32>
    tpu.vector_store %arg19[%370, %c0_156, %c0_157], %373 {strides = array<i32>} : memref<8x8x32xf32, #tpu.memory_space<vmem>>, vector<1x8x32xf32>,
    %c3_i32_158 = arith.constant 3 : i32
    %c7_i32_159 = arith.constant 7 : i32
    %374 = arith.subi %c7_i32_159, %c3_i32_158 : i32
    %375 = arith.index_cast %374 : i32 to index
    %c0_160 = arith.constant 0 : index
    %c0_161 = arith.constant 0 : index
    %376 = vector.load %arg17[%375, %c0_160, %c0_161] : memref<8x8x32xf32, #tpu.memory_space<vmem>>, vector<1x8x32xf32>
    %377 = vector.shape_cast %376 : vector<1x8x32xf32> to vector<8x32xf32>
    %378 = arith.index_cast %374 : i32 to index
    %c0_162 = arith.constant 0 : index
    %c0_163 = arith.constant 0 : index
    %379 = vector.load %arg18[%378, %c0_162, %c0_163] : memref<8x8x32xf32, #tpu.memory_space<vmem>>, vector<1x8x32xf32>
    %380 = vector.shape_cast %379 : vector<1x8x32xf32> to vector<8x32xf32>
    %381 = arith.index_cast %374 : i32 to index
    %c0_164 = arith.constant 0 : index
    %c0_165 = arith.constant 0 : index
    %382 = vector.load %arg19[%381, %c0_164, %c0_165] : memref<8x8x32xf32, #tpu.memory_space<vmem>>, vector<1x8x32xf32>
    %383 = vector.shape_cast %382 : vector<1x8x32xf32> to vector<8x32xf32>
    %384 = arith.mulf %377, %69 : vector<8x32xf32>
    %385 = arith.mulf %377, %72 : vector<8x32xf32>
    %386 = arith.mulf %384, %361 : vector<8x32xf32>
    %387 = arith.mulf %385, %365 : vector<8x32xf32>
    %388 = arith.subf %386, %387 : vector<8x32xf32>
    %389 = arith.addf %388, %380 : vector<8x32xf32>
    %390 = arith.mulf %385, %361 : vector<8x32xf32>
    %391 = arith.mulf %384, %365 : vector<8x32xf32>
    %392 = arith.addf %390, %391 : vector<8x32xf32>
    %393 = arith.addf %392, %383 : vector<8x32xf32>
    %394 = arith.index_cast %374 : i32 to index
    %c0_166 = arith.constant 0 : index
    %c0_167 = arith.constant 0 : index
    %395 = vector.load %arg18[%394, %c0_166, %c0_167] : memref<8x8x32xf32, #tpu.memory_space<vmem>>, vector<1x8x32xf32>
    %396 = vector.shape_cast %395 : vector<1x8x32xf32> to vector<8x32xf32>
    %397 = vector.shape_cast %389 : vector<8x32xf32> to vector<1x8x32xf32>
    tpu.vector_store %arg18[%394, %c0_166, %c0_167], %397 {strides = array<i32>} : memref<8x8x32xf32, #tpu.memory_space<vmem>>, vector<1x8x32xf32>,
    %398 = arith.index_cast %374 : i32 to index
    %c0_168 = arith.constant 0 : index
    %c0_169 = arith.constant 0 : index
    %399 = vector.load %arg19[%398, %c0_168, %c0_169] : memref<8x8x32xf32, #tpu.memory_space<vmem>>, vector<1x8x32xf32>
    %400 = vector.shape_cast %399 : vector<1x8x32xf32> to vector<8x32xf32>
    %401 = vector.shape_cast %393 : vector<8x32xf32> to vector<1x8x32xf32>
    tpu.vector_store %arg19[%398, %c0_168, %c0_169], %401 {strides = array<i32>} : memref<8x8x32xf32, #tpu.memory_space<vmem>>, vector<1x8x32xf32>,
    %c4_i32_170 = arith.constant 4 : i32
    %c7_i32_171 = arith.constant 7 : i32
    %402 = arith.subi %c7_i32_171, %c4_i32_170 : i32
    %403 = arith.index_cast %402 : i32 to index
    %c0_172 = arith.constant 0 : index
    %c0_173 = arith.constant 0 : index
    %404 = vector.load %arg17[%403, %c0_172, %c0_173] : memref<8x8x32xf32, #tpu.memory_space<vmem>>, vector<1x8x32xf32>
    %405 = vector.shape_cast %404 : vector<1x8x32xf32> to vector<8x32xf32>
    %406 = arith.index_cast %402 : i32 to index
    %c0_174 = arith.constant 0 : index
    %c0_175 = arith.constant 0 : index
    %407 = vector.load %arg18[%406, %c0_174, %c0_175] : memref<8x8x32xf32, #tpu.memory_space<vmem>>, vector<1x8x32xf32>
    %408 = vector.shape_cast %407 : vector<1x8x32xf32> to vector<8x32xf32>
    %409 = arith.index_cast %402 : i32 to index
    %c0_176 = arith.constant 0 : index
    %c0_177 = arith.constant 0 : index
    %410 = vector.load %arg19[%409, %c0_176, %c0_177] : memref<8x8x32xf32, #tpu.memory_space<vmem>>, vector<1x8x32xf32>
    %411 = vector.shape_cast %410 : vector<1x8x32xf32> to vector<8x32xf32>
    %412 = arith.mulf %405, %69 : vector<8x32xf32>
    %413 = arith.mulf %405, %72 : vector<8x32xf32>
    %414 = arith.mulf %412, %389 : vector<8x32xf32>
    %415 = arith.mulf %413, %393 : vector<8x32xf32>
    %416 = arith.subf %414, %415 : vector<8x32xf32>
    %417 = arith.addf %416, %408 : vector<8x32xf32>
    %418 = arith.mulf %413, %389 : vector<8x32xf32>
    %419 = arith.mulf %412, %393 : vector<8x32xf32>
    %420 = arith.addf %418, %419 : vector<8x32xf32>
    %421 = arith.addf %420, %411 : vector<8x32xf32>
    %422 = arith.index_cast %402 : i32 to index
    %c0_178 = arith.constant 0 : index
    %c0_179 = arith.constant 0 : index
    %423 = vector.load %arg18[%422, %c0_178, %c0_179] : memref<8x8x32xf32, #tpu.memory_space<vmem>>, vector<1x8x32xf32>
    %424 = vector.shape_cast %423 : vector<1x8x32xf32> to vector<8x32xf32>
    %425 = vector.shape_cast %417 : vector<8x32xf32> to vector<1x8x32xf32>
    tpu.vector_store %arg18[%422, %c0_178, %c0_179], %425 {strides = array<i32>} : memref<8x8x32xf32, #tpu.memory_space<vmem>>, vector<1x8x32xf32>,
    %426 = arith.index_cast %402 : i32 to index
    %c0_180 = arith.constant 0 : index
    %c0_181 = arith.constant 0 : index
    %427 = vector.load %arg19[%426, %c0_180, %c0_181] : memref<8x8x32xf32, #tpu.memory_space<vmem>>, vector<1x8x32xf32>
    %428 = vector.shape_cast %427 : vector<1x8x32xf32> to vector<8x32xf32>
    %429 = vector.shape_cast %421 : vector<8x32xf32> to vector<1x8x32xf32>
    tpu.vector_store %arg19[%426, %c0_180, %c0_181], %429 {strides = array<i32>} : memref<8x8x32xf32, #tpu.memory_space<vmem>>, vector<1x8x32xf32>,
    %c5_i32_182 = arith.constant 5 : i32
    %c7_i32_183 = arith.constant 7 : i32
    %430 = arith.subi %c7_i32_183, %c5_i32_182 : i32
    %431 = arith.index_cast %430 : i32 to index
    %c0_184 = arith.constant 0 : index
    %c0_185 = arith.constant 0 : index
    %432 = vector.load %arg17[%431, %c0_184, %c0_185] : memref<8x8x32xf32, #tpu.memory_space<vmem>>, vector<1x8x32xf32>
    %433 = vector.shape_cast %432 : vector<1x8x32xf32> to vector<8x32xf32>
    %434 = arith.index_cast %430 : i32 to index
    %c0_186 = arith.constant 0 : index
    %c0_187 = arith.constant 0 : index
    %435 = vector.load %arg18[%434, %c0_186, %c0_187] : memref<8x8x32xf32, #tpu.memory_space<vmem>>, vector<1x8x32xf32>
    %436 = vector.shape_cast %435 : vector<1x8x32xf32> to vector<8x32xf32>
    %437 = arith.index_cast %430 : i32 to index
    %c0_188 = arith.constant 0 : index
    %c0_189 = arith.constant 0 : index
    %438 = vector.load %arg19[%437, %c0_188, %c0_189] : memref<8x8x32xf32, #tpu.memory_space<vmem>>, vector<1x8x32xf32>
    %439 = vector.shape_cast %438 : vector<1x8x32xf32> to vector<8x32xf32>
    %440 = arith.mulf %433, %69 : vector<8x32xf32>
    %441 = arith.mulf %433, %72 : vector<8x32xf32>
    %442 = arith.mulf %440, %417 : vector<8x32xf32>
    %443 = arith.mulf %441, %421 : vector<8x32xf32>
    %444 = arith.subf %442, %443 : vector<8x32xf32>
    %445 = arith.addf %444, %436 : vector<8x32xf32>
    %446 = arith.mulf %441, %417 : vector<8x32xf32>
    %447 = arith.mulf %440, %421 : vector<8x32xf32>
    %448 = arith.addf %446, %447 : vector<8x32xf32>
    %449 = arith.addf %448, %439 : vector<8x32xf32>
    %450 = arith.index_cast %430 : i32 to index
    %c0_190 = arith.constant 0 : index
    %c0_191 = arith.constant 0 : index
    %451 = vector.load %arg18[%450, %c0_190, %c0_191] : memref<8x8x32xf32, #tpu.memory_space<vmem>>, vector<1x8x32xf32>
    %452 = vector.shape_cast %451 : vector<1x8x32xf32> to vector<8x32xf32>
    %453 = vector.shape_cast %445 : vector<8x32xf32> to vector<1x8x32xf32>
    tpu.vector_store %arg18[%450, %c0_190, %c0_191], %453 {strides = array<i32>} : memref<8x8x32xf32, #tpu.memory_space<vmem>>, vector<1x8x32xf32>,
    %454 = arith.index_cast %430 : i32 to index
    %c0_192 = arith.constant 0 : index
    %c0_193 = arith.constant 0 : index
    %455 = vector.load %arg19[%454, %c0_192, %c0_193] : memref<8x8x32xf32, #tpu.memory_space<vmem>>, vector<1x8x32xf32>
    %456 = vector.shape_cast %455 : vector<1x8x32xf32> to vector<8x32xf32>
    %457 = vector.shape_cast %449 : vector<8x32xf32> to vector<1x8x32xf32>
    tpu.vector_store %arg19[%454, %c0_192, %c0_193], %457 {strides = array<i32>} : memref<8x8x32xf32, #tpu.memory_space<vmem>>, vector<1x8x32xf32>,
    %c6_i32_194 = arith.constant 6 : i32
    %c7_i32_195 = arith.constant 7 : i32
    %458 = arith.subi %c7_i32_195, %c6_i32_194 : i32
    %459 = arith.index_cast %458 : i32 to index
    %c0_196 = arith.constant 0 : index
    %c0_197 = arith.constant 0 : index
    %460 = vector.load %arg17[%459, %c0_196, %c0_197] : memref<8x8x32xf32, #tpu.memory_space<vmem>>, vector<1x8x32xf32>
    %461 = vector.shape_cast %460 : vector<1x8x32xf32> to vector<8x32xf32>
    %462 = arith.index_cast %458 : i32 to index
    %c0_198 = arith.constant 0 : index
    %c0_199 = arith.constant 0 : index
    %463 = vector.load %arg18[%462, %c0_198, %c0_199] : memref<8x8x32xf32, #tpu.memory_space<vmem>>, vector<1x8x32xf32>
    %464 = vector.shape_cast %463 : vector<1x8x32xf32> to vector<8x32xf32>
    %465 = arith.index_cast %458 : i32 to index
    %c0_200 = arith.constant 0 : index
    %c0_201 = arith.constant 0 : index
    %466 = vector.load %arg19[%465, %c0_200, %c0_201] : memref<8x8x32xf32, #tpu.memory_space<vmem>>, vector<1x8x32xf32>
    %467 = vector.shape_cast %466 : vector<1x8x32xf32> to vector<8x32xf32>
    %468 = arith.mulf %461, %69 : vector<8x32xf32>
    %469 = arith.mulf %461, %72 : vector<8x32xf32>
    %470 = arith.mulf %468, %445 : vector<8x32xf32>
    %471 = arith.mulf %469, %449 : vector<8x32xf32>
    %472 = arith.subf %470, %471 : vector<8x32xf32>
    %473 = arith.addf %472, %464 : vector<8x32xf32>
    %474 = arith.mulf %469, %445 : vector<8x32xf32>
    %475 = arith.mulf %468, %449 : vector<8x32xf32>
    %476 = arith.addf %474, %475 : vector<8x32xf32>
    %477 = arith.addf %476, %467 : vector<8x32xf32>
    %478 = arith.index_cast %458 : i32 to index
    %c0_202 = arith.constant 0 : index
    %c0_203 = arith.constant 0 : index
    %479 = vector.load %arg18[%478, %c0_202, %c0_203] : memref<8x8x32xf32, #tpu.memory_space<vmem>>, vector<1x8x32xf32>
    %480 = vector.shape_cast %479 : vector<1x8x32xf32> to vector<8x32xf32>
    %481 = vector.shape_cast %473 : vector<8x32xf32> to vector<1x8x32xf32>
    tpu.vector_store %arg18[%478, %c0_202, %c0_203], %481 {strides = array<i32>} : memref<8x8x32xf32, #tpu.memory_space<vmem>>, vector<1x8x32xf32>,
    %482 = arith.index_cast %458 : i32 to index
    %c0_204 = arith.constant 0 : index
    %c0_205 = arith.constant 0 : index
    %483 = vector.load %arg19[%482, %c0_204, %c0_205] : memref<8x8x32xf32, #tpu.memory_space<vmem>>, vector<1x8x32xf32>
    %484 = vector.shape_cast %483 : vector<1x8x32xf32> to vector<8x32xf32>
    %485 = vector.shape_cast %477 : vector<8x32xf32> to vector<1x8x32xf32>
    tpu.vector_store %arg19[%482, %c0_204, %c0_205], %485 {strides = array<i32>} : memref<8x8x32xf32, #tpu.memory_space<vmem>>, vector<1x8x32xf32>,
    %c7_i32_206 = arith.constant 7 : i32
    %c7_i32_207 = arith.constant 7 : i32
    %486 = arith.subi %c7_i32_207, %c7_i32_206 : i32
    %487 = arith.index_cast %486 : i32 to index
    %c0_208 = arith.constant 0 : index
    %c0_209 = arith.constant 0 : index
    %488 = vector.load %arg17[%487, %c0_208, %c0_209] : memref<8x8x32xf32, #tpu.memory_space<vmem>>, vector<1x8x32xf32>
    %489 = vector.shape_cast %488 : vector<1x8x32xf32> to vector<8x32xf32>
    %490 = arith.index_cast %486 : i32 to index
    %c0_210 = arith.constant 0 : index
    %c0_211 = arith.constant 0 : index
    %491 = vector.load %arg18[%490, %c0_210, %c0_211] : memref<8x8x32xf32, #tpu.memory_space<vmem>>, vector<1x8x32xf32>
    %492 = vector.shape_cast %491 : vector<1x8x32xf32> to vector<8x32xf32>
    %493 = arith.index_cast %486 : i32 to index
    %c0_212 = arith.constant 0 : index
    %c0_213 = arith.constant 0 : index
    %494 = vector.load %arg19[%493, %c0_212, %c0_213] : memref<8x8x32xf32, #tpu.memory_space<vmem>>, vector<1x8x32xf32>
    %495 = vector.shape_cast %494 : vector<1x8x32xf32> to vector<8x32xf32>
    %496 = arith.mulf %489, %69 : vector<8x32xf32>
    %497 = arith.mulf %489, %72 : vector<8x32xf32>
    %498 = arith.mulf %496, %473 : vector<8x32xf32>
    %499 = arith.mulf %497, %477 : vector<8x32xf32>
    %500 = arith.subf %498, %499 : vector<8x32xf32>
    %501 = arith.addf %500, %492 : vector<8x32xf32>
    %502 = arith.mulf %497, %473 : vector<8x32xf32>
    %503 = arith.mulf %496, %477 : vector<8x32xf32>
    %504 = arith.addf %502, %503 : vector<8x32xf32>
    %505 = arith.addf %504, %495 : vector<8x32xf32>
    %506 = arith.index_cast %486 : i32 to index
    %c0_214 = arith.constant 0 : index
    %c0_215 = arith.constant 0 : index
    %507 = vector.load %arg18[%506, %c0_214, %c0_215] : memref<8x8x32xf32, #tpu.memory_space<vmem>>, vector<1x8x32xf32>
    %508 = vector.shape_cast %507 : vector<1x8x32xf32> to vector<8x32xf32>
    %509 = vector.shape_cast %501 : vector<8x32xf32> to vector<1x8x32xf32>
    tpu.vector_store %arg18[%506, %c0_214, %c0_215], %509 {strides = array<i32>} : memref<8x8x32xf32, #tpu.memory_space<vmem>>, vector<1x8x32xf32>,
    %510 = arith.index_cast %486 : i32 to index
    %c0_216 = arith.constant 0 : index
    %c0_217 = arith.constant 0 : index
    %511 = vector.load %arg19[%510, %c0_216, %c0_217] : memref<8x8x32xf32, #tpu.memory_space<vmem>>, vector<1x8x32xf32>
    %512 = vector.shape_cast %511 : vector<1x8x32xf32> to vector<8x32xf32>
    %513 = vector.shape_cast %505 : vector<8x32xf32> to vector<1x8x32xf32>
    tpu.vector_store %arg19[%510, %c0_216, %c0_217], %513 {strides = array<i32>} : memref<8x8x32xf32, #tpu.memory_space<vmem>>, vector<1x8x32xf32>,
    %c8_i32_218 = arith.constant 8 : i32
    %c0_219 = arith.constant 0 : index
    %c0_220 = arith.constant 0 : index
    %c0_221 = arith.constant 0 : index
    %514 = vector.load %arg20[%c0_219, %c0_220, %c0_221] : memref<8x8x32xf32, #tpu.memory_space<vmem>>, vector<8x8x32xf32>
    %c0_222 = arith.constant 0 : index
    %c0_223 = arith.constant 0 : index
    %c0_224 = arith.constant 0 : index
    %515 = vector.load %arg18[%c0_222, %c0_223, %c0_224] : memref<8x8x32xf32, #tpu.memory_space<vmem>>, vector<8x8x32xf32>
    %516 = arith.addf %514, %515 : vector<8x8x32xf32>
    %517 = vector.shape_cast %516 : vector<8x8x32xf32> to vector<64x32xf32>
    %c0_225 = arith.constant 0 : index
    %c0_226 = arith.constant 0 : index
    %c0_227 = arith.constant 0 : index
    %518 = vector.load %arg21[%c0_225, %c0_226, %c0_227] : memref<8x8x32xf32, #tpu.memory_space<vmem>>, vector<8x8x32xf32>
    %c0_228 = arith.constant 0 : index
    %c0_229 = arith.constant 0 : index
    %c0_230 = arith.constant 0 : index
    %519 = vector.load %arg19[%c0_228, %c0_229, %c0_230] : memref<8x8x32xf32, #tpu.memory_space<vmem>>, vector<8x8x32xf32>
    %520 = arith.addf %518, %519 : vector<8x8x32xf32>
    %521 = vector.shape_cast %520 : vector<8x8x32xf32> to vector<64x32xf32>
    %cst_231 = arith.constant dense<0.000000e+00> : vector<64xf32>
    %522 = vector.multi_reduction <add>, %517, %cst_231 [1] : vector<64x32xf32> to vector<64xf32>
    %523 = vector.shape_cast %522 : vector<64xf32> to vector<64x1xf32>
    %cst_232 = arith.constant dense<0.000000e+00> : vector<64xf32>
    %524 = vector.multi_reduction <add>, %521, %cst_232 [1] : vector<64x32xf32> to vector<64xf32>
    %525 = vector.shape_cast %524 : vector<64xf32> to vector<64x1xf32>
    %526 = arith.addf %523, %525 : vector<64x1xf32>
    %cst_233 = arith.constant 1.562500e-02 : f32
    %527 = vector.broadcast %cst_233 : f32 to vector<64x1xf32>
    %528 = arith.mulf %526, %527 : vector<64x1xf32>
    %529 = vector.broadcast %528 : vector<64x1xf32> to vector<64x32xf32>
    %530 = arith.subf %517, %529 : vector<64x32xf32>
    %531 = vector.broadcast %528 : vector<64x1xf32> to vector<64x32xf32>
    %532 = arith.subf %521, %531 : vector<64x32xf32>
    %533 = arith.mulf %530, %530 : vector<64x32xf32>
    %cst_234 = arith.constant dense<0.000000e+00> : vector<64xf32>
    %534 = vector.multi_reduction <add>, %533, %cst_234 [1] : vector<64x32xf32> to vector<64xf32>
    %535 = vector.shape_cast %534 : vector<64xf32> to vector<64x1xf32>
    %536 = arith.mulf %532, %532 : vector<64x32xf32>
    %cst_235 = arith.constant dense<0.000000e+00> : vector<64xf32>
    %537 = vector.multi_reduction <add>, %536, %cst_235 [1] : vector<64x32xf32> to vector<64xf32>
    %538 = vector.shape_cast %537 : vector<64xf32> to vector<64x1xf32>
    %539 = arith.addf %535, %538 : vector<64x1xf32>
    %cst_236 = arith.constant 1.562500e-02 : f32
    %540 = vector.broadcast %cst_236 : f32 to vector<64x1xf32>
    %541 = arith.mulf %539, %540 : vector<64x1xf32>
    %cst_237 = arith.constant 9.99999974E-6 : f32
    %542 = vector.broadcast %cst_237 : f32 to vector<64x1xf32>
    %543 = arith.addf %541, %542 : vector<64x1xf32>
    %544 = math.rsqrt %543 : vector<64x1xf32>
    %545 = vector.broadcast %544 : vector<64x1xf32> to vector<64x32xf32>
    %546 = arith.mulf %530, %545 : vector<64x32xf32>
    %c0_238 = arith.constant 0 : index
    %c0_239 = arith.constant 0 : index
    %547 = vector.load %arg10[%c0_238, %c0_239] : memref<1x32xf32, #tpu.memory_space<vmem>>, vector<1x32xf32>
    %548 = vector.broadcast %547 : vector<1x32xf32> to vector<64x32xf32>
    %549 = arith.mulf %546, %548 : vector<64x32xf32>
    %c0_240 = arith.constant 0 : index
    %c0_241 = arith.constant 0 : index
    %550 = vector.load %arg12[%c0_240, %c0_241] : memref<1x32xf32, #tpu.memory_space<vmem>>, vector<1x32xf32>
    %551 = vector.broadcast %550 : vector<1x32xf32> to vector<64x32xf32>
    %552 = arith.addf %549, %551 : vector<64x32xf32>
    %c0_242 = arith.constant 0 : index
    %c0_243 = arith.constant 0 : index
    %c0_244 = arith.constant 0 : index
    %553 = vector.load %arg22[%c0_242, %c0_243, %c0_244] : memref<8x8x32xf32, #tpu.memory_space<vmem>>, vector<8x8x32xf32>
    %554 = vector.shape_cast %553 : vector<8x8x32xf32> to vector<64x32xf32>
    %555 = arith.mulf %552, %554 : vector<64x32xf32>
    %556 = vector.broadcast %544 : vector<64x1xf32> to vector<64x32xf32>
    %557 = arith.mulf %532, %556 : vector<64x32xf32>
    %c0_245 = arith.constant 0 : index
    %c0_246 = arith.constant 0 : index
    %558 = vector.load %arg11[%c0_245, %c0_246] : memref<1x32xf32, #tpu.memory_space<vmem>>, vector<1x32xf32>
    %559 = vector.broadcast %558 : vector<1x32xf32> to vector<64x32xf32>
    %560 = arith.mulf %557, %559 : vector<64x32xf32>
    %c0_247 = arith.constant 0 : index
    %c0_248 = arith.constant 0 : index
    %561 = vector.load %arg13[%c0_247, %c0_248] : memref<1x32xf32, #tpu.memory_space<vmem>>, vector<1x32xf32>
    %562 = vector.broadcast %561 : vector<1x32xf32> to vector<64x32xf32>
    %563 = arith.addf %560, %562 : vector<64x32xf32>
    %c0_249 = arith.constant 0 : index
    %c0_250 = arith.constant 0 : index
    %c0_251 = arith.constant 0 : index
    %564 = vector.load %arg23[%c0_249, %c0_250, %c0_251] : memref<8x8x32xf32, #tpu.memory_space<vmem>>, vector<8x8x32xf32>
    %565 = vector.shape_cast %564 : vector<8x8x32xf32> to vector<64x32xf32>
    %566 = arith.mulf %563, %565 : vector<64x32xf32>
    %c0_252 = arith.constant 0 : index
    %c0_253 = arith.constant 0 : index
    %567 = vector.load %arg14[%c0_252, %c0_253] : memref<64x32xf32, #tpu.memory_space<vmem>>, vector<64x32xf32>
    %568 = vector.extract_strided_slice %567 {offsets = [0, 0], sizes = [32, 32], strides = [1, 1]} : vector<64x32xf32> to vector<32x32xf32>
    %cst_254 = arith.constant dense<0.000000e+00> : vector<64x32xf32>
    %569 = tpu.matmul %555, %568, %cst_254 {dimension_numbers = #tpu.dot_dimension_numbers<[1], [0], [0], [1], [0, 0, 1, 1], [], []>} : vector<64x32xf32>, vector<32x32xf32>, vector<64x32xf32> -> vector<64x32xf32>
    %570 = vector.extract_strided_slice %567 {offsets = [32, 0], sizes = [32, 32], strides = [1, 1]} : vector<64x32xf32> to vector<32x32xf32>
    %cst_255 = arith.constant dense<0.000000e+00> : vector<64x32xf32>
    %571 = tpu.matmul %566, %570, %cst_255 {dimension_numbers = #tpu.dot_dimension_numbers<[1], [0], [0], [1], [0, 0, 1, 1], [], []>} : vector<64x32xf32>, vector<32x32xf32>, vector<64x32xf32> -> vector<64x32xf32>
    %572 = arith.addf %569, %571 : vector<64x32xf32>
    %c0_256 = arith.constant 0 : index
    %c0_257 = arith.constant 0 : index
    %573 = vector.load %arg15[%c0_256, %c0_257] : memref<1x32xf32, #tpu.memory_space<vmem>>, vector<1x32xf32>
    %574 = vector.broadcast %573 : vector<1x32xf32> to vector<64x32xf32>
    %575 = arith.addf %572, %574 : vector<64x32xf32>
    %576 = vector.shape_cast %575 : vector<64x32xf32> to vector<8x8x32xf32>
    %c0_258 = arith.constant 0 : index
    %c0_259 = arith.constant 0 : index
    %c0_260 = arith.constant 0 : index
    %577 = vector.load %arg16[%c0_258, %c0_259, %c0_260] : memref<8x8x32xf32, #tpu.memory_space<vmem>>, vector<8x8x32xf32>
    tpu.vector_store %arg16[%c0_258, %c0_259, %c0_260], %576 {strides = array<i32>} : memref<8x8x32xf32, #tpu.memory_space<vmem>>, vector<8x8x32xf32>,
    return
  }
  func.func @transform_0(%arg0: i32) -> (i32, i32, i32) {
    %c0_i32 = arith.constant 0 : i32
    %c0_i32_0 = arith.constant 0 : i32
    %c0_i32_1 = arith.constant 0 : i32
    return %c0_i32, %arg0, %c0_i32_0 : i32, i32, i32
  }
  func.func @transform_1(%arg0: i32) -> (i32, i32) {
    %c0_i32 = arith.constant 0 : i32
    %c0_i32_0 = arith.constant 0 : i32
    %c0_i32_1 = arith.constant 0 : i32
    return %c0_i32, %c0_i32_0 : i32, i32
  }
  func.func @transform_2(%arg0: i32) -> (i32, i32) {
    %c0_i32 = arith.constant 0 : i32
    %c0_i32_0 = arith.constant 0 : i32
    %c0_i32_1 = arith.constant 0 : i32
    return %c0_i32, %c0_i32_0 : i32, i32
  }
  func.func @transform_3(%arg0: i32) -> (i32, i32) {
    %c0_i32 = arith.constant 0 : i32
    %c0_i32_0 = arith.constant 0 : i32
    %c0_i32_1 = arith.constant 0 : i32
    return %c0_i32, %c0_i32_0 : i32, i32
  }
  func.func @transform_4(%arg0: i32) -> (i32, i32) {
    %c0_i32 = arith.constant 0 : i32
    %c0_i32_0 = arith.constant 0 : i32
    %c0_i32_1 = arith.constant 0 : i32
    return %c0_i32, %c0_i32_0 : i32, i32
  }
  func.func @transform_5(%arg0: i32) -> (i32, i32) {
    %c0_i32 = arith.constant 0 : i32
    %c0_i32_0 = arith.constant 0 : i32
    %c0_i32_1 = arith.constant 0 : i32
    return %c0_i32, %c0_i32_0 : i32, i32
  }
  func.func @transform_6(%arg0: i32) -> (i32, i32) {
    %c0_i32 = arith.constant 0 : i32
    %c0_i32_0 = arith.constant 0 : i32
    %c0_i32_1 = arith.constant 0 : i32
    return %c0_i32, %c0_i32_0 : i32, i32
  }
  func.func @transform_7(%arg0: i32) -> (i32, i32) {
    %c0_i32 = arith.constant 0 : i32
    %c0_i32_0 = arith.constant 0 : i32
    %c0_i32_1 = arith.constant 0 : i32
    return %c0_i32, %c0_i32_0 : i32, i32
  }
  func.func @transform_8(%arg0: i32) -> (i32, i32) {
    %c0_i32 = arith.constant 0 : i32
    %c0_i32_0 = arith.constant 0 : i32
    %c0_i32_1 = arith.constant 0 : i32
    return %c0_i32, %c0_i32_0 : i32, i32
  }
  func.func @transform_9(%arg0: i32) -> (i32, i32) {
    %c0_i32 = arith.constant 0 : i32
    %c0_i32_0 = arith.constant 0 : i32
    %c0_i32_1 = arith.constant 0 : i32
    return %c0_i32, %c0_i32_0 : i32, i32
  }
  func.func @transform_10(%arg0: i32) -> (i32, i32) {
    %c0_i32 = arith.constant 0 : i32
    %c0_i32_0 = arith.constant 0 : i32
    %c0_i32_1 = arith.constant 0 : i32
    return %c0_i32, %c0_i32_0 : i32, i32
  }
  func.func @transform_11(%arg0: i32) -> (i32, i32) {
    %c0_i32 = arith.constant 0 : i32
    %c0_i32_0 = arith.constant 0 : i32
    %c0_i32_1 = arith.constant 0 : i32
    return %c0_i32, %c0_i32_0 : i32, i32
  }
  func.func @transform_12(%arg0: i32) -> (i32, i32) {
    %c0_i32 = arith.constant 0 : i32
    %c0_i32_0 = arith.constant 0 : i32
    %c0_i32_1 = arith.constant 0 : i32
    return %c0_i32, %c0_i32_0 : i32, i32
  }
  func.func @transform_13(%arg0: i32) -> (i32, i32) {
    %c0_i32 = arith.constant 0 : i32
    %c0_i32_0 = arith.constant 0 : i32
    %c0_i32_1 = arith.constant 0 : i32
    return %c0_i32, %c0_i32_0 : i32, i32
  }
  func.func @transform_14(%arg0: i32) -> (i32, i32) {
    %c0_i32 = arith.constant 0 : i32
    %c0_i32_0 = arith.constant 0 : i32
    %c0_i32_1 = arith.constant 0 : i32
    return %c0_i32, %c0_i32_0 : i32, i32
  }
  func.func @transform_15(%arg0: i32) -> (i32, i32, i32) {
    %c0_i32 = arith.constant 0 : i32
    %c0_i32_0 = arith.constant 0 : i32
    %c0_i32_1 = arith.constant 0 : i32
    return %c0_i32, %arg0, %c0_i32_0 : i32, i32, i32
  }
}

</mosaic_0001>

<bundles_post_ra>
// kernel: tpu_custom_call.1
= control target key start
LH: loop header
LB: loop body
LE: loop exit
PB: predicated region body
PF: predicated region fallthrough
CT: control target
= control target key end

     0   :  { %s3452_s0 = inlined_call_operand.hbm [shape: f32[8,16,32], index: 0, kind: input, shape index: {}]   ;;  %s3453_s1 = inlined_call_operand.vmem [shape: f32[32,128], index: 1, kind: input, shape index: {}]   ;;  %s3454_s2 = inlined_call_operand.vmem [shape: f32[1,128], index: 2, kind: input, shape index: {}]   ;;  %s3455_s3 = inlined_call_operand.vmem [shape: f32[32,32], index: 3, kind: input, shape index: {}]   ;;  %s3456_s4 = inlined_call_operand.vmem [shape: f32[1,32], index: 4, kind: input, shape index: {}]   ;;  %s3457_s5 = inlined_call_operand.vmem [shape: f32[1,32], index: 5, kind: input, shape index: {}]   ;;  %s3458_s6 = inlined_call_operand.vmem [shape: f32[1,32], index: 6, kind: input, shape index: {}]   ;;  %s3459_s7 = inlined_call_operand.vmem [shape: f32[1,32], index: 7, kind: input, shape index: {}]   ;;  %s3460_s8 = inlined_call_operand.vmem [shape: f32[1,32], index: 8, kind: input, shape index: {}]   ;;  %s3461_s9 = inlined_call_operand.vmem [shape: f32[1,32], index: 9, kind: input, shape index: {}]   ;;  %s3462_s10 = inlined_call_operand.vmem [shape: f32[1,32], index: 10, kind: input, shape index: {}]   ;;  %s3463_s11 = inlined_call_operand.vmem [shape: f32[1,32], index: 11, kind: input, shape index: {}]   ;;  %s3464_s12 = inlined_call_operand.vmem [shape: f32[1,32], index: 12, kind: input, shape index: {}]   ;;  %s3465_s13 = inlined_call_operand.vmem [shape: f32[64,32], index: 13, kind: input, shape index: {}]   ;;  %s3466_s14 = inlined_call_operand.vmem [shape: f32[1,32], index: 14, kind: input, shape index: {}]   ;;  %s3467_s15 = inlined_call_operand.hbm [shape: f32[8,16,32], index: 15, kind: output, shape index: {}]  }
   0x1   :  { %3476 = sst [smem:[#allocation20_spill]] %s3452_s0 }
   0x2   :  { %3477 = sst [smem:[#allocation21_spill]] %s3467_s15 }
   0x3   :  { %20 = vsyncpa [#allocation10], 0 }
   0x4   :  { %22 = vsyncpa [#allocation10 + $0x1], 0 }
   0x5   :  { %23 = vsyncpa [#allocation11], 0 }
   0x6   :  { %25 = vsyncpa [#allocation11 + $0x1], 0  ;;  %s2594_s18 = smov 0   ;;  %s2596_s19 = smov 0  }
   0x7   :  { %s2598_s20 = smov 0   ;;  %s2600_s21 = smov 0  }
   0x8 LB: > { %3478 = sst [smem:[#allocation15_spill]] %s2489_s18  ;;  %s2615_s22 = sadd.s32 4294967295, %s2501_s21   ;;  %s2501_s21 = sphi %s2600_s21, %s3497_s21   ;;  %s2497_s20 = sphi %s2598_s20, %s3499_s20   ;;  %s2493_s19 = sphi %s2596_s19, %s3501_s19   ;;  %s2489_s18 = sphi %s2594_s18, %s3500_s18  }
   0x9   : > { %3479 = sst [smem:[#allocation16_spill]] %s2497_s20  ;;  %s2031_s23 = sadd.s32 4294967294, %s2501_s21  }
   0xa   : > { %s2619_s24 = sadd.s32 1, %s2501_s21   ;;  %s38_s25 = sadd.s32 1, %s2497_s20 }
   0xb   : > { %3480 = sst [smem:[#allocation17_spill]] %s2619_s24  ;;  %s35_s26 = ssub.s32 %s2501_s21, %s2619_s24 }
   0xc   : > { %p45_p0 = scmp.ne.s32.totalorder %s2497_s20, %s2493_s19  ;;  %p36_p1 = scmp.eq.s32.totalorder %s35_s26, 0 }
   0xd   : > { %p46_p2 = scmp.eq.s32.totalorder %s2501_s21, 0  ;;  %p51_p3 = scmp.ne.s32.totalorder %s2493_s19, %s2489_s18 }
   0xe   : > { %p52_p4 = scmp.eq.s32.totalorder %s2615_s22, 0  ;;  %p369_p7 = scmp.eq.s32.totalorder %s2615_s22, 1 }
   0xf   : > { %s2631_s27 = scalar_select %p36_p1, %s2497_s20, %s38_s25  }
  0x10   : > { %p2633_p5 = por %p46_p2, %p45_p0  ;;  %p2637_p6 = por %p52_p4, %p51_p3 }
  0x11   : > { %3481 = sst [smem:[#allocation18_spill]] %s2631_s27  ;;  %p375_p8 = scmp.eq.s32.totalorder %s2031_s23, 1 }
  0x12   : > { %p2282_p10 = scmp.lt.s32.totalorder %s2501_s21, 2  ;;  %p2644_p11 = por %p369_p7, %p45_p0 }
  0x13   : > { %p2648_p12 = por %p375_p8, %p51_p3  ;;  %s437_s17 = sand.u32 1, %s2497_s20  }
  0x14   : > { %s3484_s30 = scalar_select %p2644_p11, 1, 0 }
  0x15   : > { %s3486_s16 = scalar_select %p2648_p12, 1, 0 }
  0x16   : > { %3485 = sst [smem:[#allocation19_spill]] %s3484_s30  ;;  %s2035_s25 = sshll.u32 %s2501_s21, 7 }
  0x17   : > { %s2034_s26 = sshll.u32 %s437_s17, 6  ;;  %s3487_s0 = sld [smem:[#allocation20_spill]] }
  0x18   : > { %s441_s23 = scalar_lea.vmem [#allocation9], %s2034_s26  ;;  %p2661_p13 = pnand %p2282_p10, %p2633_p5 }
  0x19   : > { %s447_s15 = sshll.u32 %s441_s23, 4  ;;  %s2668_s20 = scalar_lea.sflag [#allocation10], %s437_s17  ;;  %s2665_s15 = int_to_ptr.vmem [resolvable:$true] %s447_s15 }
  0x1a   : > { %p2407_p2 = pneg %p2661_p13 }
  0x1d   : > { %s2657_s18 = scalar_lea.hbm %s3487_s0, %s2035_s25  ;;  %s2410_s25 = scalar_lea.hbm %s3487_s0, 2048 }
  0x1e   : > { %s2405_s24 = scalar_lea.hbm %s2657_s18, 1024  ;;  %p2411_p5 = scmp.lt.u32.totalorder %s2657_s18, %s3487_s0 }
  0x1f   : > { %p2406_p1 = scmp.ne.s32.totalorder %s2657_s18, %s2405_s24  ;;  %p2412_p7 = scmp.lt.u32.totalorder %s2410_s25, %s2405_s24 }
  0x20   : > { %p2414_p10 = scmp.lt.u32.totalorder %s2405_s24, %s2657_s18 }
  0x21   : > { %p2408_p3 = pnand %p2407_p2, %p2406_p1  ;;  %p2413_p8 = por %p2412_p7, %p2411_p5 }
  0x23   : > { %p2409_p4 = pneg %p2408_p3  ;;  %p2415_p9 = por %p2414_p10, %p2413_p8 }
  0x25   : > { %p2416_p0 = pnand %p2415_p9, %p2409_p4 }
  0x27   : > { %2419 = shalt.err (!%p2416_p0)
}
  0x28   : > { %s2420_s17 = scalar_lea.vmem %s2665_s15, 1024  ;;  %s2503_s27 = smov [#allocation9]  }
  0x29   : > { %p2421_p1 = scmp.ne.s32.totalorder %s2665_s15, %s2420_s17  ;;  %s2425_s28 = sshll.u32 %s2503_s27, 4  ;;  %s2426_s28 = int_to_ptr.vmem [resolvable:$false] %s2425_s28 }
  0x2a   : > { %s2427_s26 = scalar_lea.vmem %s2426_s28, 2048  ;;  %p2428_p11 = scmp.lt.s32.totalorder %s2665_s15, %s2426_s28 }
  0x2b   : > { %p2423_p3 = pnand %p2421_p1, %p2407_p2  ;;  %p2429_p5 = scmp.lt.s32.totalorder %s2427_s26, %s2420_s17 }
  0x2d   : > { %p2424_p12 = pneg %p2423_p3  ;;  %p2430_p7 = por %p2429_p5, %p2428_p11 }
  0x2f   : > { %p2431_p8 = pnand %p2430_p7, %p2424_p12 }
  0x31   : > { %2434 = shalt.err (!%p2431_p8)
}
  0x32   : > { %s2504_s24 = smov 256   ;;  %s2505_s25 = smov 128  }
  0x33   : > { %s2506_s23 = smov 8   ;;  %p455_p9 = scmp.lt.s32.totalorder %s2501_s21, 3 }
  0x34   : > { %2277 = dma.hbm_to_vmem [thread:$0]  (!%p2661_p13), %s2657_s18, 1024, %s2665_s15, %s2668_s20, %s2504_s24, %s2505_s25, %s2506_s23  }
  0x35   : > { %p3489_p0 = scmp.ge.s32.totalorder %s2501_s21, 1 }
  0x37   : > { %p456_p2 = pnand %p3489_p0, %p455_p9 }
  0x38   : > { %s2700_s17 = sand.u32 (!%p456_p2), 1, %s2493_s19  }
  0x39   : > { %459 = sbr.rel (%p456_p2) target bundleno = 1125 (0x465), region = 80  ;;  %s2037_s27 = sshll.u32 (!%p456_p2), %s2700_s17, 6 }
  0x3a   : > { %s462_s28 = scalar_lea.sflag (!%p456_p2), [#allocation10], %s2700_s17  ;;  %s2706_s26 = scalar_lea.vmem (!%p456_p2), [#allocation9], %s2037_s27 }
  0x40   : > { %2480 = dma.done.wait (%p2637_p6), %s462_s28, 1024  }
  0x41   : > { %2482 = vsyncadd (%p2637_p6), %s462_s28, 4294966272  ;;  %vm531_vm0 = vcmask 261120   ;;  %v520_v0 = vld [vmem:[%s3453_s1] sm:$0xff]  ;;  %v521_v1 = vld [vmem:[%s3453_s1 + $0x8] sm:$0xff]  ;;  %s2507_s18 = smov 96   ;;  %s2508_s15 = smov 32  }
  0x42   : > { %v522_v2 = vld [vmem:[%s3453_s1 + $0x10] sm:$0xff]  ;;  %v2230_v3 = vpack.c.bf16 %v521_v1, %v520_v0  ;;  %v523_v4 = vld [vmem:[%s3453_s1 + $0x18] sm:$0xff]  ;;  %v512_v5 = vld [vmem:[%s2706_s26] sm:$0xff]  ;;  %s2509_s25 = smov 64   ;;  %s3491_s30 = sld [smem:[#allocation21_spill]] }
  0x43   : > { %v2234_v6 = vpack.c.bf16 %v523_v4, %v522_v2  ;;  %2158 = vmatprep.mubr.msk.f32.mxu1 %vm531_vm0, %v512_v5  ;;  %v661_v7 = vld [vmem:[%s3455_s3] sm:$0xff]  ;;  %v662_v8 = vld [vmem:[%s3455_s3 + $0x8] sm:$0xff]  ;;  %v663_v10 = vld [vmem:[%s3455_s3 + $0x10] sm:$0xff]  ;;  %s2510_s23 = smov [#allocation12]  }
  0x44   : > { %2231 = vmatprep.subr.bf16.mxu1 %v2230_v3  ;;  %v2238_v9 = vpack.c.bf16 %v662_v8, %v661_v7  ;;  %v664_v11 = vld [vmem:[%s3455_s3 + $0x18] sm:$0xff]  ;;  %v513_v12 = vld [vmem:[%s2706_s26 + $0x8] sm:$0xff]  ;;  %v514_v13 = vld [vmem:[%s2706_s26 + $0x10] sm:$0xff]  ;;  %s2439_s29 = sshll.u32 %s2510_s23, 4  ;;  %s2440_s29 = int_to_ptr.vmem [resolvable:$false] %s2439_s29 }
  0x45   : > { %2233 = vmatpush3.bf16.msra.mxu1 %v2230_v3  ;;  %v2242_v14 = vpack.c.bf16 %v664_v11, %v663_v10  ;;  %v515_v15 = vld [vmem:[%s2706_s26 + $0x18] sm:$0xff]  ;;  %v516_v16 = vld [vmem:[%s2706_s26 + $0x20] sm:$0xff]  ;;  %v517_v17 = vld [vmem:[%s2706_s26 + $0x28] sm:$0xff]  ;;  %s2441_s0 = scalar_lea.vmem %s2440_s29, 2048 }
  0x46   : > { %2235 = vmatprep.subr.bf16.mxu1 %v2234_v6  ;;  %v518_v18 = vld [vmem:[%s2706_s26 + $0x30] sm:$0xff]  ;;  %v519_v19 = vld [vmem:[%s2706_s26 + $0x38] sm:$0xff]  ;;  %v2039_v20 = vld [vmem:[%s3454_s2] ss:$0 sm:$0xff]  ;;  %s511_s26 = scalar_lea.vmem [#allocation12], %s2037_s27  ;;  %s2099_s27 = sshll.u32 %s2615_s22, 7 }
  0x47   : > { %v2048_v43 = vld [vmem:[%s3456_s4] ss:$0 sm:$0xff]  ;;  %s1958_s28 = sshll.u32 %s511_s26, 4  ;;  %s3400_s28 = int_to_ptr.vmem [resolvable:$true] %s1958_s28 }
  0x48   : > { %s3406_s24 = scalar_lea.hbm %s3491_s30, %s2099_s27  ;;  %p2442_p4 = scmp.lt.s32.totalorder %s3400_s28, %s2440_s29 }
  0x49   : > { %2237 = vmatpush3.bf16.msra.mxu1 %v2234_v6 }
  0x4a   : > { %2239 = vmatprep.subr.bf16.mxu1 %v2238_v9 }
  0x4c   : > { %2159 = vmatmul.mubr.msk.f32.vlgmr.msra.gmra.mrb[0].mxu1 %vm531_vm0, %v513_v12 }
  0x4d   : > { %2161 = vmatprep.mubr.msk.f32.mxu1 %vm531_vm0, %v514_v13  ;;  %2241 = vmatpush3.bf16.msra.mxu1 %v2238_v9 }
  0x4e   : > { %2243 = vmatprep.subr.bf16.mxu1 %v2242_v14 }
  0x50   : > { %2162 = vmatmul.mubr.msk.f32.gmra.mrb[2].mxu1 %vm531_vm0, %v515_v15 }
  0x51   : > { %2164 = vmatprep.mubr.msk.f32.mxu1 %vm531_vm0, %v516_v16  ;;  %2245 = vmatpush3.bf16.msra.mxu1 %v2242_v14 }
  0x54   : > { %2165 = vmatmul.mubr.msk.f32.gmra.mrb[4].mxu1 %vm531_vm0, %v517_v17 }
  0x55   : > { %2167 = vmatprep.mubr.msk.f32.mxu1 %vm531_vm0, %v518_v18 }
  0x58   : > { %2168 = vmatmul.mubr.msk.f32.gmra.mrb[6].mxu1 %vm531_vm0, %v519_v19 }
  0x59   : > { %2178 = vmatprep.mubr.msk.f32.mxu1 %vm531_vm0, %v512_v5 }
  0x5c   : > { %2179 = vmatmul.mubr.msk.f32.vlgmr.msra.gmra.mrb[8].mxu1 %vm531_vm0, %v513_v12 }
  0x5d   : > { %2181 = vmatprep.mubr.msk.f32.mxu1 %vm531_vm0, %v514_v13 }
  0x60   : > { %2182 = vmatmul.mubr.msk.f32.gmra.mrb[10].mxu1 %vm531_vm0, %v515_v15 }
  0x61   : > { %2184 = vmatprep.mubr.msk.f32.mxu1 %vm531_vm0, %v516_v16 }
  0x64   : > { %2185 = vmatmul.mubr.msk.f32.gmra.mrb[12].mxu1 %vm531_vm0, %v517_v17 }
  0x65   : > { %2187 = vmatprep.mubr.msk.f32.mxu1 %vm531_vm0, %v518_v18 }
  0x68   : > { %2188 = vmatmul.mubr.msk.f32.gmra.mrb[14].mxu1 %vm531_vm0, %v519_v19 }
 0x11f   : > { %v2160_v21 = vpop.f32.mrb[0].mxu1 }
 0x120   : > { %v2763_v22 = vadd.f32 %v2160_v21, %v2039_v20  ;;  %v622_v23 = vpop.f32.mrb[1].mxu1 }
 0x121   : > { %v2765_v24 = vadd.f32 %v2039_v20, %v622_v23 }
 0x122   : > { %v2066_v25 = vmul.f32 -1.442695, %v2763_v22 }
 0x123   : > { %v2065_v26 = vmul.f32 -1.442695, %v2765_v24  ;;  %v2163_v27 = vpop.f32.mrb[2].mxu1 }
 0x124   : > { %2325 = vpow2.f32 %v2066_v25  ;;  %v2769_v28 = vadd.f32 %v2163_v27, %v2039_v20  ;;  %v632_v29 = vpop.f32.mrb[3].mxu1 }
 0x125   : > { %2327 = vpow2.f32 %v2065_v26  ;;  %v2771_v30 = vadd.f32 %v2039_v20, %v632_v29 }
 0x126   : > { %v2068_v31 = vmul.f32 -1.442695, %v2769_v28 }
 0x127   : > { %v2067_v32 = vmul.f32 -1.442695, %v2771_v30  ;;  %v2166_v33 = vpop.f32.mrb[4].mxu1 }
 0x128   : > { %2329 = vpow2.f32 %v2068_v31  ;;  %v2775_v34 = vadd.f32 %v2166_v33, %v2039_v20  ;;  %v642_v35 = vpop.f32.mrb[5].mxu1 }
 0x129   : > { %2331 = vpow2.f32 %v2067_v32  ;;  %v2777_v36 = vadd.f32 %v2039_v20, %v642_v35 }
 0x12a   : > { %v2070_v37 = vmul.f32 -1.442695, %v2775_v34 }
 0x12b   : > { %v2069_v38 = vmul.f32 -1.442695, %v2777_v36  ;;  %v2169_v39 = vpop.f32.mrb[6].mxu1 }
 0x12c   : > { %2333 = vpow2.f32 %v2070_v37  ;;  %v2781_v40 = vadd.f32 %v2169_v39, %v2039_v20  ;;  %v652_v41 = vpop.f32.mrb[7].mxu1 }
 0x12d   : > { %v2783_v42 = vadd.f32 %v2039_v20, %v652_v41  ;;  %2335 = vpow2.f32 %v2069_v38 }
 0x12e   : > { %v2326_v44 = vpop.eup %2325  ;;  %v2072_v45 = vmul.f32 -1.442695, %v2781_v40 }
 0x12f   : > { %v2328_v46 = vpop.eup %2327  ;;  %v850_v47 = vadd.f32 1.0, %v2326_v44  ;;  %v2071_v48 = vmul.f32 -1.442695, %v2783_v42  ;;  %v2180_v49 = vpop.f32.mrb[8].mxu1 }
 0x130   : > { %2337 = vpow2.f32 %v2072_v45  ;;  %v744_v50 = vadd.f32 %v2180_v49, %v2048_v43  ;;  %v738_v51 = vpop.f32.mrb[9].mxu1  ;;  %v849_v52 = vadd.f32 1.0, %v2328_v46 }
 0x131   : > { %v739_v53 = vadd.f32 %v2048_v43, %v738_v51  ;;  %2339 = vrcp.f32 %v850_v47 }
 0x132   : > { %v2330_v54 = vpop.eup %2329  ;;  %v2058_v55 = vmul.f32 -1.442695, %v744_v50  ;;  %2341 = vpow2.f32 %v2071_v48 }
 0x133   : > { %v2332_v56 = vpop.eup %2331  ;;  %v852_v57 = vadd.f32 1.0, %v2330_v54  ;;  %v2057_v58 = vmul.f32 -1.442695, %v739_v53  ;;  %v2183_v59 = vpop.f32.mrb[10].mxu1 }
 0x134   : > { %2343 = vpow2.f32 %v2058_v55  ;;  %v754_v60 = vadd.f32 %v2183_v59, %v2048_v43  ;;  %v748_v61 = vpop.f32.mrb[11].mxu1  ;;  %v851_v0 = vadd.f32 1.0, %v2332_v56 }
 0x135   : > { %2345 = vrcp.f32 %v849_v52  ;;  %v749_v62 = vadd.f32 %v2048_v43, %v748_v61 }
 0x136   : > { %v2334_v63 = vpop.eup %2333  ;;  %2347 = vrcp.f32 %v852_v57  ;;  %v2060_v1 = vmul.f32 -1.442695, %v754_v60 }
 0x137   : > { %v854_v2 = vadd.f32 1.0, %v2334_v63  ;;  %2349 = vpow2.f32 %v2057_v58  ;;  %v2059_v3 = vmul.f32 -1.442695, %v749_v62  ;;  %v2186_v4 = vpop.f32.mrb[12].mxu1  ;;  %v2336_v5 = vpop.eup %2335 }
 0x138   : > { %2351 = vpow2.f32 %v2060_v1  ;;  %v764_v6 = vadd.f32 %v2186_v4, %v2048_v43  ;;  %v758_v7 = vpop.f32.mrb[13].mxu1  ;;  %v853_v11 = vadd.f32 1.0, %v2336_v5  ;;  %v2872_v4 = vld [vmem:[%s3458_s6] ss:$0 sm:$0xff] }
 0x139   : > { %2353 = vrcp.f32 %v854_v2  ;;  %v759_v8 = vadd.f32 %v2048_v43, %v758_v7 }
 0x13a   : > { %v2338_v9 = vpop.eup %2337  ;;  %2355 = vrcp.f32 %v851_v0  ;;  %v2062_v10 = vmul.f32 -1.442695, %v764_v6 }
 0x13b   : > { %v856_v12 = vadd.f32 1.0, %v2338_v9  ;;  %2357 = vpow2.f32 %v2059_v3  ;;  %v2061_v13 = vmul.f32 -1.442695, %v759_v8  ;;  %v2189_v14 = vpop.f32.mrb[14].mxu1  ;;  %v2340_v15 = vpop.eup %2339  ;;  %v2867_v3 = vld [vmem:[%s3457_s5] ss:$0 sm:$0xff] }
 0x13c   : > { %2359 = vpow2.f32 %v2062_v10  ;;  %v774_v16 = vadd.f32 %v2189_v14, %v2048_v43  ;;  %v768_v17 = vpop.f32.mrb[15].mxu1  ;;  %v2342_v18 = vpop.eup %2341  ;;  %v2888_v8 = vld [vmem:[%s3459_s7] ss:$0 sm:$0xff] }
 0x13d   : > { %2361 = vrcp.f32 %v856_v12  ;;  %v769_v19 = vadd.f32 %v2048_v43, %v768_v17  ;;  %v855_v21 = vadd.f32 1.0, %v2342_v18  ;;  %v2893_v9 = vld [vmem:[%s3460_s8] ss:$0 sm:$0xff] }
 0x13e   : > { %v2344_v20 = vpop.eup %2343  ;;  %2363 = vpow2.f32 %v2061_v13  ;;  %v2064_v23 = vmul.f32 -1.442695, %v774_v16 }
 0x13f   : > { %v2346_v25 = vpop.eup %2345  ;;  %2365 = vrcp.f32 %v853_v11  ;;  %v802_v26 = vadd.f32 1.0, %v2344_v20  ;;  %v2063_v27 = vmul.f32 -1.442695, %v769_v19 }
 0x140   : > { %v2348_v29 = vpop.eup %2347  ;;  %2367 = vrcp.f32 %v855_v21  ;;  %v2796_v48 = vmul.f32 %v2346_v25, %v2765_v24  ;;  %v2808_v24 = vmul.f32 %v2340_v15, %v2763_v22 }
 0x141   : > { %v2350_v31 = vpop.eup %2349  ;;  %2369 = vrcp.f32 %v802_v26  ;;  %v2828_v59 = vmul.f32 %v2348_v29, %v2769_v28 }
 0x142   : > { %v2352_v32 = vpop.eup %2351  ;;  %v801_v33 = vadd.f32 1.0, %v2350_v31  ;;  %2371 = vpow2.f32 %v2064_v23 }
 0x143   : > { %v2354_v35 = vpop.eup %2353  ;;  %v804_v37 = vadd.f32 1.0, %v2352_v32  ;;  %2373 = vpow2.f32 %v2063_v27 }
 0x144   : > { %v2356_v38 = vpop.eup %2355  ;;  %v2791_v39 = vmul.f32 %v2354_v35, %v2775_v34  ;;  %2375 = vrcp.f32 %v801_v33 }
 0x145   : > { %v2358_v41 = vpop.eup %2357  ;;  %2377 = vrcp.f32 %v804_v37  ;;  %v2834_v61 = vmul.f32 %v2356_v38, %v2771_v30 }
 0x146   : > { %v2360_v43 = vpop.eup %2359  ;;  %v803_v44 = vadd.f32 1.0, %v2358_v41  ;;  %931 = vrot.lane.b32.xlu1 %v2791_v39, %s2507_s18 }
 0x147   : > { %v2362_v45 = vpop.eup %2361  ;;  %v806_v46 = vadd.f32 1.0, %v2360_v43 }
 0x148   : > { %v2364_v47 = vpop.eup %2363  ;;  %v2799_v49 = vmul.f32 %v2362_v45, %v2781_v40  ;;  %2379 = vrcp.f32 %v803_v44 }
 0x149   : > { %v2366_v34 = vpop.eup %2365  ;;  %2381 = vrcp.f32 %v806_v46  ;;  %v805_v50 = vadd.f32 1.0, %v2364_v47 }
 0x14a   : > { %v2368_v51 = vpop.eup %2367  ;;  %935 = vrot.lane.b32.xlu0 %v2799_v49, %s2507_s18  ;;  %921 = vrot.lane.b32.xlu1 %v2796_v48, %s2507_s18  ;;  %v2837_v62 = vmul.f32 %v2366_v34, %v2777_v36 }
 0x14b   : > { %v2805_v52 = vpop.eup %2369  ;;  %2383 = vrcp.f32 %v805_v50  ;;  %v2811_v40 = vmul.f32 %v2368_v51, %v2783_v42 }
 0x14c   : > { %v2372_v53 = vpop.eup %2371  ;;  %882 = vst.msk [vmem:[#allocation2 + $0x8] sm:$0xff] %vm531_vm0, %v2805_v52  ;;  %v890_v54 = vsub.f32 1.0, %v2805_v52 }
 0x14d   : > { %v2374_v55 = vpop.eup %2373  ;;  %v808_v56 = vadd.f32 1.0, %v2372_v53 }
 0x14e   : > { %v2816_v57 = vpop.eup %2375  ;;  %v807_v58 = vadd.f32 1.0, %v2374_v55  ;;  %933 = vrot.lane.b32.xlu0 %v2811_v40, %s2507_s18  ;;  %923 = vrot.lane.b32.xlu1 %v2808_v24, %s2507_s18  ;;  %v898_v22 = vmul.f32 %v890_v54, %v2808_v24 }
 0x14f   : > { %v2825_v42 = vpop.eup %2377  ;;  %881 = vst.msk [vmem:[#allocation2] sm:$0xff] %vm531_vm0, %v2816_v57  ;;  %2385 = vrcp.f32 %v808_v56  ;;  %v889_v60 = vsub.f32 1.0, %v2816_v57 }
 0x150   : > { %884 = vst.msk [vmem:[#allocation2 + $0x18] sm:$0xff] %vm531_vm0, %v2825_v42  ;;  %2387 = vrcp.f32 %v807_v58  ;;  %906 = vst.msk [vmem:[#allocation3 + $0x8] sm:$0xff] %vm531_vm0, %v898_v22  ;;  %v892_v28 = vsub.f32 1.0, %v2825_v42 }
 0x151   : > { %v897_v63 = vmul.f32 %v889_v60, %v2796_v48 }
 0x152   : > { %v2846_v0 = vpop.eup %2379  ;;  %929 = vrot.lane.b32.xlu0 %v2837_v62, %s2507_s18  ;;  %925 = vrot.lane.b32.xlu1 %v2834_v61, %s2507_s18  ;;  %v900_v30 = vmul.f32 %v892_v28, %v2828_v59 }
 0x153   : > { %v2855_v36 = vpop.eup %2381  ;;  %883 = vst.msk [vmem:[#allocation2 + $0x10] sm:$0xff] %vm531_vm0, %v2846_v0  ;;  %905 = vst.msk [vmem:[#allocation3] sm:$0xff] %vm531_vm0, %v897_v63  ;;  %v891_v1 = vsub.f32 1.0, %v2846_v0  ;;  %v2898_v14 = vld [vmem:[#allocation2 + $0x8] sm:$0xff] }
 0x154   : > { %886 = vst.msk [vmem:[#allocation2 + $0x28] sm:$0xff] %vm531_vm0, %v2855_v36  ;;  %v894_v2 = vsub.f32 1.0, %v2855_v36  ;;  %908 = vst.msk [vmem:[#allocation3 + $0x18] sm:$0xff] %vm531_vm0, %v900_v30  ;;  %v1073_v25 = vmul.f32 %v2872_v4, %v2898_v14  ;;  %v1072_v31 = vmul.f32 %v2867_v3, %v2898_v14 }
 0x155   : > { %v2875_v5 = vpop.eup %2383  ;;  %v899_v6 = vmul.f32 %v891_v1, %v2834_v61 }
 0x156   : > { %885 = vst.msk [vmem:[#allocation2 + $0x20] sm:$0xff] %vm531_vm0, %v2875_v5  ;;  %927 = vrot.lane.b32.xlu0 %v2828_v59, %s2507_s18  ;;  %v902_v7 = vmul.f32 %v894_v2, %v2791_v39  ;;  %v1053_v10 = vld [vmem:[#allocation2] sm:$0xff]  ;;  %v893_v11 = vsub.f32 1.0, %v2875_v5 }
 0x157   : > { %v1056_v12 = vmul.f32 %v2867_v3, %v1053_v10  ;;  %v1057_v13 = vmul.f32 %v2872_v4, %v1053_v10  ;;  %907 = vst.msk [vmem:[#allocation3 + $0x10] sm:$0xff] %vm531_vm0, %v899_v6  ;;  %v2902_v15 = vmul.f32 %v2888_v8, %v1053_v10  ;;  %v2905_v16 = vmul.f32 %v2893_v9, %v1053_v10 }
 0x158   : > { %910 = vst.msk [vmem:[#allocation3 + $0x28] sm:$0xff] %vm531_vm0, %v902_v7  ;;  %v901_v17 = vmul.f32 %v893_v11, %v2837_v62 }
 0x159   : > { %v2386_v18 = vpop.eup %2385  ;;  %v1058_v19 = vmul.f32 0.0, %v1056_v12  ;;  %v1059_v20 = vmul.f32 0.0, %v1057_v13 }
 0x15a   : > { %v2388_v21 = vpop.eup %2387  ;;  %888 = vst.msk [vmem:[#allocation2 + $0x38] sm:$0xff] %vm531_vm0, %v2386_v18  ;;  %v896_v23 = vsub.f32 1.0, %v2386_v18  ;;  %909 = vst.msk [vmem:[#allocation3 + $0x20] sm:$0xff] %vm531_vm0, %v901_v17  ;;  %v2919_v33 = vld [vmem:[#allocation3] sm:$0xff] }
 0x15b   : > { %887 = vst.msk [vmem:[#allocation2 + $0x30] sm:$0xff] %vm531_vm0, %v2388_v21  ;;  %v1060_v26 = vsub.f32 %v1058_v19, %v1059_v20  ;;  %v1062_v27 = vadd.f32 %v1059_v20, %v1058_v19  ;;  %v895_v29 = vsub.f32 1.0, %v2388_v21 }
 0x15c   : > { %v904_v32 = vmul.f32 %v896_v23, %v2799_v49 }
 0x15d   : > { %v1061_v35 = vadd.f32 %v1060_v26, %v2919_v33  ;;  %v903_v37 = vmul.f32 %v895_v29, %v2811_v40 }
 0x15e   : > { %912 = vst.msk [vmem:[#allocation3 + $0x38] sm:$0xff] %vm531_vm0, %v904_v32 }
 0x15f   : > { %1064 = vst.msk [vmem:[#allocation5] sm:$0xff] %vm531_vm0, %v1061_v35  ;;  %911 = vst.msk [vmem:[#allocation3 + $0x30] sm:$0xff] %vm531_vm0, %v903_v37  ;;  %v1078_v38 = vmul.f32 %v1073_v25, %v1061_v35  ;;  %v2926_v41 = vmul.f32 %v1072_v31, %v1061_v35 }
 0x161   : > { %v1206_v43 = vld [vmem:[#allocation2 + $0x38] sm:$0xff] }
 0x162   : > { %v1209_v44 = vmul.f32 %v2888_v8, %v1206_v43  ;;  %v1210_v45 = vmul.f32 %v2893_v9, %v1206_v43  ;;  %v2931_v46 = vmul.f32 %v2867_v3, %v1206_v43  ;;  %v2934_v47 = vmul.f32 %v2872_v4, %v1206_v43  ;;  %v2936_v34 = vld [vmem:[#allocation2 + $0x30] sm:$0xff] }
 0x163   : > { %v1223_v56 = vmul.f32 %v2893_v9, %v2936_v34  ;;  %v1222_v58 = vmul.f32 %v2888_v8, %v2936_v34 }
 0x164   : > { %v1211_v50 = vmul.f32 0.0, %v1209_v44  ;;  %v1212_v51 = vmul.f32 0.0, %v1210_v45  ;;  %v2973_v44 = vld [vmem:[#allocation3 + $0x8] sm:$0xff] }
 0x165   : > { %v2942_v22 = vld [vmem:[#allocation3 + $0x38] sm:$0xff] }
 0x166   : > { %v1213_v53 = vsub.f32 %v1211_v50, %v1212_v51  ;;  %v1215_v55 = vadd.f32 %v1212_v51, %v1211_v50  ;;  %v2975_v50 = vld [vmem:[#allocation2 + $0x10] sm:$0xff] }
 0x168   : > { %v1214_v63 = vadd.f32 %v1213_v53, %v2942_v22 }
 0x16a   : > { %1217 = vst.msk [vmem:[#allocation3 + $0x38] sm:$0xff] %vm531_vm0, %v1214_v63  ;;  %v1224_v30 = vmul.f32 %v1222_v58, %v1214_v63  ;;  %v1228_v36 = vmul.f32 %v1223_v56, %v1214_v63  ;;  %v1093_v63 = vmul.f32 %v2872_v4, %v2975_v50 }
 0x1b8   : > { %v932_v6 = vpop.permute.xlu1 %931 }
 0x1b9   : > { %v950_v7 = vmul.f32 %v932_v6, %v894_v2 }
 0x1bb   : > { %958 = vst.msk [vmem:[#allocation4 + $0x28] sm:$0xff] %vm531_vm0, %v950_v7 }
 0x1bc   : > { %v936_v10 = vpop.permute.xlu0 %935  ;;  %v922_v12 = vpop.permute.xlu1 %921 }
 0x1bd   : > { %v952_v13 = vmul.f32 %v936_v10, %v896_v23  ;;  %v945_v17 = vmul.f32 %v922_v12, %v889_v60  ;;  %v1249_v10 = vld [vmem:[#allocation2 + $0x20] sm:$0xff] }
 0x1bf   : > { %960 = vst.msk [vmem:[#allocation4 + $0x38] sm:$0xff] %vm531_vm0, %v952_v13  ;;  %953 = vst.msk [vmem:[#allocation4] sm:$0xff] %vm531_vm0, %v945_v17 }
 0x1c0   : > { %v934_v18 = vpop.permute.xlu0 %933  ;;  %v924_v19 = vpop.permute.xlu1 %923 }
 0x1c1   : > { %v951_v20 = vmul.f32 %v934_v18, %v895_v29  ;;  %v946_v21 = vmul.f32 %v924_v19, %v890_v54 }
 0x1c3   : > { %959 = vst.msk [vmem:[#allocation4 + $0x30] sm:$0xff] %vm531_vm0, %v951_v20  ;;  %954 = vst.msk [vmem:[#allocation4 + $0x8] sm:$0xff] %vm531_vm0, %v946_v21  ;;  %v1264_v21 = vld [vmem:[#allocation2 + $0x18] sm:$0xff] }
 0x1c4   : > { %v930_v2 = vpop.permute.xlu0 %929  ;;  %v926_v26 = vpop.permute.xlu1 %925 }
 0x1c5   : > { %v949_v57 = vmul.f32 %v930_v2, %v893_v11  ;;  %v947_v60 = vmul.f32 %v926_v26, %v891_v1  ;;  %v2969_v1 = vld [vmem:[#allocation2 + $0x28] sm:$0xff] }
 0x1c6   : > { %v2959_v23 = vld [vmem:[#allocation4 + $0x38] sm:$0xff]  ;;  %v2961_v32 = vld [vmem:[#allocation4] sm:$0xff]  ;;  %v1238_v53 = vmul.f32 %v2893_v9, %v2969_v1  ;;  %v3001_v2 = vld [vmem:[#allocation4 + $0x28] sm:$0xff] }
 0x1c7   : > { %v1216_v29 = vadd.f32 %v1215_v55, %v2959_v23  ;;  %v1063_v52 = vadd.f32 %v1062_v27, %v2961_v32  ;;  %957 = vst.msk [vmem:[#allocation4 + $0x20] sm:$0xff] %vm531_vm0, %v949_v57  ;;  %955 = vst.msk [vmem:[#allocation4 + $0x10] sm:$0xff] %vm531_vm0, %v947_v60  ;;  %v2982_v55 = vld [vmem:[#allocation3 + $0x30] sm:$0xff]  ;;  %v3003_v26 = vld [vmem:[#allocation3 + $0x28] sm:$0xff] }
 0x1c8   : > { %v928_v54 = vpop.permute.xlu0 %927 }
 0x1c9   : > { %1218 = vst.msk [vmem:[#allocation4 + $0x38] sm:$0xff] %vm531_vm0, %v1216_v29  ;;  %v1225_v5 = vmul.f32 %v1223_v56, %v1216_v29  ;;  %v1075_v11 = vmul.f32 %v1073_v25, %v1063_v52  ;;  %1065 = vst.msk [vmem:[#allocation6] sm:$0xff] %vm531_vm0, %v1063_v52  ;;  %v1229_v0 = vmul.f32 %v1222_v58, %v1216_v29 }
 0x1ca   : > { %v1079_v35 = vmul.f32 %v1072_v31, %v1063_v52  ;;  %v948_v37 = vmul.f32 %v928_v54, %v892_v28  ;;  %v1237_v25 = vmul.f32 %v2888_v8, %v2969_v1  ;;  %v2984_v31 = vld [vmem:[#allocation4 + $0x30] sm:$0xff]  ;;  %v2986_v42 = vld [vmem:[#allocation4 + $0x8] sm:$0xff]  ;;  %v1092_v58 = vmul.f32 %v2867_v3, %v2975_v50 }
 0x1cb   : > { %v1226_v43 = vsub.f32 %v1224_v30, %v1225_v5  ;;  %v1230_v27 = vadd.f32 %v1229_v0, %v1228_v36  ;;  %v1076_v51 = vsub.f32 %v2926_v41, %v1075_v11  ;;  %v1252_v54 = vmul.f32 %v2888_v8, %v1249_v10  ;;  %v3009_v11 = vld [vmem:[#allocation3 + $0x10] sm:$0xff] }
 0x1cc   : > { %v1080_v45 = vadd.f32 %v1079_v35, %v1078_v38  ;;  %956 = vst.msk [vmem:[#allocation4 + $0x18] sm:$0xff] %vm531_vm0, %v948_v37  ;;  %v1253_v5 = vmul.f32 %v2893_v9, %v1249_v10  ;;  %v1112_v35 = vmul.f32 %v2867_v3, %v1264_v21  ;;  %v1113_v37 = vmul.f32 %v2872_v4, %v1264_v21 }
 0x1cd   : > { %v1227_v28 = vadd.f32 %v1226_v43, %v2982_v55  ;;  %v1231_v38 = vadd.f32 %v1230_v27, %v2984_v31  ;;  %v1077_v56 = vadd.f32 %v1076_v51, %v2973_v44 }
 0x1ce   : > { %v1081_v41 = vadd.f32 %v1080_v45, %v2986_v42  ;;  %v3011_v0 = vld [vmem:[#allocation4 + $0x10] sm:$0xff] }
 0x1cf   : > { %1232 = vst.msk [vmem:[#allocation3 + $0x30] sm:$0xff] %vm531_vm0, %v1227_v28  ;;  %1233 = vst.msk [vmem:[#allocation4 + $0x30] sm:$0xff] %vm531_vm0, %v1231_v38  ;;  %v1239_v30 = vmul.f32 %v1237_v25, %v1227_v28  ;;  %v1240_v36 = vmul.f32 %v1238_v53, %v1231_v38  ;;  %v1243_v6 = vmul.f32 %v1238_v53, %v1227_v28 }
 0x1d0   : > { %v1244_v7 = vmul.f32 %v1237_v25, %v1231_v38  ;;  %1085 = vst.msk [vmem:[#allocation6 + $0x8] sm:$0xff] %vm531_vm0, %v1081_v41  ;;  %1083 = vst.msk [vmem:[#allocation5 + $0x8] sm:$0xff] %vm531_vm0, %v1077_v56  ;;  %v1094_v12 = vmul.f32 %v1092_v58, %v1077_v56  ;;  %v1095_v13 = vmul.f32 %v1093_v63, %v1081_v41 }
 0x1d1   : > { %v1098_v17 = vmul.f32 %v1093_v63, %v1077_v56  ;;  %v1099_v18 = vmul.f32 %v1092_v58, %v1081_v41  ;;  %v1241_v19 = vsub.f32 %v1239_v30, %v1240_v36  ;;  %v1129_v30 = vld [vmem:[#allocation3 + $0x20] sm:$0xff] }
 0x1d2   : > { %v1245_v20 = vadd.f32 %v1244_v7, %v1243_v6  ;;  %v1096_v57 = vsub.f32 %v1094_v12, %v1095_v13  ;;  %v1131_v36 = vld [vmem:[#allocation4 + $0x20] sm:$0xff]  ;;  %v1268_v12 = vmul.f32 %v2893_v9, %v1264_v21 }
 0x1d3   : > { %v1100_v60 = vadd.f32 %v1099_v18, %v1098_v17  ;;  %v1242_v29 = vadd.f32 %v1241_v19, %v3003_v26  ;;  %v1109_v18 = vld [vmem:[#allocation3 + $0x18] sm:$0xff]  ;;  %v1267_v19 = vmul.f32 %v2888_v8, %v1264_v21 }
 0x1d4   : > { %v1246_v52 = vadd.f32 %v1245_v20, %v3001_v2  ;;  %v1097_v43 = vadd.f32 %v1096_v57, %v3009_v11  ;;  %v1111_v20 = vld [vmem:[#allocation4 + $0x18] sm:$0xff]  ;;  %v1132_v57 = vmul.f32 %v2867_v3, %v1249_v10 }
 0x1d5   : > { %v1101_v27 = vadd.f32 %v1100_v60, %v3011_v0  ;;  %v1254_v45 = vmul.f32 %v1252_v54, %v1242_v29  ;;  %v1258_v25 = vmul.f32 %v1253_v5, %v1242_v29  ;;  %1247 = vst.msk [vmem:[#allocation3 + $0x28] sm:$0xff] %vm531_vm0, %v1242_v29  ;;  %v1133_v60 = vmul.f32 %v2872_v4, %v1249_v10 }
 0x1d6   : > { %v1255_v51 = vmul.f32 %v1253_v5, %v1246_v52  ;;  %v1259_v53 = vmul.f32 %v1252_v54, %v1246_v52  ;;  %1248 = vst.msk [vmem:[#allocation4 + $0x28] sm:$0xff] %vm531_vm0, %v1246_v52  ;;  %v1114_v28 = vmul.f32 %v1112_v35, %v1097_v43  ;;  %v1118_v41 = vmul.f32 %v1113_v37, %v1097_v43 }
 0x1d7   : > { %v1115_v38 = vmul.f32 %v1113_v37, %v1101_v27  ;;  %v1119_v56 = vmul.f32 %v1112_v35, %v1101_v27  ;;  %1103 = vst.msk [vmem:[#allocation5 + $0x10] sm:$0xff] %vm531_vm0, %v1097_v43  ;;  %1105 = vst.msk [vmem:[#allocation6 + $0x10] sm:$0xff] %vm531_vm0, %v1101_v27 }
 0x1d8   : > { %v1256_v58 = vsub.f32 %v1254_v45, %v1255_v51  ;;  %v1260_v63 = vadd.f32 %v1259_v53, %v1258_v25 }
 0x1d9   : > { %v1116_v6 = vsub.f32 %v1114_v28, %v1115_v38  ;;  %v1120_v7 = vadd.f32 %v1119_v56, %v1118_v41  ;;  %v1282_v28 = vmul.f32 %v2888_v8, %v2975_v50  ;;  %v1283_v38 = vmul.f32 %v2893_v9, %v2975_v50 }
 0x1da   : > { %v1257_v13 = vadd.f32 %v1256_v58, %v1129_v30  ;;  %v1261_v17 = vadd.f32 %v1260_v63, %v1131_v36  ;;  %v1152_v58 = vmul.f32 %v2867_v3, %v2969_v1  ;;  %v1153_v63 = vmul.f32 %v2872_v4, %v2969_v1 }
 0x1db   : > { %v1117_v29 = vadd.f32 %v1116_v6, %v1109_v18  ;;  %v1121_v52 = vadd.f32 %v1120_v7, %v1111_v20 }
 0x1dc   : > { %1262 = vst.msk [vmem:[#allocation3 + $0x20] sm:$0xff] %vm531_vm0, %v1257_v13  ;;  %1263 = vst.msk [vmem:[#allocation4 + $0x20] sm:$0xff] %vm531_vm0, %v1261_v17  ;;  %v1270_v54 = vmul.f32 %v1268_v12, %v1261_v17  ;;  %v1274_v5 = vmul.f32 %v1267_v19, %v1261_v17  ;;  %v1269_v35 = vmul.f32 %v1267_v19, %v1257_v13 }
 0x1dd   : > { %v1273_v37 = vmul.f32 %v1268_v12, %v1257_v13  ;;  %1123 = vst.msk [vmem:[#allocation5 + $0x18] sm:$0xff] %vm531_vm0, %v1117_v29  ;;  %1125 = vst.msk [vmem:[#allocation6 + $0x18] sm:$0xff] %vm531_vm0, %v1121_v52  ;;  %v1134_v21 = vmul.f32 %v1132_v57, %v1117_v29  ;;  %v1135_v43 = vmul.f32 %v1133_v60, %v1121_v52 }
 0x1de   : > { %v1138_v27 = vmul.f32 %v1133_v60, %v1117_v29  ;;  %v1139_v45 = vmul.f32 %v1132_v57, %v1121_v52  ;;  %v1271_v51 = vsub.f32 %v1269_v35, %v1270_v54  ;;  %v1297_v29 = vmul.f32 %v2888_v8, %v2898_v14 }
 0x1df   : > { %v1275_v10 = vadd.f32 %v1274_v5, %v1273_v37  ;;  %v1136_v25 = vsub.f32 %v1134_v21, %v1135_v43  ;;  %v1298_v52 = vmul.f32 %v2893_v9, %v2898_v14  ;;  %v1172_v35 = vmul.f32 %v2867_v3, %v2936_v34 }
 0x1e0   : > { %v1140_v53 = vadd.f32 %v1139_v45, %v1138_v27  ;;  %v1272_v41 = vadd.f32 %v1271_v51, %v1109_v18  ;;  %v1173_v43 = vmul.f32 %v2872_v4, %v2936_v34 }
 0x1e1   : > { %v1276_v56 = vadd.f32 %v1275_v10, %v1111_v20  ;;  %v1137_v6 = vadd.f32 %v1136_v25, %v1129_v30 }
 0x1e2   : > { %v1141_v7 = vadd.f32 %v1140_v53, %v1131_v36  ;;  %1277 = vst.msk [vmem:[#allocation3 + $0x18] sm:$0xff] %vm531_vm0, %v1272_v41  ;;  %v1284_v12 = vmul.f32 %v1282_v28, %v1272_v41  ;;  %v1288_v17 = vmul.f32 %v1283_v38, %v1272_v41 }
 0x1e3   : > { %1278 = vst.msk [vmem:[#allocation4 + $0x18] sm:$0xff] %vm531_vm0, %v1276_v56  ;;  %v1285_v13 = vmul.f32 %v1283_v38, %v1276_v56  ;;  %v1289_v19 = vmul.f32 %v1282_v28, %v1276_v56  ;;  %v1154_v57 = vmul.f32 %v1152_v58, %v1137_v6  ;;  %v1158_v18 = vmul.f32 %v1153_v63, %v1137_v6  ;;  %v1336_v25 = vld [vmem:[#allocation3 + $0x20] sm:$0xff] }
 0x1e4   : > { %v1155_v50 = vmul.f32 %v1153_v63, %v1141_v7  ;;  %v1159_v20 = vmul.f32 %v1152_v58, %v1141_v7  ;;  %1143 = vst.msk [vmem:[#allocation5 + $0x20] sm:$0xff] %vm531_vm0, %v1137_v6  ;;  %1145 = vst.msk [vmem:[#allocation6 + $0x20] sm:$0xff] %vm531_vm0, %v1141_v7  ;;  %v1351_v14 = vld [vmem:[#allocation6 + $0x18] sm:$0xff] }
 0x1e5   : > { %v1286_v60 = vsub.f32 %v1284_v12, %v1285_v13  ;;  %v1290_v1 = vadd.f32 %v1289_v19, %v1288_v17  ;;  %v1327_v6 = vld [vmem:[#allocation5 + $0x18] sm:$0xff] }
 0x1e6   : > { %v1156_v30 = vsub.f32 %v1154_v57, %v1155_v50  ;;  %v1160_v36 = vadd.f32 %v1159_v20, %v1158_v18  ;;  %v1350_v50 = vld [vmem:[#allocation6 + $0x10] sm:$0xff] }
 0x1e7   : > { %v1287_v54 = vadd.f32 %v1286_v60, %v3009_v11  ;;  %v1291_v5 = vadd.f32 %v1290_v1, %v3011_v0 }
 0x1e8   : > { %v1161_v37 = vadd.f32 %v1160_v36, %v3001_v2  ;;  %v1157_v21 = vadd.f32 %v3003_v26, %v1156_v30  ;;  %v1326_v36 = vld [vmem:[#allocation5 + $0x10] sm:$0xff] }
 0x1e9   : > { %v1299_v27 = vmul.f32 %v1297_v29, %v1287_v54  ;;  %v1300_v45 = vmul.f32 %v1298_v52, %v1291_v5  ;;  %v1303_v8 = vmul.f32 %v1298_v52, %v1287_v54  ;;  %v1304_v51 = vmul.f32 %v1297_v29, %v1291_v5  ;;  %1292 = vst.msk [vmem:[#allocation3 + $0x10] sm:$0xff] %vm531_vm0, %v1287_v54  ;;  %v1335_v53 = vld [vmem:[#allocation3 + $0x18] sm:$0xff] }
 0x1ea   : > { %1293 = vst.msk [vmem:[#allocation4 + $0x10] sm:$0xff] %vm531_vm0, %v1291_v5  ;;  %v1179_v9 = vmul.f32 %v1172_v35, %v1161_v37  ;;  %1165 = vst.msk [vmem:[#allocation6 + $0x28] sm:$0xff] %vm531_vm0, %v1161_v37  ;;  %v1359_v3 = vld [vmem:[#allocation4 + $0x18] sm:$0xff]  ;;  %v1178_v2 = vmul.f32 %v1173_v43, %v1157_v21  ;;  %v1174_v26 = vmul.f32 %v1172_v35, %v1157_v21 }
 0x1eb   : > { %1163 = vst.msk [vmem:[#allocation5 + $0x28] sm:$0xff] %vm531_vm0, %v1157_v21  ;;  %v1175_v11 = vmul.f32 %v1173_v43, %v1161_v37  ;;  %v1301_v0 = vsub.f32 %v1299_v27, %v1300_v45  ;;  %v1305_v4 = vadd.f32 %v1304_v51, %v1303_v8  ;;  %v3057_v34 = vadd.f32 %v1359_v3, %v1351_v14  ;;  %v1328_v10 = vld [vmem:[#allocation5 + $0x20] sm:$0xff]  ;;  %v1337_v27 = vld [vmem:[#allocation3 + $0x28] sm:$0xff]  ;;  %v1338_v3 = vld [vmem:[#allocation3 + $0x30] sm:$0xff] }
 0x1ec   : > { %v3059_v28 = vadd.f32 %v1336_v25, %v1328_v10  ;;  %v1180_v38 = vadd.f32 %v1179_v9, %v1178_v2  ;;  %v3067_v12 = vadd.f32 %v1335_v53, %v1327_v6  ;;  %v1349_v9 = vld [vmem:[#allocation6 + $0x8] sm:$0xff]  ;;  %v1339_v53 = vld [vmem:[#allocation3 + $0x38] sm:$0xff]  ;;  %v1360_v6 = vld [vmem:[#allocation4 + $0x20] sm:$0xff] }
 0x1ed   : > { %v1176_v41 = vsub.f32 %v1174_v26, %v1175_v11  ;;  %v1302_v56 = vadd.f32 %v1301_v0, %v2973_v44  ;;  %v1306_v58 = vadd.f32 %v1305_v4, %v2986_v42  ;;  %v1405_v63 = vsel %vm531_vm0, %v3057_v34, 0.0  ;;  %v1324_v0 = vld [vmem:[#allocation5] sm:$0xff] }
 0x1ee   : > { %1406 = vadd.xlane.f32.xlu0 %v1405_v63  ;;  %v1384_v7 = vsel %vm531_vm0, %v3059_v28, 0.0  ;;  %v1181_v17 = vadd.f32 %v1180_v38, %v2984_v31  ;;  %v1381_v29 = vsel %vm531_vm0, %v3067_v12, 0.0 }
 0x1ef   : > { %v1177_v13 = vadd.f32 %v1176_v41, %v2982_v55  ;;  %v1314_v19 = vmul.f32 %v2902_v15, %v1302_v56  ;;  %v1315_v44 = vmul.f32 %v2905_v16, %v1306_v58  ;;  %v1318_v42 = vmul.f32 %v2905_v16, %v1302_v56  ;;  %1307 = vst.msk [vmem:[#allocation3 + $0x8] sm:$0xff] %vm531_vm0, %v1302_v56 }
 0x1f0   : > { %v1319_v57 = vmul.f32 %v2902_v15, %v1306_v58  ;;  %1308 = vst.msk [vmem:[#allocation4 + $0x8] sm:$0xff] %vm531_vm0, %v1306_v58  ;;  %1385 = vadd.xlane.f32.xlu1 %v1384_v7  ;;  %v1334_v20 = vld [vmem:[#allocation3 + $0x10] sm:$0xff]  ;;  %v1195_v31 = vmul.f32 %v2934_v47, %v1181_v17  ;;  %1185 = vst.msk [vmem:[#allocation6 + $0x30] sm:$0xff] %vm531_vm0, %v1181_v17  ;;  %v1199_v15 = vmul.f32 %v2931_v46, %v1181_v17  ;;  %v1352_v58 = vld [vmem:[#allocation6 + $0x20] sm:$0xff] }
 0x1f1   : > { %v1358_v18 = vld [vmem:[#allocation4 + $0x10] sm:$0xff]  ;;  %1183 = vst.msk [vmem:[#allocation5 + $0x30] sm:$0xff] %vm531_vm0, %v1177_v13  ;;  %v1194_v55 = vmul.f32 %v2931_v46, %v1177_v13  ;;  %v1198_v16 = vmul.f32 %v2934_v47, %v1177_v13  ;;  %v1316_v60 = vsub.f32 %v1314_v19, %v1315_v44  ;;  %v3087_v52 = vadd.f32 %v1334_v20, %v1326_v36  ;;  %v1348_v13 = vld [vmem:[#allocation6] sm:$0xff] }
 0x1f2   : > { %v1320_v1 = vadd.f32 %v1319_v57, %v1318_v42  ;;  %v3083_v30 = vadd.f32 %v1358_v18, %v1350_v50  ;;  %v1329_v47 = vld [vmem:[#allocation5 + $0x28] sm:$0xff]  ;;  %v1368_v17 = vadd.f32 %v1360_v6, %v1352_v58 }
 0x1f3   : > { %v1196_v54 = vsub.f32 %v1194_v55, %v1195_v31  ;;  %v1200_v5 = vadd.f32 %v1199_v15, %v1198_v16  ;;  %v1317_v35 = vadd.f32 %v1316_v60, %v2919_v33  ;;  %v1378_v33 = vsel %vm531_vm0, %v3087_v52, 0.0  ;;  %v1353_v42 = vld [vmem:[#allocation6 + $0x28] sm:$0xff]  ;;  %v1362_v31 = vld [vmem:[#allocation4 + $0x30] sm:$0xff] }
 0x1f4   : > { %v1321_v37 = vadd.f32 %v1320_v1, %v2961_v32  ;;  %1382 = vadd.xlane.f32.xlu1 %v1381_v29  ;;  %v1402_v46 = vsel %vm531_vm0, %v3083_v30, 0.0  ;;  %v3099_v45 = vadd.f32 %v1337_v27, %v1329_v47  ;;  %v1325_v32 = vld [vmem:[#allocation5 + $0x8] sm:$0xff]  ;;  %v1408_v50 = vsel %vm531_vm0, %v1368_v17, 0.0  ;;  %v1363_v1 = vld [vmem:[#allocation4 + $0x38] sm:$0xff] }
 0x1f5   : > { %1403 = vadd.xlane.f32.xlu0 %v1402_v46  ;;  %v1197_v21 = vadd.f32 %v1196_v54, %v2942_v22  ;;  %v1201_v43 = vadd.f32 %v1200_v5, %v2959_v23  ;;  %1322 = vst.msk [vmem:[#allocation3] sm:$0xff] %vm531_vm0, %v1317_v35  ;;  %v1361_v57 = vld [vmem:[#allocation4 + $0x28] sm:$0xff] }
 0x1f6   : > { %1323 = vst.msk [vmem:[#allocation4] sm:$0xff] %vm531_vm0, %v1321_v37  ;;  %v1333_v8 = vld [vmem:[#allocation3 + $0x8] sm:$0xff]  ;;  %v1387_v26 = vsel %vm531_vm0, %v3099_v45, 0.0  ;;  %v1369_v18 = vadd.f32 %v1361_v57, %v1353_v42 }
 0x1f7   : > { %v1357_v51 = vld [vmem:[#allocation4 + $0x8] sm:$0xff]  ;;  %1203 = vst.msk [vmem:[#allocation5 + $0x38] sm:$0xff] %vm531_vm0, %v1197_v21  ;;  %1205 = vst.msk [vmem:[#allocation6 + $0x38] sm:$0xff] %vm531_vm0, %v1201_v43  ;;  %v3103_v22 = vadd.f32 %v1333_v8, %v1325_v32  ;;  %v1354_v55 = vld [vmem:[#allocation6 + $0x30] sm:$0xff] }
 0x1f8   : > { %1379 = vadd.xlane.f32.xlu1 %v1378_v33  ;;  %v1330_v23 = vld [vmem:[#allocation5 + $0x30] sm:$0xff]  ;;  %v3107_v2 = vadd.f32 %v1357_v51, %v1349_v9  ;;  %v1411_v16 = vsel %vm531_vm0, %v1369_v18, 0.0  ;;  %v1370_v15 = vadd.f32 %v1362_v31, %v1354_v55 }
 0x1f9   : > { %v1375_v14 = vsel %vm531_vm0, %v3103_v22, 0.0  ;;  %v3111_v11 = vadd.f32 %v1338_v3, %v1330_v23 }
 0x1fa   : > { %1376 = vadd.xlane.f32.xlu0 %v1375_v14  ;;  %v1399_v10 = vsel %vm531_vm0, %v3107_v2, 0.0  ;;  %v1414_v36 = vsel %vm531_vm0, %v1370_v15, 0.0 }
 0x1fb   : > { %v1390_v41 = vsel %vm531_vm0, %v3111_v11, 0.0 }
 0x1fc   : > { %1388 = vadd.xlane.f32.xlu1 %v1387_v26  ;;  %v1332_v4 = vld [vmem:[#allocation3] sm:$0xff] }
 0x1fd   : > { %v3115_v38 = vadd.f32 %v1332_v4, %v1324_v0  ;;  %v1356_v63 = vld [vmem:[#allocation4] sm:$0xff] }
 0x1fe   : > { %v1331_v25 = vld [vmem:[#allocation5 + $0x38] sm:$0xff]  ;;  %1400 = vadd.xlane.f32.xlu0 %v1399_v10  ;;  %v3125_v44 = vadd.f32 %v1356_v63, %v1348_v13 }
 0x1ff   : > { %v3119_v56 = vadd.f32 %v1339_v53, %v1331_v25  ;;  %v1372_v7 = vsel %vm531_vm0, %v3115_v38, 0.0  ;;  %v1355_v60 = vld [vmem:[#allocation6 + $0x38] sm:$0xff] }
 0x200   : > { %1391 = vadd.xlane.f32.xlu1 %v1390_v41  ;;  %v1396_v20 = vsel %vm531_vm0, %v3125_v44, 0.0  ;;  %v3132_v29 = vadd.f32 %v1363_v1, %v1355_v60 }
 0x201   : > { %v1393_v19 = vsel %vm531_vm0, %v3119_v56, 0.0 }
 0x202   : > { %1373 = vadd.xlane.f32.xlu0 %v1372_v7  ;;  %v1417_v54 = vsel %vm531_vm0, %v3132_v29, 0.0 }
 0x204   : > { %1394 = vadd.xlane.f32.xlu1 %v1393_v19 }
 0x206   : > { %1409 = vadd.xlane.f32.xlu0 %v1408_v50 }
 0x208   : > { %1397 = vadd.xlane.f32.xlu1 %v1396_v20 }
 0x20a   : > { %1412 = vadd.xlane.f32.xlu0 %v1411_v16 }
 0x20e   : > { %1415 = vadd.xlane.f32.xlu0 %v1414_v36 }
 0x212   : > { %1418 = vadd.xlane.f32.xlu0 %v1417_v54 }
 0x219   : > { %993 = vrot.lane.b32.xlu1 %v2796_v48, %s2508_s15 }
 0x27b   : > { %v1407_v35 = vpop.xlane.xlu0 %1406 }
 0x27d   : > { %v1386_v5 = vpop.xlane.xlu1 %1385 }
 0x281   : > { %v1383_v37 = vpop.xlane.xlu1 %1382 }
 0x282   : > { %v1404_v46 = vpop.xlane.xlu0 %1403  ;;  %v1423_v51 = vadd.f32 %v1407_v35, %v1383_v37 }
 0x284   : > { %v1431_v26 = vmul.f32 0.015625, %v1423_v51 }
 0x285   : > { %v1380_v47 = vpop.xlane.xlu1 %1379 }
 0x286   : > { %v3149_v6 = vsub.f32 %v3057_v34, %v1431_v26  ;;  %v1422_v7 = vadd.f32 %v1404_v46, %v1380_v47  ;;  %v3158_v57 = vsub.f32 %v3067_v12, %v1431_v26 }
 0x287   : > { %v1377_v21 = vpop.xlane.xlu0 %1376 }
 0x288   : > { %v1430_v55 = vmul.f32 0.015625, %v1422_v7  ;;  %v1487_v12 = vmul.f32 %v3149_v6, %v3149_v6  ;;  %v1455_v54 = vmul.f32 %v3158_v57, %v3158_v57 }
 0x289   : > { %v1389_v43 = vpop.xlane.xlu1 %1388 }
 0x28a   : > { %v1501_v37 = vsel %vm531_vm0, %v1487_v12, 0.0  ;;  %v1469_v47 = vsel %vm531_vm0, %v1455_v54, 0.0 }
 0x28b   : > { %v1401_v27 = vpop.xlane.xlu0 %1400 }
 0x28d   : > { %v1392_v33 = vpop.xlane.xlu1 %1391 }
 0x28f   : > { %v1374_v32 = vpop.xlane.xlu0 %1373 }
 0x291   : > { %v1395_v8 = vpop.xlane.xlu1 %1394 }
 0x293   : > { %v1410_v23 = vpop.xlane.xlu0 %1409 }
 0x294   : > { %v1424_v14 = vadd.f32 %v1410_v23, %v1386_v5  ;;  %v3177_v5 = vsub.f32 %v3083_v30, %v1430_v55 }
 0x295   : > { %v1398_v9 = vpop.xlane.xlu1 %1397 }
 0x296   : > { %v1432_v3 = vmul.f32 0.015625, %v1424_v14  ;;  %v1486_v30 = vmul.f32 %v3177_v5, %v3177_v5 }
 0x297   : > { %v1413_v0 = vpop.xlane.xlu0 %1412 }
 0x298   : > { %v3139_v4 = vsub.f32 %v3059_v28, %v1432_v3  ;;  %v3141_v10 = vsub.f32 %v1368_v17, %v1432_v3  ;;  %v1425_v53 = vadd.f32 %v1413_v0, %v1389_v43 }
 0x299   : > { %v994_v25 = vpop.permute.xlu1 %993 }
 0x29a   : > { %1017 = vst.msk [vmem:[#allocation8] sm:$0xff] %vm531_vm0, %v994_v25  ;;  %v1433_v41 = vmul.f32 0.015625, %v1425_v53  ;;  %v1488_v58 = vmul.f32 %v3141_v10, %v3141_v10  ;;  %v1456_v63 = vmul.f32 %v3139_v4, %v3139_v4 }
 0x29b   : > { %v1416_v13 = vpop.xlane.xlu0 %1415 }
 0x29c   : > { %v3152_v28 = vsub.f32 %v3099_v45, %v1433_v41  ;;  %v3154_v17 = vsub.f32 %v1369_v18, %v1433_v41  ;;  %v1426_v19 = vadd.f32 %v1416_v13, %v1392_v33  ;;  %v1504_v42 = vsel %vm531_vm0, %v1488_v58, 0.0 }
 0x29d   : > { %1505 = vadd.xlane.f32.xlu0 %v1504_v42  ;;  %v1472_v50 = vsel %vm531_vm0, %v1456_v63, 0.0  ;;  %v1661_v42 = vld [vmem:[%s3465_s13 + $0x28] sm:$0xff] }
 0x29e   : > { %v1434_v20 = vmul.f32 0.015625, %v1426_v19  ;;  %1473 = vadd.xlane.f32.xlu1 %v1472_v50  ;;  %v1489_v34 = vmul.f32 %v3154_v17, %v3154_v17  ;;  %v1457_v45 = vmul.f32 %v3152_v28, %v3152_v28  ;;  %v1660_v19 = vld [vmem:[%s3465_s13 + $0x20] sm:$0xff] }
 0x29f   : > { %v1419_v18 = vpop.xlane.xlu0 %1418  ;;  %v2246_v50 = vpack.c.bf16 %v1661_v42, %v1660_v19 }
 0x2a0   : > { %v3165_v31 = vsub.f32 %v1370_v15, %v1434_v20  ;;  %v1427_v16 = vadd.f32 %v1419_v18, %v1395_v8  ;;  %v1507_v60 = vsel %vm531_vm0, %v1489_v34, 0.0  ;;  %v3171_v1 = vsub.f32 %v3111_v11, %v1434_v20  ;;  %v1662_v20 = vld [vmem:[%s3465_s13 + $0x30] sm:$0xff]  ;;  %v1663_v34 = vld [vmem:[%s3465_s13 + $0x38] sm:$0xff] }
 0x2a1   : > { %1508 = vadd.xlane.f32.xlu0 %v1507_v60  ;;  %v1475_v36 = vsel %vm531_vm0, %v1457_v45, 0.0  ;;  %v1421_v15 = vadd.f32 %v1401_v27, %v1377_v21  ;;  %v3183_v11 = vsub.f32 %v3087_v52, %v1430_v55  ;;  %v1420_v27 = vadd.f32 %v1398_v9, %v1374_v32  ;;  %2247 = vmatprep.subr.bf16.mxu0 %v2246_v50 }
 0x2a2   : > { %1476 = vadd.xlane.f32.xlu1 %v1475_v36  ;;  %v1435_v35 = vmul.f32 0.015625, %v1427_v16  ;;  %v1490_v46 = vmul.f32 %v3165_v31, %v3165_v31  ;;  %v1458_v43 = vmul.f32 %v3171_v1, %v3171_v1  ;;  %v1498_v32 = vsel %vm531_vm0, %v1486_v30, 0.0  ;;  %2249 = vmatpush3.bf16.msra.mxu0 %v2246_v50 }
 0x2a3   : > { %v1429_v21 = vmul.f32 0.015625, %v1421_v15  ;;  %v1454_v23 = vmul.f32 %v3183_v11, %v3183_v11  ;;  %v1428_v3 = vmul.f32 0.015625, %v1420_v27  ;;  %v2250_v45 = vpack.c.bf16 %v1663_v34, %v1662_v20 }
 0x2a4   : > { %v3191_v33 = vsub.f32 %v3132_v29, %v1435_v35  ;;  %v1510_v8 = vsel %vm531_vm0, %v1490_v46, 0.0  ;;  %v3195_v52 = vsub.f32 %v3119_v56, %v1435_v35  ;;  %v1478_v51 = vsel %vm531_vm0, %v1458_v43, 0.0 }
 0x2a5   : > { %1502 = vadd.xlane.f32.xlu0 %v1501_v37  ;;  %v3201_v14 = vsub.f32 %v3107_v2, %v1429_v21  ;;  %v3207_v9 = vsub.f32 %v3103_v22, %v1429_v21  ;;  %v1466_v56 = vsel %vm531_vm0, %v1454_v23, 0.0  ;;  %v3213_v0 = vsub.f32 %v3125_v44, %v1428_v3  ;;  %2251 = vmatprep.subr.bf16.mxu0 %v2250_v45 }
 0x2a6   : > { %1470 = vadd.xlane.f32.xlu1 %v1469_v47  ;;  %v1491_v29 = vmul.f32 %v3191_v33, %v3191_v33  ;;  %v1459_v26 = vmul.f32 %v3195_v52, %v3195_v52  ;;  %v3219_v53 = vsub.f32 %v3115_v38, %v1428_v3  ;;  %2253 = vmatpush3.bf16.msra.mxu0 %v2250_v45 }
 0x2a7   : > { %v1485_v25 = vmul.f32 %v3201_v14, %v3201_v14  ;;  %v1453_v41 = vmul.f32 %v3207_v9, %v3207_v9  ;;  %v1484_v44 = vmul.f32 %v3213_v0, %v3213_v0 }
 0x2a8   : > { %v1513_v2 = vsel %vm531_vm0, %v1491_v29, 0.0  ;;  %v1481_v22 = vsel %vm531_vm0, %v1459_v26, 0.0  ;;  %v1452_v7 = vmul.f32 %v3219_v53, %v3219_v53 }
 0x2a9   : > { %1511 = vadd.xlane.f32.xlu0 %v1510_v8  ;;  %v1495_v58 = vsel %vm531_vm0, %v1485_v25, 0.0  ;;  %v1463_v63 = vsel %vm531_vm0, %v1453_v41, 0.0  ;;  %v1492_v38 = vsel %vm531_vm0, %v1484_v44, 0.0 }
 0x2aa   : > { %1479 = vadd.xlane.f32.xlu1 %v1478_v51  ;;  %v1460_v13 = vsel %vm531_vm0, %v1452_v7, 0.0 }
 0x2ad   : > { %1499 = vadd.xlane.f32.xlu0 %v1498_v32 }
 0x2ae   : > { %1467 = vadd.xlane.f32.xlu1 %v1466_v56 }
 0x2b1   : > { %1514 = vadd.xlane.f32.xlu0 %v1513_v2 }
 0x2b2   : > { %1482 = vadd.xlane.f32.xlu1 %v1481_v22 }
 0x2b5   : > { %1496 = vadd.xlane.f32.xlu0 %v1495_v58 }
 0x2b6   : > { %1464 = vadd.xlane.f32.xlu1 %v1463_v63 }
 0x2b9   : > { %1493 = vadd.xlane.f32.xlu0 %v1492_v38 }
 0x2ba   : > { %1461 = vadd.xlane.f32.xlu1 %v1460_v13 }
 0x2cb   : > { %997 = vrot.lane.b32.xlu1 %v2834_v61, %s2508_s15 }
 0x2cf   : > { %999 = vrot.lane.b32.xlu1 %v2828_v59, %s2508_s15  ;;  %995 = vrot.lane.b32.xlu0 %v2808_v24, %s2508_s15 }
 0x2d3   : > { %1003 = vrot.lane.b32.xlu1 %v2791_v39, %s2508_s15  ;;  %1001 = vrot.lane.b32.xlu0 %v2837_v62, %s2508_s15 }
 0x2d7   : > { %1007 = vrot.lane.b32.xlu1 %v2799_v49, %s2508_s15  ;;  %1005 = vrot.lane.b32.xlu0 %v2811_v40, %s2508_s15  ;;  %s3490_s15 = sld [smem:[#allocation19_spill]] }
 0x2db   : > { %963 = vrot.lane.b32.xlu1 %v2808_v24, %s2509_s25  ;;  %961 = vrot.lane.b32.xlu0 %v2796_v48, %s2509_s25  ;;  %v1656_v48 = vld [vmem:[%s3465_s13] sm:$0xff]  ;;  %v1657_v24 = vld [vmem:[%s3465_s13 + $0x8] sm:$0xff] }
 0x2dc   : > { %v3268_v55 = vpack.c.bf16 %v1657_v24, %v1656_v48 }
 0x2dd   : > { %p3492_p11 = scmp.ne.s32.totalorder %s3490_s15, 0 }
 0x2de   : > { %2255 = vmatprep.subr.bf16.mxu0 %v3268_v55 }
 0x2df   : > { %967 = vrot.lane.b32.xlu1 %v2828_v59, %s2509_s25  ;;  %965 = vrot.lane.b32.xlu0 %v2834_v61, %s2509_s25 }
 0x2e3   : > { %971 = vrot.lane.b32.xlu1 %v2791_v39, %s2509_s25  ;;  %969 = vrot.lane.b32.xlu0 %v2837_v62, %s2509_s25 }
 0x2e7   : > { %975 = vrot.lane.b32.xlu1 %v2799_v49, %s2509_s25  ;;  %973 = vrot.lane.b32.xlu0 %v2811_v40, %s2509_s25  ;;  %s2435_s25 = scalar_lea.vmem %s3400_s28, 1024 }
 0x2e8   : > { %p2436_p6 = scmp.ne.s32.totalorder %s3400_s28, %s2435_s25  ;;  %p2443_p10 = scmp.lt.s32.totalorder %s2441_s0, %s2435_s25 }
 0x2ea   : > { %p2437_p12 = pnand %p2436_p6, %p3492_p11  ;;  %p2444_p1 = por %p2443_p10, %p2442_p4 }
 0x2ec   : > { %p2438_p13 = pneg %p2437_p12 }
 0x2ee   : > { %p2445_p3 = pnand %p2444_p1, %p2438_p13 }
 0x32a   : > { %v1506_v59 = vpop.xlane.xlu0 %1505 }
 0x32b   : > { %v1474_v61 = vpop.xlane.xlu1 %1473 }
 0x32c   : > { %v1520_v62 = vadd.f32 %v1506_v59, %v1474_v61 }
 0x32e   : > { %v1509_v18 = vpop.xlane.xlu0 %1508  ;;  %v1528_v21 = vmul.f32 0.015625, %v1520_v62 }
 0x32f   : > { %v1477_v16 = vpop.xlane.xlu1 %1476 }
 0x330   : > { %v1521_v8 = vadd.f32 %v1509_v18, %v1477_v16  ;;  %v1536_v56 = vadd.f32 1e-05, %v1528_v21  ;;  %v1658_v21 = vld [vmem:[%s3465_s13 + $0x10] sm:$0xff] }
 0x332   : > { %v1503_v60 = vpop.xlane.xlu0 %1502  ;;  %v1529_v25 = vmul.f32 0.015625, %v1521_v8 }
 0x333   : > { %v1471_v12 = vpop.xlane.xlu1 %1470 }
 0x334   : > { %v1519_v43 = vadd.f32 %v1503_v60, %v1471_v12  ;;  %v1537_v13 = vadd.f32 1e-05, %v1529_v25 }
 0x336   : > { %v1512_v36 = vpop.xlane.xlu0 %1511  ;;  %v1527_v51 = vmul.f32 0.015625, %v1519_v43 }
 0x337   : > { %v1480_v54 = vpop.xlane.xlu1 %1479 }
 0x338   : > { %v1522_v23 = vadd.f32 %v1512_v36, %v1480_v54  ;;  %v1535_v22 = vadd.f32 1e-05, %v1527_v51  ;;  %v3297_v54 = vld [vmem:[%s3462_s10] ss:$0 sm:$0xff] }
 0x339   : > { %v1640_v51 = vld [vmem:[#allocation8] sm:$0xff] }
 0x33a   : > { %v1500_v15 = vpop.xlane.xlu0 %1499  ;;  %v1530_v58 = vmul.f32 0.015625, %v1522_v23 }
 0x33b   : > { %v1468_v35 = vpop.xlane.xlu1 %1467 }
 0x33c   : > { %v1518_v37 = vadd.f32 %v1500_v15, %v1468_v35  ;;  %v1538_v42 = vadd.f32 1e-05, %v1530_v58 }
 0x33e   : > { %v1515_v39 = vpop.xlane.xlu0 %1514  ;;  %v1526_v47 = vmul.f32 0.015625, %v1518_v37 }
 0x33f   : > { %v1483_v46 = vpop.xlane.xlu1 %1482 }
 0x340   : > { %v1534_v40 = vadd.f32 1e-05, %v1526_v47  ;;  %v1523_v41 = vadd.f32 %v1515_v39, %v1483_v46 }
 0x342   : > { %v1497_v30 = vpop.xlane.xlu0 %1496  ;;  %2389 = vrsqrt.f32 %v1534_v40  ;;  %v1531_v19 = vmul.f32 0.015625, %v1523_v41  ;;  %v1659_v40 = vld [vmem:[%s3465_s13 + $0x18] sm:$0xff] }
 0x343   : > { %v1465_v49 = vpop.xlane.xlu1 %1464 }
 0x344   : > { %v1517_v27 = vadd.f32 %v1497_v30, %v1465_v49  ;;  %v1539_v34 = vadd.f32 1e-05, %v1531_v19 }
 0x346   : > { %v1525_v3 = vmul.f32 0.015625, %v1517_v27  ;;  %v1494_v32 = vpop.xlane.xlu0 %1493 }
 0x347   : > { %v1462_v29 = vpop.xlane.xlu1 %1461 }
 0x348   : > { %v1533_v26 = vadd.f32 1e-05, %v1525_v3  ;;  %v1516_v2 = vadd.f32 %v1494_v32, %v1462_v29 }
 0x34a   : > { %2391 = vrsqrt.f32 %v1533_v26  ;;  %v1524_v44 = vmul.f32 0.015625, %v1516_v2  ;;  %v996_v63 = vpop.permute.xlu0 %995 }
 0x34b   : > { %v998_v7 = vpop.permute.xlu1 %997  ;;  %1018 = vst.msk [vmem:[#allocation8 + $0x8] sm:$0xff] %vm531_vm0, %v996_v63  ;;  %2393 = vrsqrt.f32 %v1536_v56 }
 0x34c   : > { %v1532_v38 = vadd.f32 1e-05, %v1524_v44  ;;  %1019 = vst.msk [vmem:[#allocation8 + $0x10] sm:$0xff] %vm531_vm0, %v998_v7  ;;  %2395 = vrsqrt.f32 %v1535_v22  ;;  %v3279_v45 = vpop.eup %2389  ;;  %v2258_v22 = vpack.c.bf16 %v1659_v40, %v1658_v21 }
 0x34d   : > { %v1604_v61 = vmul.f32 %v3279_v45, %v3177_v5 }
 0x34e   : > { %2397 = vrsqrt.f32 %v1532_v38  ;;  %v1002_v50 = vpop.permute.xlu0 %1001 }
 0x34f   : > { %v1000_v20 = vpop.permute.xlu1 %999  ;;  %1021 = vst.msk [vmem:[#allocation8 + $0x20] sm:$0xff] %vm531_vm0, %v1002_v50  ;;  %2399 = vrsqrt.f32 %v1537_v13  ;;  %v1619_v35 = vmul.f32 %v3297_v54, %v1604_v61 }
 0x350   : > { %1020 = vst.msk [vmem:[#allocation8 + $0x18] sm:$0xff] %vm531_vm0, %v1000_v20  ;;  %2401 = vrsqrt.f32 %v1538_v42 }
 0x351   : > { %2403 = vrsqrt.f32 %v1539_v34 }
 0x352   : > { %v1006_v48 = vpop.permute.xlu0 %1005  ;;  %v1641_v2 = vld [vmem:[#allocation8 + $0x8] sm:$0xff] }
 0x353   : > { %v1004_v24 = vpop.permute.xlu1 %1003  ;;  %1023 = vst.msk [vmem:[#allocation8 + $0x30] sm:$0xff] %vm531_vm0, %v1006_v48  ;;  %v1642_v23 = vld [vmem:[#allocation8 + $0x10] sm:$0xff] }
 0x354   : > { %v3282_v59 = vpop.eup %2391  ;;  %1022 = vst.msk [vmem:[#allocation8 + $0x28] sm:$0xff] %vm531_vm0, %v1004_v24 }
 0x355   : > { %v1603_v18 = vmul.f32 %v3282_v59, %v3201_v14  ;;  %v3289_v16 = vpop.eup %2393  ;;  %v1549_v48 = vmul.f32 %v3282_v59, %v3207_v9  ;;  %v2078_v9 = vld [vmem:[%s3463_s11] ss:$0 sm:$0xff] }
 0x356   : > { %v962_v60 = vpop.permute.xlu0 %961  ;;  %v3291_v12 = vpop.eup %2395  ;;  %v1606_v62 = vmul.f32 %v3289_v16, %v3141_v10  ;;  %v1644_v38 = vld [vmem:[#allocation8 + $0x20] sm:$0xff] }
 0x357   : > { %v1008_v36 = vpop.permute.xlu1 %1007  ;;  %985 = vst.msk [vmem:[#allocation7] sm:$0xff] %vm531_vm0, %v962_v60  ;;  %v1618_v5 = vmul.f32 %v3297_v54, %v1603_v18  ;;  %v1605_v37 = vmul.f32 %v3291_v12, %v3149_v6  ;;  %v1643_v44 = vld [vmem:[#allocation8 + $0x18] sm:$0xff]  ;;  %v1550_v60 = vmul.f32 %v3279_v45, %v3183_v11 }
 0x358   : > { %v2398_v15 = vpop.eup %2397  ;;  %1024 = vst.msk [vmem:[#allocation8 + $0x38] sm:$0xff] %vm531_vm0, %v1008_v36  ;;  %v1621_v25 = vmul.f32 %v3297_v54, %v1606_v62 }
 0x359   : > { %v1602_v14 = vmul.f32 %v2398_v15, %v3213_v0  ;;  %v3305_v46 = vpop.eup %2399  ;;  %v3314_v0 = vld [vmem:[%s3464_s12] ss:$0 sm:$0xff]  ;;  %v1620_v3 = vmul.f32 %v3297_v54, %v1605_v37  ;;  %v1548_v41 = vmul.f32 %v2398_v15, %v3219_v53 }
 0x35a   : > { %v966_v39 = vpop.permute.xlu0 %965  ;;  %v3316_v30 = vpop.eup %2401  ;;  %v1633_v6 = vadd.f32 %v3314_v0, %v1618_v5  ;;  %v1634_v10 = vadd.f32 %v3314_v0, %v1619_v35  ;;  %v1607_v27 = vmul.f32 %v3305_v46, %v3154_v17  ;;  %v1636_v53 = vadd.f32 %v3314_v0, %v1621_v25  ;;  %v1646_v61 = vld [vmem:[#allocation8 + $0x30] sm:$0xff] }
 0x35b   : > { %v964_v47 = vpop.permute.xlu1 %963  ;;  %987 = vst.msk [vmem:[#allocation7 + $0x10] sm:$0xff] %vm531_vm0, %v966_v39  ;;  %v1617_v43 = vmul.f32 %v3297_v54, %v1602_v14  ;;  %v3331_v32 = vpop.eup %2403  ;;  %v1608_v29 = vmul.f32 %v3316_v30, %v3165_v31  ;;  %v1635_v7 = vadd.f32 %v3314_v0, %v1620_v3  ;;  %v1645_v34 = vld [vmem:[#allocation8 + $0x28] sm:$0xff]  ;;  %v1552_v39 = vmul.f32 %v3289_v16, %v3139_v4 }
 0x35c   : > { %986 = vst.msk [vmem:[#allocation7 + $0x8] sm:$0xff] %vm531_vm0, %v964_v47  ;;  %v1649_v17 = vmul.f32 %v1641_v2, %v1633_v6  ;;  %v1650_v58 = vmul.f32 %v1642_v23, %v1634_v10  ;;  %v1609_v31 = vmul.f32 %v3331_v32, %v3191_v33  ;;  %v1622_v13 = vmul.f32 %v3297_v54, %v1607_v27  ;;  %v2077_v33 = vld [vmem:[%s3461_s9] ss:$0 sm:$0xff] }
 0x35d   : > { %v1632_v49 = vadd.f32 %v3314_v0, %v1617_v43  ;;  %v1623_v42 = vmul.f32 %v3297_v54, %v1608_v29  ;;  %v1651_v50 = vmul.f32 %v1643_v44, %v1635_v7  ;;  %v1652_v20 = vmul.f32 %v1644_v38, %v1636_v53 }
 0x35e   : > { %v970_v8 = vpop.permute.xlu0 %969  ;;  %v1637_v24 = vadd.f32 %v3314_v0, %v1622_v13  ;;  %v1624_v18 = vmul.f32 %v3297_v54, %v1609_v31  ;;  %v1551_v54 = vmul.f32 %v3291_v12, %v3158_v57  ;;  %v1564_v11 = vmul.f32 %v2077_v33, %v1549_v48  ;;  %v1586_v37 = vld [vmem:[#allocation7] sm:$0xff] }
 0x35f   : > { %v968_v56 = vpop.permute.xlu1 %967  ;;  %989 = vst.msk [vmem:[#allocation7 + $0x20] sm:$0xff] %vm531_vm0, %v970_v8  ;;  %v1648_v26 = vmul.f32 %v1640_v51, %v1632_v49  ;;  %v1638_v15 = vadd.f32 %v3314_v0, %v1623_v42  ;;  %v1647_v14 = vld [vmem:[#allocation8 + $0x38] sm:$0xff]  ;;  %v1565_v62 = vmul.f32 %v2077_v33, %v1550_v60  ;;  %v1553_v49 = vmul.f32 %v3305_v46, %v3152_v28 }
 0x360   : > { %988 = vst.msk [vmem:[#allocation7 + $0x18] sm:$0xff] %vm531_vm0, %v968_v56  ;;  %v1653_v59 = vmul.f32 %v1645_v34, %v1637_v24  ;;  %v1639_v45 = vadd.f32 %v3314_v0, %v1624_v18  ;;  %v1579_v10 = vadd.f32 %v2078_v9, %v1564_v11  ;;  %v1566_v12 = vmul.f32 %v2077_v33, %v1551_v54 }
 0x361   : > { %2198 = vmatprep.mubr.msk.f32.mxu0 %vm531_vm0, %v1648_v26  ;;  %v1654_v5 = vmul.f32 %v1646_v61, %v1638_v15  ;;  %v1554_v0 = vmul.f32 %v3316_v30, %v3171_v1  ;;  %v1580_v4 = vadd.f32 %v2078_v9, %v1565_v62  ;;  %v1567_v16 = vmul.f32 %v2077_v33, %v1552_v39 }
 0x362   : > { %2199 = vmatmul.mubr.msk.f32.vlgmr.msra.gmra.mrb[0].mxu0 %vm531_vm0, %v1649_v17  ;;  %v974_v63 = vpop.permute.xlu0 %973  ;;  %v1655_v47 = vmul.f32 %v1647_v14, %v1639_v45  ;;  %v1588_v57 = vld [vmem:[#allocation7 + $0x10] sm:$0xff]  ;;  %v1555_v8 = vmul.f32 %v3331_v32, %v3195_v52  ;;  %v1581_v28 = vadd.f32 %v2078_v9, %v1566_v12  ;;  %v1568_v51 = vmul.f32 %v2077_v33, %v1553_v49 }
 0x363   : > { %2257 = vmatpush3.bf16.msra.mxu0 %v3268_v55  ;;  %v972_v19 = vpop.permute.xlu1 %971  ;;  %2201 = vmatprep.mubr.msk.f32.mxu0 %vm531_vm0, %v1650_v58  ;;  %991 = vst.msk [vmem:[#allocation7 + $0x30] sm:$0xff] %vm531_vm0, %v974_v63  ;;  %v1563_v55 = vmul.f32 %v2077_v33, %v1548_v41  ;;  %v1587_v6 = vld [vmem:[#allocation7 + $0x8] sm:$0xff]  ;;  %v1596_v40 = vmul.f32 %v1588_v57, %v1580_v4  ;;  %v2097_v58 = vld [vmem:[%s3466_s14] ss:$0 sm:$0xff] }
 0x364   : > { %990 = vst.msk [vmem:[#allocation7 + $0x28] sm:$0xff] %vm531_vm0, %v972_v19  ;;  %2259 = vmatprep.subr.bf16.mxu0 %v2258_v22  ;;  %v1595_v21 = vmul.f32 %v1587_v6, %v1579_v10  ;;  %v1582_v23 = vadd.f32 %v2078_v9, %v1567_v16  ;;  %v1569_v3 = vmul.f32 %v2077_v33, %v1554_v0 }
 0x365   : > { %v1578_v35 = vadd.f32 %v2078_v9, %v1563_v55  ;;  %v1583_v56 = vadd.f32 %v2078_v9, %v1568_v51  ;;  %v1570_v2 = vmul.f32 %v2077_v33, %v1555_v8 }
 0x366   : > { %2202 = vmatmul.mubr.msk.f32.gmra.mrb[2].mxu0 %vm531_vm0, %v1651_v50  ;;  %v1590_v46 = vld [vmem:[#allocation7 + $0x20] sm:$0xff]  ;;  %v1584_v52 = vadd.f32 %v2078_v9, %v1569_v3 }
 0x367   : > { %v976_v36 = vpop.permute.xlu1 %975  ;;  %2204 = vmatprep.mubr.msk.f32.mxu0 %vm531_vm0, %v1652_v20  ;;  %2261 = vmatpush3.bf16.msra.mxu0 %v2258_v22  ;;  %v1594_v43 = vmul.f32 %v1586_v37, %v1578_v35  ;;  %v1589_v27 = vld [vmem:[#allocation7 + $0x18] sm:$0xff]  ;;  %v1598_v30 = vmul.f32 %v1590_v46, %v1582_v23  ;;  %v1585_v22 = vadd.f32 %v2078_v9, %v1570_v2 }
 0x368   : > { %992 = vst.msk [vmem:[#allocation7 + $0x38] sm:$0xff] %vm531_vm0, %v976_v36  ;;  %v1597_v1 = vmul.f32 %v1589_v27, %v1581_v28 }
 0x36a   : > { %2205 = vmatmul.mubr.msk.f32.gmra.mrb[4].mxu0 %vm531_vm0, %v1653_v59  ;;  %v1592_v26 = vld [vmem:[#allocation7 + $0x30] sm:$0xff] }
 0x36b   : > { %2207 = vmatprep.mubr.msk.f32.mxu0 %vm531_vm0, %v1654_v5  ;;  %v1591_v29 = vld [vmem:[#allocation7 + $0x28] sm:$0xff]  ;;  %v1600_v25 = vmul.f32 %v1592_v26, %v1584_v52 }
 0x36c   : > { %v1599_v32 = vmul.f32 %v1591_v29, %v1583_v56 }
 0x36e   : > { %2208 = vmatmul.mubr.msk.f32.gmra.mrb[6].mxu0 %vm531_vm0, %v1655_v47 }
 0x36f   : > { %2218 = vmatprep.mubr.msk.f32.mxu0 %vm531_vm0, %v1594_v43  ;;  %v1593_v17 = vld [vmem:[#allocation7 + $0x38] sm:$0xff] }
 0x370   : > { %v1601_v41 = vmul.f32 %v1593_v17, %v1585_v22 }
 0x372   : > { %2219 = vmatmul.mubr.msk.f32.vlgmr.msra.gmra.mrb[0].mxu0 %vm531_vm0, %v1595_v21 }
 0x373   : > { %2221 = vmatprep.mubr.msk.f32.mxu0 %vm531_vm0, %v1596_v40 }
 0x376   : > { %2222 = vmatmul.mubr.msk.f32.gmra.mrb[2].mxu0 %vm531_vm0, %v1597_v1 }
 0x377   : > { %2224 = vmatprep.mubr.msk.f32.mxu0 %vm531_vm0, %v1598_v30 }
 0x37a   : > { %2225 = vmatmul.mubr.msk.f32.gmra.mrb[4].mxu0 %vm531_vm0, %v1599_v32 }
 0x37b   : > { %2227 = vmatprep.mubr.msk.f32.mxu0 %vm531_vm0, %v1600_v25 }
 0x37e   : > { %2228 = vmatmul.mubr.msk.f32.gmra.mrb[6].mxu0 %vm531_vm0, %v1601_v41 }
 0x445   : > { %v2220_v44 = vpop.f32.mrb[0].mxu0 }
 0x446   : > { %v1930_v31 = vadd.f32 %v2220_v44, %v2097_v58  ;;  %v1883_v63 = vpop.f32.mrb[1].mxu0 }
 0x447   : > { %v1929_v7 = vadd.f32 %v2097_v58, %v1883_v63 }
 0x448   : > { %1938 = vst.msk [vmem:[%s511_s26 + $0x8] sm:$0xff] %vm531_vm0, %v1930_v31 }
 0x449   : > { %1937 = vst.msk [vmem:[%s511_s26] sm:$0xff] %vm531_vm0, %v1929_v7  ;;  %v2223_v38 = vpop.f32.mrb[2].mxu0 }
 0x44a   : > { %v1932_v13 = vadd.f32 %v2223_v38, %v2097_v58  ;;  %v1893_v19 = vpop.f32.mrb[3].mxu0 }
 0x44b   : > { %v1931_v53 = vadd.f32 %v2097_v58, %v1893_v19 }
 0x44c   : > { %1940 = vst.msk [vmem:[%s511_s26 + $0x18] sm:$0xff] %vm531_vm0, %v1932_v13 }
 0x44d   : > { %1939 = vst.msk [vmem:[%s511_s26 + $0x10] sm:$0xff] %vm531_vm0, %v1931_v53  ;;  %v2226_v42 = vpop.f32.mrb[4].mxu0 }
 0x44e   : > { %v1934_v33 = vadd.f32 %v2226_v42, %v2097_v58  ;;  %v1903_v50 = vpop.f32.mrb[5].mxu0 }
 0x44f   : > { %v1933_v20 = vadd.f32 %v2097_v58, %v1903_v50 }
 0x450   : > { %1942 = vst.msk [vmem:[%s511_s26 + $0x28] sm:$0xff] %vm531_vm0, %v1934_v33 }
 0x451   : > { %1941 = vst.msk [vmem:[%s511_s26 + $0x20] sm:$0xff] %vm531_vm0, %v1933_v20  ;;  %v2229_v34 = vpop.f32.mrb[6].mxu0 }
 0x452   : > { %v1936_v55 = vadd.f32 %v2229_v34, %v2097_v58  ;;  %v1913_v48 = vpop.f32.mrb[7].mxu0 }
 0x453   : > { %v1935_v24 = vadd.f32 %v2097_v58, %v1913_v48 }
 0x454   : > { %1944 = vst.msk [vmem:[%s511_s26 + $0x38] sm:$0xff] %vm531_vm0, %v1936_v55 }
 0x455   : > { %1943 = vst.msk [vmem:[%s511_s26 + $0x30] sm:$0xff] %vm531_vm0, %v1935_v24 }
 0x456   : > { %2448 = shalt.err (!%p2445_p3)
}
 0x457   : > { %s2449_s26 = scalar_lea.hbm %s3406_s24, 1024  ;;  %s2453_s20 = scalar_lea.hbm %s3491_s30, 2048 }
 0x458   : > { %p2450_p5 = scmp.ne.s32.totalorder %s3406_s24, %s2449_s26  ;;  %p2454_p9 = scmp.lt.u32.totalorder %s3406_s24, %s3491_s30 }
 0x459   : > { %p2455_p0 = scmp.lt.u32.totalorder %s2453_s20, %s2449_s26  ;;  %p2457_p6 = scmp.lt.u32.totalorder %s2449_s26, %s3406_s24 }
 0x45a   : > { %p2451_p7 = pnand %p2450_p5, %p3492_p11 }
 0x45b   : > { %p2456_p2 = por %p2455_p0, %p2454_p9 }
 0x45c   : > { %p2452_p8 = pneg %p2451_p7 }
 0x45d   : > { %p2458_p12 = por %p2457_p6, %p2456_p2 }
 0x45f   : > { %p2459_p13 = pnand %p2458_p12, %p2452_p8 }
 0x461   : > { %2462 = shalt.err (!%p2459_p13)
}
 0x462   : > { %s2511_s0 = smov 128   ;;  %s2512_s25 = smov 256  }
 0x463   : > { %s2513_s22 = smov 8   ;;  %s3493_s27 = scalar_lea.sflag [#allocation11], %s2700_s17 }
 0x464   : > { %2272 = dma.vmem_to_hbm [thread:$0]  (%p3492_p11), %s3400_s28, 1024, %s3406_s24, %s3493_s27, %s2511_s0, %s2512_s25, %s2513_s22  }
 0x465 PF: > { %s3494_s18 = sld [smem:[#allocation15_spill]]  ;;  %p3495_p4 = scmp.ne.s32.totalorder %s3486_s16, 0 }
 0x466   : > { %p3496_p10 = scmp.ge.s32.totalorder %s2501_s21, 2 }
 0x468   : > { %p2279_p1 = pnand %p3496_p10, %p3495_p4 }
 0x46b   : > { %s1973_s20 = sand.u32 1, %s3494_s18  }
 0x46c   : > { %s1974_s26 = scalar_lea.sflag [#allocation11], %s1973_s20 }
 0x46d   : > { %2484 = dma.done.wait (!%p2279_p1), %s1974_s26, 1024  }
 0x46e   : > { %2486 = vsyncadd (!%p2279_p1), %s1974_s26, 4294966272  ;;  %s3497_s21 = sld [smem:[#allocation17_spill]]  ;;  %s3498_s23 = sld [smem:[#allocation16_spill]] }
 0x46f   : > { %s3499_s20 = sld [smem:[#allocation18_spill]]  ;;  %s3500_s18 = smov %s2493_s19 }
 0x474   : > { %p28_p3 = scmp.ge.s32.totalorder %s3497_s21, 4   ;;  %s3501_s19 = smov %s3498_s23 }
 0x476   :  { %30 = sbr.rel (!%p28_p3) target bundleno = 8 (0x8), region = 160 }
 0x47d   :  { %1979 = vsyncpa [#allocation10], 1 }
 0x47e   :  { %1981 = vsyncpa [#allocation10 + $0x1], 1 }
 0x47f   :  { %1982 = vsyncpa [#allocation11], 1 }
 0x480   :  { %1984 = vsyncpa [#allocation11 + $0x1], 1 }

</bundles_post_ra>
